<compile_context>
chip_gen: v5e
topology: v5e:2x2
jax: 0.10.0
libtpu: 0.0.40
codegen_flags: <defaults>
</compile_context>

<pallas_src>
import functools

import jax
import jax.numpy as jnp
from jax import lax
from jax.experimental import pallas as pl
from jax.experimental.pallas import tpu as pltpu


_COL0 = 8                                 # sublane-aligned interior column start
_NT_DIMS = (((1,), (1,)), ((), ()))       # A @ B.T contraction (native MXU trans_b)


# -----------------------------------------------------------------------------
# Pallas kernel: fused concat + [L x (Conv3x3 same + BN + ReLU)] + final conv
# -----------------------------------------------------------------------------
def _fused_neck_final_kernel(xup_ref, skip_ref, wn_ref, sn_ref, bn_ref,
                             wf_ref, sf_ref, bf_ref, o_ref, pad_ref):
    # xup_ref:  (H, W, Cx)      nearest-upsampled x, bf16
    # skip_ref: (H, W, Cskip)   skip connection, bf16
    # wn_ref:   (L*9, C, C)     neck conv weights, one (Cin, Cout) slab per tap, bf16
    # sn_ref:   (L, 1, C)       folded BN scale per neck layer, f32
    # bn_ref:   (L, 1, C)       folded BN shift per neck layer, f32
    # wf_ref:   (9, Cout, C)    final conv weights per tap, (Cout, Cin), bf16
    # sf_ref:   (Cout, 1)       final folded BN scale, f32
    # bf_ref:   (Cout, 1)       final folded BN shift, f32
    # o_ref:    (Cout, H*W)     lane-dense same-pad output (wrapper crops to valid)
    # pad_ref:  (H+2, W+9, C)   VMEM scratch; interior at [1:H+1, 8:8+W), zero halo
    h, w, c_x = xup_ref.shape
    c_skip = skip_ref.shape[-1]
    c = c_x + c_skip
    n_layers = sn_ref.shape[0]

    # Prologue: fuse the channel concat directly into the padded scratch and
    # zero ONLY the halo strips (interior is overwritten; no O(H*W) clear).
    pad_ref[1:1 + h, _COL0:_COL0 + w, :] = jnp.concatenate(
        [xup_ref[...], skip_ref[...]], axis=-1).astype(pad_ref.dtype)
    zrow = jnp.zeros((1,) + pad_ref.shape[1:], pad_ref.dtype)
    pad_ref[0:1, :, :] = zrow
    pad_ref[h + 1:h + 2, :, :] = zrow
    zcol = jnp.zeros((h, 1, c), pad_ref.dtype)
    pad_ref[1:1 + h, _COL0 - 1:_COL0, :] = zcol
    pad_ref[1:1 + h, _COL0 + w:_COL0 + w + 1, :] = zcol

    def taps_bf16():
        # 9 shifted views of the zero-padded activation; no im2col slab is ever
        # materialized (W multiple of 8 keeps the reshape a pure reinterpretation).
        for kh in range(3):
            for kw in range(3):
                t = pad_ref[kh:kh + h, _COL0 - 1 + kw:_COL0 - 1 + kw + w, :]
                yield kh * 3 + kw, t.reshape(h * w, c).astype(jnp.bfloat16)

    # Neck: length x [Conv3x3 (pad=1, no bias) -> BN -> ReLU], channels kept.
    # Each conv = 9 accumulated MXU matmuls with f32 accumulation.
    for l in range(n_layers):
        acc = None
        for t_idx, tap in taps_bf16():
            part = jnp.dot(tap, wn_ref[l * 9 + t_idx],
                           preferred_element_type=jnp.float32)
            acc = part if acc is None else acc + part
        y = jnp.maximum(acc * sn_ref[l] + bn_ref[l], 0.0)
        pad_ref[1:1 + h, _COL0:_COL0 + w, :] = (
            y.reshape(h, w, c).astype(pad_ref.dtype))

    # Final: Conv3x3 (no bias) -> BN -> ReLU, accumulated directly in the
    # lane-dense (Cout, H*W) layout (A @ B.T form), so the output store and the
    # writeback DMA are unmasked and the wrapper never transposes.
    acc = None
    for t_idx, tap in taps_bf16():
        part = lax.dot_general(wf_ref[t_idx], tap, _NT_DIMS,
                               preferred_element_type=jnp.float32)
        acc = part if acc is None else acc + part
    o_ref[...] = jnp.maximum(acc * sf_ref[...] + bf_ref[...], 0.0).astype(o_ref.dtype)


def _padded_bytes(shape, itemsize, sublane=8):
    """Rough VMEM footprint of one buffer after (sublane, 128)-tile padding."""
    s = list(shape)
    s[-1] = -(-s[-1] // 128) * 128
    if len(s) > 1:
        s[-2] = -(-s[-2] // sublane) * sublane
    total = itemsize
    for d in s:
        total *= d
    return total


def fused_neck_final(x_up, skip, neck_w, neck_scale, neck_shift,
                     final_w, final_scale, final_shift):
    """One pallas_call for the whole concat + neck + final conv (per image)."""
    n, h, w, c_x = x_up.shape
    c_skip = skip.shape[-1]
    c = c_x + c_skip
    n_layers = neck_scale.shape[0]
    c_out = final_w.shape[1]
    pad_cols = w + _COL0 + 1  # slack so the interior starts sublane-aligned

    # Explicit scoped-VMEM budget with headroom (defaults: 16 MiB v5e / 32 MiB
    # v6e+); clamped so it stays valid on v7x's 64 MiB parts.
    est = (2 * _padded_bytes((h, w, c_x), 2, 16)
           + 2 * _padded_bytes((h, w, c_skip), 2, 16)
           + 2 * _padded_bytes((9 * n_layers, c, c), 2, 16)
           + 4 * _padded_bytes((n_layers, 1, c), 4)
           + 2 * _padded_bytes((9, c_out, c), 2, 16)
           + 4 * _padded_bytes((c_out, 1), 4)
           + 2 * _padded_bytes((c_out, h * w), 4)
           + _padded_bytes((h + 2, pad_cols, c), 4))
    vmem_limit = int(min(max(est * 3 // 2, 32 * 1024 * 1024), 96 * 1024 * 1024))

    out = pl.pallas_call(
        _fused_neck_final_kernel,
        out_shape=jax.ShapeDtypeStruct((n, c_out, h * w), jnp.float32),
        grid_spec=pltpu.PrefetchScalarGridSpec(
            num_scalar_prefetch=0,
            grid=(n,),
            in_specs=[
                pl.BlockSpec((None, h, w, c_x), lambda b: (b, 0, 0, 0)),
                pl.BlockSpec((None, h, w, c_skip), lambda b: (b, 0, 0, 0)),
                pl.BlockSpec((9 * n_layers, c, c), lambda b: (0, 0, 0)),
                pl.BlockSpec((n_layers, 1, c), lambda b: (0, 0, 0)),
                pl.BlockSpec((n_layers, 1, c), lambda b: (0, 0, 0)),
                pl.BlockSpec((9, c_out, c), lambda b: (0, 0, 0)),
                pl.BlockSpec((c_out, 1), lambda b: (0, 0)),
                pl.BlockSpec((c_out, 1), lambda b: (0, 0)),
            ],
            out_specs=pl.BlockSpec((None, c_out, h * w), lambda b: (b, 0, 0)),
            scratch_shapes=[pltpu.VMEM((h + 2, pad_cols, c), jnp.float32)],
        ),
        compiler_params=pltpu.CompilerParams(
            dimension_semantics=("parallel",),
            vmem_limit_bytes=vmem_limit),
    )(x_up, skip, neck_w, neck_scale, neck_shift,
      final_w, final_scale, final_shift)

    # Same-pad -> valid crop (interior outputs never touch the zero halo) and a
    # free reshape to NCHW (output already channel-major).
    return out.reshape(n, c_out, h, w)[:, :, 1:-1, 1:-1]


# -----------------------------------------------------------------------------
# Glue: nearest interpolation, BN folding, tap-packing, full forward
# -----------------------------------------------------------------------------
def nearest_upsample_nhwc(x, size):
    """F.interpolate(mode='nearest') on NHWC; repeat for integer scales."""
    _, h_in, w_in, _ = x.shape
    h_out, w_out = size
    if h_out % h_in == 0 and w_out % w_in == 0:
        x = jnp.repeat(x, h_out // h_in, axis=1)
        return jnp.repeat(x, w_out // w_in, axis=2)
    hi = (jnp.arange(h_out) * h_in) // h_out
    wi = (jnp.arange(w_out) * w_in) // w_out
    return x[:, hi][:, :, wi]


def _fold_bn(gamma, beta, mean, var, eps=1e-5):
    scale = gamma / jnp.sqrt(var + eps)
    return scale, beta - mean * scale


def _pack_taps_io(w_oihw):
    # (Cout, Cin, 3, 3) -> (9, Cin, Cout), tap index = kh*3 + kw
    c_out, c_in = w_oihw.shape[0], w_oihw.shape[1]
    return jnp.transpose(w_oihw, (2, 3, 1, 0)).reshape(9, c_in, c_out)


def _pack_taps_oi(w_oihw):
    # (Cout, Cin, 3, 3) -> (9, Cout, Cin), tap index = kh*3 + kw
    c_out, c_in = w_oihw.shape[0], w_oihw.shape[1]
    return jnp.transpose(w_oihw, (2, 3, 0, 1)).reshape(9, c_out, c_in)


def init_upsample_block_params(key, ch_in, ch_out, skip_in, length):
    """Deterministic synthetic parameters (use_bn=True branch)."""
    c = ch_in + skip_in
    params = {"neck": [], "final": None}
    for _ in range(length):
        key, k1, k2, k3, k4, k5 = jax.random.split(key, 6)
        params["neck"].append({
            "w": 0.1 * jax.random.normal(k1, (c, c, 3, 3), jnp.float32),
            "gamma": 1.0 + 0.1 * jax.random.normal(k2, (c,), jnp.float32),
            "beta": 0.1 * jax.random.normal(k3, (c,), jnp.float32),
            "mean": 0.05 * jax.random.normal(k4, (c,), jnp.float32),
            "var": 1.0 + jnp.abs(0.1 * jax.random.normal(k5, (c,), jnp.float32)),
        })
    key, k1, k2, k3, k4, k5 = jax.random.split(key, 6)
    params["final"] = {
        "w": 0.1 * jax.random.normal(k1, (ch_out, c, 3, 3), jnp.float32),
        "gamma": 1.0 + 0.1 * jax.random.normal(k2, (ch_out,), jnp.float32),
        "beta": 0.1 * jax.random.normal(k3, (ch_out,), jnp.float32),
        "mean": 0.05 * jax.random.normal(k4, (ch_out,), jnp.float32),
        "var": 1.0 + jnp.abs(0.1 * jax.random.normal(k5, (ch_out,), jnp.float32)),
    }
    return params


@functools.partial(jax.jit, static_argnames=("size",))
def upsample_block_forward(params, x_nchw, size, skip_nchw):
    # 1) NCHW -> NHWC at LOW resolution (cheap), nearest upsample via repeat,
    #    bf16 for the HBM->VMEM DMA (the MXU operands are bf16 anyway).
    x_up = nearest_upsample_nhwc(
        jnp.transpose(x_nchw, (0, 2, 3, 1)), size).astype(jnp.bfloat16)
    skip = jnp.transpose(skip_nchw, (0, 2, 3, 1)).astype(jnp.bfloat16)
    # (channel concat happens inside the kernel prologue -> no HBM round trip)

    # 2) pack weights per 3x3 tap (bf16) and fold BN into per-channel affines (f32)
    length = len(params["neck"])
    c = x_up.shape[-1] + skip.shape[-1]
    neck_w = jnp.concatenate(
        [_pack_taps_io(l["w"]) for l in params["neck"]], axis=0
    ).astype(jnp.bfloat16)                                        # (L*9, C, C)
    ns, nb = [], []
    for l in params["neck"]:
        s, t = _fold_bn(l["gamma"], l["beta"], l["mean"], l["var"])
        ns.append(s)
        nb.append(t)
    neck_scale = jnp.stack(ns).reshape(length, 1, c).astype(jnp.float32)
    neck_shift = jnp.stack(nb).reshape(length, 1, c).astype(jnp.float32)

    fin = params["final"]
    final_w = _pack_taps_oi(fin["w"]).astype(jnp.bfloat16)        # (9, Cout, C)
    c_out = final_w.shape[1]
    fs, ft = _fold_bn(fin["gamma"], fin["beta"], fin["mean"], fin["var"])
    final_scale = fs.reshape(c_out, 1).astype(jnp.float32)
    final_shift = ft.reshape(c_out, 1).astype(jnp.float32)

    # 3) single fused Pallas call; result is already NCHW (valid-cropped).
    return fused_neck_final(x_up, skip, neck_w, neck_scale, neck_shift,
                            final_w, final_scale, final_shift)


# -----------------------------------------------------------------------------
# Pure-JAX f32 reference (mirrors the PyTorch module in eval mode)
# -----------------------------------------------------------------------------
def _conv3x3_ref(x_nhwc, w_oihw, same_pad):
    w_hwio = jnp.transpose(w_oihw, (2, 3, 1, 0))
    pad = ((1, 1), (1, 1)) if same_pad else ((0, 0), (0, 0))
    return lax.conv_general_dilated(x_nhwc, w_hwio, (1, 1), pad,
                                    dimension_numbers=("NHWC", "HWIO", "NHWC"))


def upsample_block_reference(params, x_nchw, size, skip_nchw):
    x = nearest_upsample_nhwc(jnp.transpose(x_nchw, (0, 2, 3, 1)), size)
    if skip_nchw is not None:
        x = jnp.concatenate([x, jnp.transpose(skip_nchw, (0, 2, 3, 1))], axis=-1)
    for layer in params["neck"]:
        s, t = _fold_bn(layer["gamma"], layer["beta"], layer["mean"], layer["var"])
        x = jnp.maximum(_conv3x3_ref(x, layer["w"], True) * s + t, 0.0)
    fin = params["final"]
    s, t = _fold_bn(fin["gamma"], fin["beta"], fin["mean"], fin["var"])
    x = jnp.maximum(_conv3x3_ref(x, fin["w"], False) * s + t, 0.0)
    return jnp.transpose(x, (0, 3, 1, 2))


if __name__ == "__main__":
    # UpsampleBlock(ch_in=4, ch_out=4, skip_in=4, mode='nearest', length=2, use_bn=True)
    #   x: (2, 4, 8, 8), size=(16, 16), skip: (2, 4, 16, 16)
    #   output: (2, 4, 14, 14)   (final conv kernel 3, padding 0)
    ch_in, ch_out, skip_in, length = 4, 4, 4, 2
    n, h_in, w_in = 2, 8, 8
    size = (16, 16)

    key = jax.random.PRNGKey(0)
    kx, kskip, kp = jax.random.split(key, 3)
    x = jax.random.normal(kx, (n, ch_in, h_in, w_in), jnp.float32)
    skip = jax.random.normal(kskip, (n, skip_in) + size, jnp.float32)
    params = init_upsample_block_params(kp, ch_in, ch_out, skip_in, length)

    out = upsample_block_forward(params, x, size, skip)
    out = jax.block_until_ready(out)

    expected = (n, ch_out, size[0] - 2, size[1] - 2)
    assert out.shape == expected, (out.shape, expected)
    assert bool(jnp.all(jnp.isfinite(out)))
    assert bool(jnp.all(out >= 0.0))  # ReLU output

    # bf16 MXU operands with f32 accumulation -> ~1e-2-level diffs vs f32 ref.
    ref = upsample_block_reference(params, x, size, skip)
    max_err = float(jnp.max(jnp.abs(out - ref)))
    assert max_err < 0.2, f"max abs error vs f32 reference too large: {max_err}"

    print("KERNEL_OK")
</pallas_src>

<mosaic_0001>
module attributes {stable_mosaic.version = 11 : i64} {
  func.func @_fused_neck_final_kernel(%arg0: i32, %arg1: memref<1x16x16x4xbf16, #tpu.memory_space<vmem>>, %arg2: memref<1x16x16x4xbf16, #tpu.memory_space<vmem>>, %arg3: memref<18x8x8xbf16, #tpu.memory_space<vmem>>, %arg4: memref<2x1x8xf32, #tpu.memory_space<vmem>>, %arg5: memref<2x1x8xf32, #tpu.memory_space<vmem>>, %arg6: memref<9x4x8xbf16, #tpu.memory_space<vmem>>, %arg7: memref<4x1xf32, #tpu.memory_space<vmem>>, %arg8: memref<4x1xf32, #tpu.memory_space<vmem>>, %arg9: memref<1x4x256xf32, #tpu.memory_space<vmem>>, %arg10: memref<18x25x8xf32, #tpu.memory_space<vmem>>) attributes {dimension_semantics = [#tpu.dimension_semantics<parallel>], iteration_bounds = array<i64: 2>, scalar_prefetch = 0 : i64, scratch_operands = 1 : i64, tpu.core_type = #tpu.core_type<tc>, window_params = [{transform_indices = @transform_0, window_bounds = array<i64: 1, 16, 16, 4>}, {transform_indices = @transform_1, window_bounds = array<i64: 1, 16, 16, 4>}, {pipeline_mode = #tpu.pipeline_mode<synchronous>, transform_indices = @transform_2, window_bounds = array<i64: 18, 8, 8>}, {pipeline_mode = #tpu.pipeline_mode<synchronous>, transform_indices = @transform_3, window_bounds = array<i64: 2, 1, 8>}, {pipeline_mode = #tpu.pipeline_mode<synchronous>, transform_indices = @transform_4, window_bounds = array<i64: 2, 1, 8>}, {pipeline_mode = #tpu.pipeline_mode<synchronous>, transform_indices = @transform_5, window_bounds = array<i64: 9, 4, 8>}, {pipeline_mode = #tpu.pipeline_mode<synchronous>, transform_indices = @transform_6, window_bounds = array<i64: 4, 1>}, {pipeline_mode = #tpu.pipeline_mode<synchronous>, transform_indices = @transform_7, window_bounds = array<i64: 4, 1>}, {transform_indices = @transform_8, window_bounds = array<i64: 1, 4, 256>}]} {
    %c0 = arith.constant 0 : index
    %c0_0 = arith.constant 0 : index
    %c0_1 = arith.constant 0 : index
    %c0_2 = arith.constant 0 : index
    %0 = vector.load %arg1[%c0, %c0_0, %c0_1, %c0_2] : memref<1x16x16x4xbf16, #tpu.memory_space<vmem>>, vector<1x16x16x4xbf16>
    %1 = vector.shape_cast %0 : vector<1x16x16x4xbf16> to vector<16x16x4xbf16>
    %c0_3 = arith.constant 0 : index
    %c0_4 = arith.constant 0 : index
    %c0_5 = arith.constant 0 : index
    %c0_6 = arith.constant 0 : index
    %2 = vector.load %arg2[%c0_3, %c0_4, %c0_5, %c0_6] : memref<1x16x16x4xbf16, #tpu.memory_space<vmem>>, vector<1x16x16x4xbf16>
    %3 = vector.shape_cast %2 : vector<1x16x16x4xbf16> to vector<16x16x4xbf16>
    %4 = tpu.concatenate %1, %3 in 2 : vector<16x16x4xbf16>, vector<16x16x4xbf16> -> vector<16x16x8xbf16>
    %5 = arith.extf %4 : vector<16x16x8xbf16> to vector<16x16x8xf32>
    %c1 = arith.constant 1 : index
    %c8 = arith.constant 8 : index
    %c0_7 = arith.constant 0 : index
    %6 = vector.load %arg10[%c1, %c8, %c0_7] : memref<18x25x8xf32, #tpu.memory_space<vmem>>, vector<16x16x8xf32>
    tpu.vector_store %arg10[%c1, %c8, %c0_7], %5 {strides = array<i32>} : memref<18x25x8xf32, #tpu.memory_space<vmem>>, vector<16x16x8xf32>,
    %cst = arith.constant 0.000000e+00 : f32
    %7 = vector.broadcast %cst : f32 to vector<1x25x8xf32>
    %c0_8 = arith.constant 0 : index
    %c0_9 = arith.constant 0 : index
    %c0_10 = arith.constant 0 : index
    %8 = vector.load %arg10[%c0_8, %c0_9, %c0_10] : memref<18x25x8xf32, #tpu.memory_space<vmem>>, vector<1x25x8xf32>
    tpu.vector_store %arg10[%c0_8, %c0_9, %c0_10], %7 {strides = array<i32>} : memref<18x25x8xf32, #tpu.memory_space<vmem>>, vector<1x25x8xf32>,
    %c17 = arith.constant 17 : index
    %c0_11 = arith.constant 0 : index
    %c0_12 = arith.constant 0 : index
    %9 = vector.load %arg10[%c17, %c0_11, %c0_12] : memref<18x25x8xf32, #tpu.memory_space<vmem>>, vector<1x25x8xf32>
    tpu.vector_store %arg10[%c17, %c0_11, %c0_12], %7 {strides = array<i32>} : memref<18x25x8xf32, #tpu.memory_space<vmem>>, vector<1x25x8xf32>,
    %cst_13 = arith.constant 0.000000e+00 : f32
    %10 = vector.broadcast %cst_13 : f32 to vector<16x1x8xf32>
    %c1_14 = arith.constant 1 : index
    %c7 = arith.constant 7 : index
    %c0_15 = arith.constant 0 : index
    %11 = vector.load %arg10[%c1_14, %c7, %c0_15] : memref<18x25x8xf32, #tpu.memory_space<vmem>>, vector<16x1x8xf32>
    tpu.vector_store %arg10[%c1_14, %c7, %c0_15], %10 {strides = array<i32>} : memref<18x25x8xf32, #tpu.memory_space<vmem>>, vector<16x1x8xf32>,
    %c1_16 = arith.constant 1 : index
    %c24 = arith.constant 24 : index
    %c0_17 = arith.constant 0 : index
    %12 = vector.load %arg10[%c1_16, %c24, %c0_17] : memref<18x25x8xf32, #tpu.memory_space<vmem>>, vector<16x1x8xf32>
    tpu.vector_store %arg10[%c1_16, %c24, %c0_17], %10 {strides = array<i32>} : memref<18x25x8xf32, #tpu.memory_space<vmem>>, vector<16x1x8xf32>,
    %c0_18 = arith.constant 0 : index
    %c7_19 = arith.constant 7 : index
    %c0_20 = arith.constant 0 : index
    %13 = vector.load %arg10[%c0_18, %c7_19, %c0_20] : memref<18x25x8xf32, #tpu.memory_space<vmem>>, vector<16x16x8xf32>
    %14 = vector.shape_cast %13 : vector<16x16x8xf32> to vector<256x8xf32>
    %15 = arith.truncf %14 : vector<256x8xf32> to vector<256x8xbf16>
    %c0_21 = arith.constant 0 : index
    %c0_22 = arith.constant 0 : index
    %c0_23 = arith.constant 0 : index
    %16 = vector.load %arg3[%c0_21, %c0_22, %c0_23] : memref<18x8x8xbf16, #tpu.memory_space<vmem>>, vector<1x8x8xbf16>
    %17 = vector.shape_cast %16 : vector<1x8x8xbf16> to vector<8x8xbf16>
    %cst_24 = arith.constant dense<0.000000e+00> : vector<256x8xf32>
    %18 = tpu.matmul %15, %17, %cst_24 {dimension_numbers = #tpu.dot_dimension_numbers<[1], [0], [0], [1], [0, 0, 1, 1], [], []>} : vector<256x8xbf16>, vector<8x8xbf16>, vector<256x8xf32> -> vector<256x8xf32>
    %c0_25 = arith.constant 0 : index
    %c8_26 = arith.constant 8 : index
    %c0_27 = arith.constant 0 : index
    %19 = vector.load %arg10[%c0_25, %c8_26, %c0_27] : memref<18x25x8xf32, #tpu.memory_space<vmem>>, vector<16x16x8xf32>
    %20 = vector.shape_cast %19 : vector<16x16x8xf32> to vector<256x8xf32>
    %21 = arith.truncf %20 : vector<256x8xf32> to vector<256x8xbf16>
    %c1_28 = arith.constant 1 : index
    %c0_29 = arith.constant 0 : index
    %c0_30 = arith.constant 0 : index
    %22 = vector.load %arg3[%c1_28, %c0_29, %c0_30] : memref<18x8x8xbf16, #tpu.memory_space<vmem>>, vector<1x8x8xbf16>
    %23 = vector.shape_cast %22 : vector<1x8x8xbf16> to vector<8x8xbf16>
    %cst_31 = arith.constant dense<0.000000e+00> : vector<256x8xf32>
    %24 = tpu.matmul %21, %23, %cst_31 {dimension_numbers = #tpu.dot_dimension_numbers<[1], [0], [0], [1], [0, 0, 1, 1], [], []>} : vector<256x8xbf16>, vector<8x8xbf16>, vector<256x8xf32> -> vector<256x8xf32>
    %25 = arith.addf %18, %24 : vector<256x8xf32>
    %c0_32 = arith.constant 0 : index
    %c9 = arith.constant 9 : index
    %c0_33 = arith.constant 0 : index
    %26 = vector.load %arg10[%c0_32, %c9, %c0_33] : memref<18x25x8xf32, #tpu.memory_space<vmem>>, vector<16x16x8xf32>
    %27 = vector.shape_cast %26 : vector<16x16x8xf32> to vector<256x8xf32>
    %28 = arith.truncf %27 : vector<256x8xf32> to vector<256x8xbf16>
    %c2 = arith.constant 2 : index
    %c0_34 = arith.constant 0 : index
    %c0_35 = arith.constant 0 : index
    %29 = vector.load %arg3[%c2, %c0_34, %c0_35] : memref<18x8x8xbf16, #tpu.memory_space<vmem>>, vector<1x8x8xbf16>
    %30 = vector.shape_cast %29 : vector<1x8x8xbf16> to vector<8x8xbf16>
    %cst_36 = arith.constant dense<0.000000e+00> : vector<256x8xf32>
    %31 = tpu.matmul %28, %30, %cst_36 {dimension_numbers = #tpu.dot_dimension_numbers<[1], [0], [0], [1], [0, 0, 1, 1], [], []>} : vector<256x8xbf16>, vector<8x8xbf16>, vector<256x8xf32> -> vector<256x8xf32>
    %32 = arith.addf %25, %31 : vector<256x8xf32>
    %c1_37 = arith.constant 1 : index
    %c7_38 = arith.constant 7 : index
    %c0_39 = arith.constant 0 : index
    %33 = vector.load %arg10[%c1_37, %c7_38, %c0_39] : memref<18x25x8xf32, #tpu.memory_space<vmem>>, vector<16x16x8xf32>
    %34 = vector.shape_cast %33 : vector<16x16x8xf32> to vector<256x8xf32>
    %35 = arith.truncf %34 : vector<256x8xf32> to vector<256x8xbf16>
    %c3 = arith.constant 3 : index
    %c0_40 = arith.constant 0 : index
    %c0_41 = arith.constant 0 : index
    %36 = vector.load %arg3[%c3, %c0_40, %c0_41] : memref<18x8x8xbf16, #tpu.memory_space<vmem>>, vector<1x8x8xbf16>
    %37 = vector.shape_cast %36 : vector<1x8x8xbf16> to vector<8x8xbf16>
    %cst_42 = arith.constant dense<0.000000e+00> : vector<256x8xf32>
    %38 = tpu.matmul %35, %37, %cst_42 {dimension_numbers = #tpu.dot_dimension_numbers<[1], [0], [0], [1], [0, 0, 1, 1], [], []>} : vector<256x8xbf16>, vector<8x8xbf16>, vector<256x8xf32> -> vector<256x8xf32>
    %39 = arith.addf %32, %38 : vector<256x8xf32>
    %c1_43 = arith.constant 1 : index
    %c8_44 = arith.constant 8 : index
    %c0_45 = arith.constant 0 : index
    %40 = vector.load %arg10[%c1_43, %c8_44, %c0_45] : memref<18x25x8xf32, #tpu.memory_space<vmem>>, vector<16x16x8xf32>
    %41 = vector.shape_cast %40 : vector<16x16x8xf32> to vector<256x8xf32>
    %42 = arith.truncf %41 : vector<256x8xf32> to vector<256x8xbf16>
    %c4 = arith.constant 4 : index
    %c0_46 = arith.constant 0 : index
    %c0_47 = arith.constant 0 : index
    %43 = vector.load %arg3[%c4, %c0_46, %c0_47] : memref<18x8x8xbf16, #tpu.memory_space<vmem>>, vector<1x8x8xbf16>
    %44 = vector.shape_cast %43 : vector<1x8x8xbf16> to vector<8x8xbf16>
    %cst_48 = arith.constant dense<0.000000e+00> : vector<256x8xf32>
    %45 = tpu.matmul %42, %44, %cst_48 {dimension_numbers = #tpu.dot_dimension_numbers<[1], [0], [0], [1], [0, 0, 1, 1], [], []>} : vector<256x8xbf16>, vector<8x8xbf16>, vector<256x8xf32> -> vector<256x8xf32>
    %46 = arith.addf %39, %45 : vector<256x8xf32>
    %c1_49 = arith.constant 1 : index
    %c9_50 = arith.constant 9 : index
    %c0_51 = arith.constant 0 : index
    %47 = vector.load %arg10[%c1_49, %c9_50, %c0_51] : memref<18x25x8xf32, #tpu.memory_space<vmem>>, vector<16x16x8xf32>
    %48 = vector.shape_cast %47 : vector<16x16x8xf32> to vector<256x8xf32>
    %49 = arith.truncf %48 : vector<256x8xf32> to vector<256x8xbf16>
    %c5 = arith.constant 5 : index
    %c0_52 = arith.constant 0 : index
    %c0_53 = arith.constant 0 : index
    %50 = vector.load %arg3[%c5, %c0_52, %c0_53] : memref<18x8x8xbf16, #tpu.memory_space<vmem>>, vector<1x8x8xbf16>
    %51 = vector.shape_cast %50 : vector<1x8x8xbf16> to vector<8x8xbf16>
    %cst_54 = arith.constant dense<0.000000e+00> : vector<256x8xf32>
    %52 = tpu.matmul %49, %51, %cst_54 {dimension_numbers = #tpu.dot_dimension_numbers<[1], [0], [0], [1], [0, 0, 1, 1], [], []>} : vector<256x8xbf16>, vector<8x8xbf16>, vector<256x8xf32> -> vector<256x8xf32>
    %53 = arith.addf %46, %52 : vector<256x8xf32>
    %c2_55 = arith.constant 2 : index
    %c7_56 = arith.constant 7 : index
    %c0_57 = arith.constant 0 : index
    %54 = vector.load %arg10[%c2_55, %c7_56, %c0_57] : memref<18x25x8xf32, #tpu.memory_space<vmem>>, vector<16x16x8xf32>
    %55 = vector.shape_cast %54 : vector<16x16x8xf32> to vector<256x8xf32>
    %56 = arith.truncf %55 : vector<256x8xf32> to vector<256x8xbf16>
    %c6 = arith.constant 6 : index
    %c0_58 = arith.constant 0 : index
    %c0_59 = arith.constant 0 : index
    %57 = vector.load %arg3[%c6, %c0_58, %c0_59] : memref<18x8x8xbf16, #tpu.memory_space<vmem>>, vector<1x8x8xbf16>
    %58 = vector.shape_cast %57 : vector<1x8x8xbf16> to vector<8x8xbf16>
    %cst_60 = arith.constant dense<0.000000e+00> : vector<256x8xf32>
    %59 = tpu.matmul %56, %58, %cst_60 {dimension_numbers = #tpu.dot_dimension_numbers<[1], [0], [0], [1], [0, 0, 1, 1], [], []>} : vector<256x8xbf16>, vector<8x8xbf16>, vector<256x8xf32> -> vector<256x8xf32>
    %60 = arith.addf %53, %59 : vector<256x8xf32>
    %c2_61 = arith.constant 2 : index
    %c8_62 = arith.constant 8 : index
    %c0_63 = arith.constant 0 : index
    %61 = vector.load %arg10[%c2_61, %c8_62, %c0_63] : memref<18x25x8xf32, #tpu.memory_space<vmem>>, vector<16x16x8xf32>
    %62 = vector.shape_cast %61 : vector<16x16x8xf32> to vector<256x8xf32>
    %63 = arith.truncf %62 : vector<256x8xf32> to vector<256x8xbf16>
    %c7_64 = arith.constant 7 : index
    %c0_65 = arith.constant 0 : index
    %c0_66 = arith.constant 0 : index
    %64 = vector.load %arg3[%c7_64, %c0_65, %c0_66] : memref<18x8x8xbf16, #tpu.memory_space<vmem>>, vector<1x8x8xbf16>
    %65 = vector.shape_cast %64 : vector<1x8x8xbf16> to vector<8x8xbf16>
    %cst_67 = arith.constant dense<0.000000e+00> : vector<256x8xf32>
    %66 = tpu.matmul %63, %65, %cst_67 {dimension_numbers = #tpu.dot_dimension_numbers<[1], [0], [0], [1], [0, 0, 1, 1], [], []>} : vector<256x8xbf16>, vector<8x8xbf16>, vector<256x8xf32> -> vector<256x8xf32>
    %67 = arith.addf %60, %66 : vector<256x8xf32>
    %c2_68 = arith.constant 2 : index
    %c9_69 = arith.constant 9 : index
    %c0_70 = arith.constant 0 : index
    %68 = vector.load %arg10[%c2_68, %c9_69, %c0_70] : memref<18x25x8xf32, #tpu.memory_space<vmem>>, vector<16x16x8xf32>
    %69 = vector.shape_cast %68 : vector<16x16x8xf32> to vector<256x8xf32>
    %70 = arith.truncf %69 : vector<256x8xf32> to vector<256x8xbf16>
    %c8_71 = arith.constant 8 : index
    %c0_72 = arith.constant 0 : index
    %c0_73 = arith.constant 0 : index
    %71 = vector.load %arg3[%c8_71, %c0_72, %c0_73] : memref<18x8x8xbf16, #tpu.memory_space<vmem>>, vector<1x8x8xbf16>
    %72 = vector.shape_cast %71 : vector<1x8x8xbf16> to vector<8x8xbf16>
    %cst_74 = arith.constant dense<0.000000e+00> : vector<256x8xf32>
    %73 = tpu.matmul %70, %72, %cst_74 {dimension_numbers = #tpu.dot_dimension_numbers<[1], [0], [0], [1], [0, 0, 1, 1], [], []>} : vector<256x8xbf16>, vector<8x8xbf16>, vector<256x8xf32> -> vector<256x8xf32>
    %74 = arith.addf %67, %73 : vector<256x8xf32>
    %c0_75 = arith.constant 0 : index
    %c0_76 = arith.constant 0 : index
    %c0_77 = arith.constant 0 : index
    %75 = vector.load %arg4[%c0_75, %c0_76, %c0_77] : memref<2x1x8xf32, #tpu.memory_space<vmem>>, vector<1x1x8xf32>
    %76 = vector.shape_cast %75 : vector<1x1x8xf32> to vector<1x8xf32>
    %77 = vector.broadcast %76 : vector<1x8xf32> to vector<256x8xf32>
    %78 = arith.mulf %74, %77 : vector<256x8xf32>
    %c0_78 = arith.constant 0 : index
    %c0_79 = arith.constant 0 : index
    %c0_80 = arith.constant 0 : index
    %79 = vector.load %arg5[%c0_78, %c0_79, %c0_80] : memref<2x1x8xf32, #tpu.memory_space<vmem>>, vector<1x1x8xf32>
    %80 = vector.shape_cast %79 : vector<1x1x8xf32> to vector<1x8xf32>
    %81 = vector.broadcast %80 : vector<1x8xf32> to vector<256x8xf32>
    %82 = arith.addf %78, %81 : vector<256x8xf32>
    %cst_81 = arith.constant 0.000000e+00 : f32
    %83 = vector.broadcast %cst_81 : f32 to vector<256x8xf32>
    %84 = arith.maximumf %82, %83 : vector<256x8xf32>
    %85 = vector.shape_cast %84 : vector<256x8xf32> to vector<16x16x8xf32>
    %c1_82 = arith.constant 1 : index
    %c8_83 = arith.constant 8 : index
    %c0_84 = arith.constant 0 : index
    %86 = vector.load %arg10[%c1_82, %c8_83, %c0_84] : memref<18x25x8xf32, #tpu.memory_space<vmem>>, vector<16x16x8xf32>
    tpu.vector_store %arg10[%c1_82, %c8_83, %c0_84], %85 {strides = array<i32>} : memref<18x25x8xf32, #tpu.memory_space<vmem>>, vector<16x16x8xf32>,
    %c0_85 = arith.constant 0 : index
    %c7_86 = arith.constant 7 : index
    %c0_87 = arith.constant 0 : index
    %87 = vector.load %arg10[%c0_85, %c7_86, %c0_87] : memref<18x25x8xf32, #tpu.memory_space<vmem>>, vector<16x16x8xf32>
    %88 = vector.shape_cast %87 : vector<16x16x8xf32> to vector<256x8xf32>
    %89 = arith.truncf %88 : vector<256x8xf32> to vector<256x8xbf16>
    %c9_88 = arith.constant 9 : index
    %c0_89 = arith.constant 0 : index
    %c0_90 = arith.constant 0 : index
    %90 = vector.load %arg3[%c9_88, %c0_89, %c0_90] : memref<18x8x8xbf16, #tpu.memory_space<vmem>>, vector<1x8x8xbf16>
    %91 = vector.shape_cast %90 : vector<1x8x8xbf16> to vector<8x8xbf16>
    %cst_91 = arith.constant dense<0.000000e+00> : vector<256x8xf32>
    %92 = tpu.matmul %89, %91, %cst_91 {dimension_numbers = #tpu.dot_dimension_numbers<[1], [0], [0], [1], [0, 0, 1, 1], [], []>} : vector<256x8xbf16>, vector<8x8xbf16>, vector<256x8xf32> -> vector<256x8xf32>
    %c0_92 = arith.constant 0 : index
    %c8_93 = arith.constant 8 : index
    %c0_94 = arith.constant 0 : index
    %93 = vector.load %arg10[%c0_92, %c8_93, %c0_94] : memref<18x25x8xf32, #tpu.memory_space<vmem>>, vector<16x16x8xf32>
    %94 = vector.shape_cast %93 : vector<16x16x8xf32> to vector<256x8xf32>
    %95 = arith.truncf %94 : vector<256x8xf32> to vector<256x8xbf16>
    %c10 = arith.constant 10 : index
    %c0_95 = arith.constant 0 : index
    %c0_96 = arith.constant 0 : index
    %96 = vector.load %arg3[%c10, %c0_95, %c0_96] : memref<18x8x8xbf16, #tpu.memory_space<vmem>>, vector<1x8x8xbf16>
    %97 = vector.shape_cast %96 : vector<1x8x8xbf16> to vector<8x8xbf16>
    %cst_97 = arith.constant dense<0.000000e+00> : vector<256x8xf32>
    %98 = tpu.matmul %95, %97, %cst_97 {dimension_numbers = #tpu.dot_dimension_numbers<[1], [0], [0], [1], [0, 0, 1, 1], [], []>} : vector<256x8xbf16>, vector<8x8xbf16>, vector<256x8xf32> -> vector<256x8xf32>
    %99 = arith.addf %92, %98 : vector<256x8xf32>
    %c0_98 = arith.constant 0 : index
    %c9_99 = arith.constant 9 : index
    %c0_100 = arith.constant 0 : index
    %100 = vector.load %arg10[%c0_98, %c9_99, %c0_100] : memref<18x25x8xf32, #tpu.memory_space<vmem>>, vector<16x16x8xf32>
    %101 = vector.shape_cast %100 : vector<16x16x8xf32> to vector<256x8xf32>
    %102 = arith.truncf %101 : vector<256x8xf32> to vector<256x8xbf16>
    %c11 = arith.constant 11 : index
    %c0_101 = arith.constant 0 : index
    %c0_102 = arith.constant 0 : index
    %103 = vector.load %arg3[%c11, %c0_101, %c0_102] : memref<18x8x8xbf16, #tpu.memory_space<vmem>>, vector<1x8x8xbf16>
    %104 = vector.shape_cast %103 : vector<1x8x8xbf16> to vector<8x8xbf16>
    %cst_103 = arith.constant dense<0.000000e+00> : vector<256x8xf32>
    %105 = tpu.matmul %102, %104, %cst_103 {dimension_numbers = #tpu.dot_dimension_numbers<[1], [0], [0], [1], [0, 0, 1, 1], [], []>} : vector<256x8xbf16>, vector<8x8xbf16>, vector<256x8xf32> -> vector<256x8xf32>
    %106 = arith.addf %99, %105 : vector<256x8xf32>
    %c1_104 = arith.constant 1 : index
    %c7_105 = arith.constant 7 : index
    %c0_106 = arith.constant 0 : index
    %107 = vector.load %arg10[%c1_104, %c7_105, %c0_106] : memref<18x25x8xf32, #tpu.memory_space<vmem>>, vector<16x16x8xf32>
    %108 = vector.shape_cast %107 : vector<16x16x8xf32> to vector<256x8xf32>
    %109 = arith.truncf %108 : vector<256x8xf32> to vector<256x8xbf16>
    %c12 = arith.constant 12 : index
    %c0_107 = arith.constant 0 : index
    %c0_108 = arith.constant 0 : index
    %110 = vector.load %arg3[%c12, %c0_107, %c0_108] : memref<18x8x8xbf16, #tpu.memory_space<vmem>>, vector<1x8x8xbf16>
    %111 = vector.shape_cast %110 : vector<1x8x8xbf16> to vector<8x8xbf16>
    %cst_109 = arith.constant dense<0.000000e+00> : vector<256x8xf32>
    %112 = tpu.matmul %109, %111, %cst_109 {dimension_numbers = #tpu.dot_dimension_numbers<[1], [0], [0], [1], [0, 0, 1, 1], [], []>} : vector<256x8xbf16>, vector<8x8xbf16>, vector<256x8xf32> -> vector<256x8xf32>
    %113 = arith.addf %106, %112 : vector<256x8xf32>
    %c1_110 = arith.constant 1 : index
    %c8_111 = arith.constant 8 : index
    %c0_112 = arith.constant 0 : index
    %114 = vector.load %arg10[%c1_110, %c8_111, %c0_112] : memref<18x25x8xf32, #tpu.memory_space<vmem>>, vector<16x16x8xf32>
    %115 = vector.shape_cast %114 : vector<16x16x8xf32> to vector<256x8xf32>
    %116 = arith.truncf %115 : vector<256x8xf32> to vector<256x8xbf16>
    %c13 = arith.constant 13 : index
    %c0_113 = arith.constant 0 : index
    %c0_114 = arith.constant 0 : index
    %117 = vector.load %arg3[%c13, %c0_113, %c0_114] : memref<18x8x8xbf16, #tpu.memory_space<vmem>>, vector<1x8x8xbf16>
    %118 = vector.shape_cast %117 : vector<1x8x8xbf16> to vector<8x8xbf16>
    %cst_115 = arith.constant dense<0.000000e+00> : vector<256x8xf32>
    %119 = tpu.matmul %116, %118, %cst_115 {dimension_numbers = #tpu.dot_dimension_numbers<[1], [0], [0], [1], [0, 0, 1, 1], [], []>} : vector<256x8xbf16>, vector<8x8xbf16>, vector<256x8xf32> -> vector<256x8xf32>
    %120 = arith.addf %113, %119 : vector<256x8xf32>
    %c1_116 = arith.constant 1 : index
    %c9_117 = arith.constant 9 : index
    %c0_118 = arith.constant 0 : index
    %121 = vector.load %arg10[%c1_116, %c9_117, %c0_118] : memref<18x25x8xf32, #tpu.memory_space<vmem>>, vector<16x16x8xf32>
    %122 = vector.shape_cast %121 : vector<16x16x8xf32> to vector<256x8xf32>
    %123 = arith.truncf %122 : vector<256x8xf32> to vector<256x8xbf16>
    %c14 = arith.constant 14 : index
    %c0_119 = arith.constant 0 : index
    %c0_120 = arith.constant 0 : index
    %124 = vector.load %arg3[%c14, %c0_119, %c0_120] : memref<18x8x8xbf16, #tpu.memory_space<vmem>>, vector<1x8x8xbf16>
    %125 = vector.shape_cast %124 : vector<1x8x8xbf16> to vector<8x8xbf16>
    %cst_121 = arith.constant dense<0.000000e+00> : vector<256x8xf32>
    %126 = tpu.matmul %123, %125, %cst_121 {dimension_numbers = #tpu.dot_dimension_numbers<[1], [0], [0], [1], [0, 0, 1, 1], [], []>} : vector<256x8xbf16>, vector<8x8xbf16>, vector<256x8xf32> -> vector<256x8xf32>
    %127 = arith.addf %120, %126 : vector<256x8xf32>
    %c2_122 = arith.constant 2 : index
    %c7_123 = arith.constant 7 : index
    %c0_124 = arith.constant 0 : index
    %128 = vector.load %arg10[%c2_122, %c7_123, %c0_124] : memref<18x25x8xf32, #tpu.memory_space<vmem>>, vector<16x16x8xf32>
    %129 = vector.shape_cast %128 : vector<16x16x8xf32> to vector<256x8xf32>
    %130 = arith.truncf %129 : vector<256x8xf32> to vector<256x8xbf16>
    %c15 = arith.constant 15 : index
    %c0_125 = arith.constant 0 : index
    %c0_126 = arith.constant 0 : index
    %131 = vector.load %arg3[%c15, %c0_125, %c0_126] : memref<18x8x8xbf16, #tpu.memory_space<vmem>>, vector<1x8x8xbf16>
    %132 = vector.shape_cast %131 : vector<1x8x8xbf16> to vector<8x8xbf16>
    %cst_127 = arith.constant dense<0.000000e+00> : vector<256x8xf32>
    %133 = tpu.matmul %130, %132, %cst_127 {dimension_numbers = #tpu.dot_dimension_numbers<[1], [0], [0], [1], [0, 0, 1, 1], [], []>} : vector<256x8xbf16>, vector<8x8xbf16>, vector<256x8xf32> -> vector<256x8xf32>
    %134 = arith.addf %127, %133 : vector<256x8xf32>
    %c2_128 = arith.constant 2 : index
    %c8_129 = arith.constant 8 : index
    %c0_130 = arith.constant 0 : index
    %135 = vector.load %arg10[%c2_128, %c8_129, %c0_130] : memref<18x25x8xf32, #tpu.memory_space<vmem>>, vector<16x16x8xf32>
    %136 = vector.shape_cast %135 : vector<16x16x8xf32> to vector<256x8xf32>
    %137 = arith.truncf %136 : vector<256x8xf32> to vector<256x8xbf16>
    %c16 = arith.constant 16 : index
    %c0_131 = arith.constant 0 : index
    %c0_132 = arith.constant 0 : index
    %138 = vector.load %arg3[%c16, %c0_131, %c0_132] : memref<18x8x8xbf16, #tpu.memory_space<vmem>>, vector<1x8x8xbf16>
    %139 = vector.shape_cast %138 : vector<1x8x8xbf16> to vector<8x8xbf16>
    %cst_133 = arith.constant dense<0.000000e+00> : vector<256x8xf32>
    %140 = tpu.matmul %137, %139, %cst_133 {dimension_numbers = #tpu.dot_dimension_numbers<[1], [0], [0], [1], [0, 0, 1, 1], [], []>} : vector<256x8xbf16>, vector<8x8xbf16>, vector<256x8xf32> -> vector<256x8xf32>
    %141 = arith.addf %134, %140 : vector<256x8xf32>
    %c2_134 = arith.constant 2 : index
    %c9_135 = arith.constant 9 : index
    %c0_136 = arith.constant 0 : index
    %142 = vector.load %arg10[%c2_134, %c9_135, %c0_136] : memref<18x25x8xf32, #tpu.memory_space<vmem>>, vector<16x16x8xf32>
    %143 = vector.shape_cast %142 : vector<16x16x8xf32> to vector<256x8xf32>
    %144 = arith.truncf %143 : vector<256x8xf32> to vector<256x8xbf16>
    %c17_137 = arith.constant 17 : index
    %c0_138 = arith.constant 0 : index
    %c0_139 = arith.constant 0 : index
    %145 = vector.load %arg3[%c17_137, %c0_138, %c0_139] : memref<18x8x8xbf16, #tpu.memory_space<vmem>>, vector<1x8x8xbf16>
    %146 = vector.shape_cast %145 : vector<1x8x8xbf16> to vector<8x8xbf16>
    %cst_140 = arith.constant dense<0.000000e+00> : vector<256x8xf32>
    %147 = tpu.matmul %144, %146, %cst_140 {dimension_numbers = #tpu.dot_dimension_numbers<[1], [0], [0], [1], [0, 0, 1, 1], [], []>} : vector<256x8xbf16>, vector<8x8xbf16>, vector<256x8xf32> -> vector<256x8xf32>
    %148 = arith.addf %141, %147 : vector<256x8xf32>
    %c1_141 = arith.constant 1 : index
    %c0_142 = arith.constant 0 : index
    %c0_143 = arith.constant 0 : index
    %149 = vector.load %arg4[%c1_141, %c0_142, %c0_143] : memref<2x1x8xf32, #tpu.memory_space<vmem>>, vector<1x1x8xf32>
    %150 = vector.shape_cast %149 : vector<1x1x8xf32> to vector<1x8xf32>
    %151 = vector.broadcast %150 : vector<1x8xf32> to vector<256x8xf32>
    %152 = arith.mulf %148, %151 : vector<256x8xf32>
    %c1_144 = arith.constant 1 : index
    %c0_145 = arith.constant 0 : index
    %c0_146 = arith.constant 0 : index
    %153 = vector.load %arg5[%c1_144, %c0_145, %c0_146] : memref<2x1x8xf32, #tpu.memory_space<vmem>>, vector<1x1x8xf32>
    %154 = vector.shape_cast %153 : vector<1x1x8xf32> to vector<1x8xf32>
    %155 = vector.broadcast %154 : vector<1x8xf32> to vector<256x8xf32>
    %156 = arith.addf %152, %155 : vector<256x8xf32>
    %cst_147 = arith.constant 0.000000e+00 : f32
    %157 = vector.broadcast %cst_147 : f32 to vector<256x8xf32>
    %158 = arith.maximumf %156, %157 : vector<256x8xf32>
    %159 = vector.shape_cast %158 : vector<256x8xf32> to vector<16x16x8xf32>
    %c1_148 = arith.constant 1 : index
    %c8_149 = arith.constant 8 : index
    %c0_150 = arith.constant 0 : index
    %160 = vector.load %arg10[%c1_148, %c8_149, %c0_150] : memref<18x25x8xf32, #tpu.memory_space<vmem>>, vector<16x16x8xf32>
    tpu.vector_store %arg10[%c1_148, %c8_149, %c0_150], %159 {strides = array<i32>} : memref<18x25x8xf32, #tpu.memory_space<vmem>>, vector<16x16x8xf32>,
    %c0_151 = arith.constant 0 : index
    %c7_152 = arith.constant 7 : index
    %c0_153 = arith.constant 0 : index
    %161 = vector.load %arg10[%c0_151, %c7_152, %c0_153] : memref<18x25x8xf32, #tpu.memory_space<vmem>>, vector<16x16x8xf32>
    %162 = vector.shape_cast %161 : vector<16x16x8xf32> to vector<256x8xf32>
    %163 = arith.truncf %162 : vector<256x8xf32> to vector<256x8xbf16>
    %c0_154 = arith.constant 0 : index
    %c0_155 = arith.constant 0 : index
    %c0_156 = arith.constant 0 : index
    %164 = vector.load %arg6[%c0_154, %c0_155, %c0_156] : memref<9x4x8xbf16, #tpu.memory_space<vmem>>, vector<1x4x8xbf16>
    %165 = vector.shape_cast %164 : vector<1x4x8xbf16> to vector<4x8xbf16>
    %cst_157 = arith.constant dense<0.000000e+00> : vector<4x256xf32>
    %166 = tpu.matmul %165, %163, %cst_157 {dimension_numbers = #tpu.dot_dimension_numbers<[1], [1], [0], [0], [0, 0, 1, 0], [], []>} : vector<4x8xbf16>, vector<256x8xbf16>, vector<4x256xf32> -> vector<4x256xf32>
    %c0_158 = arith.constant 0 : index
    %c8_159 = arith.constant 8 : index
    %c0_160 = arith.constant 0 : index
    %167 = vector.load %arg10[%c0_158, %c8_159, %c0_160] : memref<18x25x8xf32, #tpu.memory_space<vmem>>, vector<16x16x8xf32>
    %168 = vector.shape_cast %167 : vector<16x16x8xf32> to vector<256x8xf32>
    %169 = arith.truncf %168 : vector<256x8xf32> to vector<256x8xbf16>
    %c1_161 = arith.constant 1 : index
    %c0_162 = arith.constant 0 : index
    %c0_163 = arith.constant 0 : index
    %170 = vector.load %arg6[%c1_161, %c0_162, %c0_163] : memref<9x4x8xbf16, #tpu.memory_space<vmem>>, vector<1x4x8xbf16>
    %171 = vector.shape_cast %170 : vector<1x4x8xbf16> to vector<4x8xbf16>
    %cst_164 = arith.constant dense<0.000000e+00> : vector<4x256xf32>
    %172 = tpu.matmul %171, %169, %cst_164 {dimension_numbers = #tpu.dot_dimension_numbers<[1], [1], [0], [0], [0, 0, 1, 0], [], []>} : vector<4x8xbf16>, vector<256x8xbf16>, vector<4x256xf32> -> vector<4x256xf32>
    %173 = arith.addf %166, %172 : vector<4x256xf32>
    %c0_165 = arith.constant 0 : index
    %c9_166 = arith.constant 9 : index
    %c0_167 = arith.constant 0 : index
    %174 = vector.load %arg10[%c0_165, %c9_166, %c0_167] : memref<18x25x8xf32, #tpu.memory_space<vmem>>, vector<16x16x8xf32>
    %175 = vector.shape_cast %174 : vector<16x16x8xf32> to vector<256x8xf32>
    %176 = arith.truncf %175 : vector<256x8xf32> to vector<256x8xbf16>
    %c2_168 = arith.constant 2 : index
    %c0_169 = arith.constant 0 : index
    %c0_170 = arith.constant 0 : index
    %177 = vector.load %arg6[%c2_168, %c0_169, %c0_170] : memref<9x4x8xbf16, #tpu.memory_space<vmem>>, vector<1x4x8xbf16>
    %178 = vector.shape_cast %177 : vector<1x4x8xbf16> to vector<4x8xbf16>
    %cst_171 = arith.constant dense<0.000000e+00> : vector<4x256xf32>
    %179 = tpu.matmul %178, %176, %cst_171 {dimension_numbers = #tpu.dot_dimension_numbers<[1], [1], [0], [0], [0, 0, 1, 0], [], []>} : vector<4x8xbf16>, vector<256x8xbf16>, vector<4x256xf32> -> vector<4x256xf32>
    %180 = arith.addf %173, %179 : vector<4x256xf32>
    %c1_172 = arith.constant 1 : index
    %c7_173 = arith.constant 7 : index
    %c0_174 = arith.constant 0 : index
    %181 = vector.load %arg10[%c1_172, %c7_173, %c0_174] : memref<18x25x8xf32, #tpu.memory_space<vmem>>, vector<16x16x8xf32>
    %182 = vector.shape_cast %181 : vector<16x16x8xf32> to vector<256x8xf32>
    %183 = arith.truncf %182 : vector<256x8xf32> to vector<256x8xbf16>
    %c3_175 = arith.constant 3 : index
    %c0_176 = arith.constant 0 : index
    %c0_177 = arith.constant 0 : index
    %184 = vector.load %arg6[%c3_175, %c0_176, %c0_177] : memref<9x4x8xbf16, #tpu.memory_space<vmem>>, vector<1x4x8xbf16>
    %185 = vector.shape_cast %184 : vector<1x4x8xbf16> to vector<4x8xbf16>
    %cst_178 = arith.constant dense<0.000000e+00> : vector<4x256xf32>
    %186 = tpu.matmul %185, %183, %cst_178 {dimension_numbers = #tpu.dot_dimension_numbers<[1], [1], [0], [0], [0, 0, 1, 0], [], []>} : vector<4x8xbf16>, vector<256x8xbf16>, vector<4x256xf32> -> vector<4x256xf32>
    %187 = arith.addf %180, %186 : vector<4x256xf32>
    %c1_179 = arith.constant 1 : index
    %c8_180 = arith.constant 8 : index
    %c0_181 = arith.constant 0 : index
    %188 = vector.load %arg10[%c1_179, %c8_180, %c0_181] : memref<18x25x8xf32, #tpu.memory_space<vmem>>, vector<16x16x8xf32>
    %189 = vector.shape_cast %188 : vector<16x16x8xf32> to vector<256x8xf32>
    %190 = arith.truncf %189 : vector<256x8xf32> to vector<256x8xbf16>
    %c4_182 = arith.constant 4 : index
    %c0_183 = arith.constant 0 : index
    %c0_184 = arith.constant 0 : index
    %191 = vector.load %arg6[%c4_182, %c0_183, %c0_184] : memref<9x4x8xbf16, #tpu.memory_space<vmem>>, vector<1x4x8xbf16>
    %192 = vector.shape_cast %191 : vector<1x4x8xbf16> to vector<4x8xbf16>
    %cst_185 = arith.constant dense<0.000000e+00> : vector<4x256xf32>
    %193 = tpu.matmul %192, %190, %cst_185 {dimension_numbers = #tpu.dot_dimension_numbers<[1], [1], [0], [0], [0, 0, 1, 0], [], []>} : vector<4x8xbf16>, vector<256x8xbf16>, vector<4x256xf32> -> vector<4x256xf32>
    %194 = arith.addf %187, %193 : vector<4x256xf32>
    %c1_186 = arith.constant 1 : index
    %c9_187 = arith.constant 9 : index
    %c0_188 = arith.constant 0 : index
    %195 = vector.load %arg10[%c1_186, %c9_187, %c0_188] : memref<18x25x8xf32, #tpu.memory_space<vmem>>, vector<16x16x8xf32>
    %196 = vector.shape_cast %195 : vector<16x16x8xf32> to vector<256x8xf32>
    %197 = arith.truncf %196 : vector<256x8xf32> to vector<256x8xbf16>
    %c5_189 = arith.constant 5 : index
    %c0_190 = arith.constant 0 : index
    %c0_191 = arith.constant 0 : index
    %198 = vector.load %arg6[%c5_189, %c0_190, %c0_191] : memref<9x4x8xbf16, #tpu.memory_space<vmem>>, vector<1x4x8xbf16>
    %199 = vector.shape_cast %198 : vector<1x4x8xbf16> to vector<4x8xbf16>
    %cst_192 = arith.constant dense<0.000000e+00> : vector<4x256xf32>
    %200 = tpu.matmul %199, %197, %cst_192 {dimension_numbers = #tpu.dot_dimension_numbers<[1], [1], [0], [0], [0, 0, 1, 0], [], []>} : vector<4x8xbf16>, vector<256x8xbf16>, vector<4x256xf32> -> vector<4x256xf32>
    %201 = arith.addf %194, %200 : vector<4x256xf32>
    %c2_193 = arith.constant 2 : index
    %c7_194 = arith.constant 7 : index
    %c0_195 = arith.constant 0 : index
    %202 = vector.load %arg10[%c2_193, %c7_194, %c0_195] : memref<18x25x8xf32, #tpu.memory_space<vmem>>, vector<16x16x8xf32>
    %203 = vector.shape_cast %202 : vector<16x16x8xf32> to vector<256x8xf32>
    %204 = arith.truncf %203 : vector<256x8xf32> to vector<256x8xbf16>
    %c6_196 = arith.constant 6 : index
    %c0_197 = arith.constant 0 : index
    %c0_198 = arith.constant 0 : index
    %205 = vector.load %arg6[%c6_196, %c0_197, %c0_198] : memref<9x4x8xbf16, #tpu.memory_space<vmem>>, vector<1x4x8xbf16>
    %206 = vector.shape_cast %205 : vector<1x4x8xbf16> to vector<4x8xbf16>
    %cst_199 = arith.constant dense<0.000000e+00> : vector<4x256xf32>
    %207 = tpu.matmul %206, %204, %cst_199 {dimension_numbers = #tpu.dot_dimension_numbers<[1], [1], [0], [0], [0, 0, 1, 0], [], []>} : vector<4x8xbf16>, vector<256x8xbf16>, vector<4x256xf32> -> vector<4x256xf32>
    %208 = arith.addf %201, %207 : vector<4x256xf32>
    %c2_200 = arith.constant 2 : index
    %c8_201 = arith.constant 8 : index
    %c0_202 = arith.constant 0 : index
    %209 = vector.load %arg10[%c2_200, %c8_201, %c0_202] : memref<18x25x8xf32, #tpu.memory_space<vmem>>, vector<16x16x8xf32>
    %210 = vector.shape_cast %209 : vector<16x16x8xf32> to vector<256x8xf32>
    %211 = arith.truncf %210 : vector<256x8xf32> to vector<256x8xbf16>
    %c7_203 = arith.constant 7 : index
    %c0_204 = arith.constant 0 : index
    %c0_205 = arith.constant 0 : index
    %212 = vector.load %arg6[%c7_203, %c0_204, %c0_205] : memref<9x4x8xbf16, #tpu.memory_space<vmem>>, vector<1x4x8xbf16>
    %213 = vector.shape_cast %212 : vector<1x4x8xbf16> to vector<4x8xbf16>
    %cst_206 = arith.constant dense<0.000000e+00> : vector<4x256xf32>
    %214 = tpu.matmul %213, %211, %cst_206 {dimension_numbers = #tpu.dot_dimension_numbers<[1], [1], [0], [0], [0, 0, 1, 0], [], []>} : vector<4x8xbf16>, vector<256x8xbf16>, vector<4x256xf32> -> vector<4x256xf32>
    %215 = arith.addf %208, %214 : vector<4x256xf32>
    %c2_207 = arith.constant 2 : index
    %c9_208 = arith.constant 9 : index
    %c0_209 = arith.constant 0 : index
    %216 = vector.load %arg10[%c2_207, %c9_208, %c0_209] : memref<18x25x8xf32, #tpu.memory_space<vmem>>, vector<16x16x8xf32>
    %217 = vector.shape_cast %216 : vector<16x16x8xf32> to vector<256x8xf32>
    %218 = arith.truncf %217 : vector<256x8xf32> to vector<256x8xbf16>
    %c8_210 = arith.constant 8 : index
    %c0_211 = arith.constant 0 : index
    %c0_212 = arith.constant 0 : index
    %219 = vector.load %arg6[%c8_210, %c0_211, %c0_212] : memref<9x4x8xbf16, #tpu.memory_space<vmem>>, vector<1x4x8xbf16>
    %220 = vector.shape_cast %219 : vector<1x4x8xbf16> to vector<4x8xbf16>
    %cst_213 = arith.constant dense<0.000000e+00> : vector<4x256xf32>
    %221 = tpu.matmul %220, %218, %cst_213 {dimension_numbers = #tpu.dot_dimension_numbers<[1], [1], [0], [0], [0, 0, 1, 0], [], []>} : vector<4x8xbf16>, vector<256x8xbf16>, vector<4x256xf32> -> vector<4x256xf32>
    %222 = arith.addf %215, %221 : vector<4x256xf32>
    %c0_214 = arith.constant 0 : index
    %c0_215 = arith.constant 0 : index
    %223 = vector.load %arg7[%c0_214, %c0_215] : memref<4x1xf32, #tpu.memory_space<vmem>>, vector<4x1xf32>
    %224 = vector.broadcast %223 : vector<4x1xf32> to vector<4x256xf32>
    %225 = arith.mulf %222, %224 : vector<4x256xf32>
    %c0_216 = arith.constant 0 : index
    %c0_217 = arith.constant 0 : index
    %226 = vector.load %arg8[%c0_216, %c0_217] : memref<4x1xf32, #tpu.memory_space<vmem>>, vector<4x1xf32>
    %227 = vector.broadcast %226 : vector<4x1xf32> to vector<4x256xf32>
    %228 = arith.addf %225, %227 : vector<4x256xf32>
    %cst_218 = arith.constant 0.000000e+00 : f32
    %229 = vector.broadcast %cst_218 : f32 to vector<4x256xf32>
    %230 = arith.maximumf %228, %229 : vector<4x256xf32>
    %c0_219 = arith.constant 0 : index
    %c0_220 = arith.constant 0 : index
    %c0_221 = arith.constant 0 : index
    %231 = vector.load %arg9[%c0_219, %c0_220, %c0_221] : memref<1x4x256xf32, #tpu.memory_space<vmem>>, vector<1x4x256xf32>
    %232 = vector.shape_cast %231 : vector<1x4x256xf32> to vector<4x256xf32>
    %233 = vector.shape_cast %230 : vector<4x256xf32> to vector<1x4x256xf32>
    tpu.vector_store %arg9[%c0_219, %c0_220, %c0_221], %233 {strides = array<i32>} : memref<1x4x256xf32, #tpu.memory_space<vmem>>, vector<1x4x256xf32>,
    return
  }
  func.func @transform_0(%arg0: i32) -> (i32, i32, i32, i32) {
    %c0_i32 = arith.constant 0 : i32
    %c0_i32_0 = arith.constant 0 : i32
    %c0_i32_1 = arith.constant 0 : i32
    %c0_i32_2 = arith.constant 0 : i32
    return %arg0, %c0_i32, %c0_i32_0, %c0_i32_1 : i32, i32, i32, i32
  }
  func.func @transform_1(%arg0: i32) -> (i32, i32, i32, i32) {
    %c0_i32 = arith.constant 0 : i32
    %c0_i32_0 = arith.constant 0 : i32
    %c0_i32_1 = arith.constant 0 : i32
    %c0_i32_2 = arith.constant 0 : i32
    return %arg0, %c0_i32, %c0_i32_0, %c0_i32_1 : i32, i32, i32, i32
  }
  func.func @transform_2(%arg0: i32) -> (i32, i32, i32) {
    %c0_i32 = arith.constant 0 : i32
    %c0_i32_0 = arith.constant 0 : i32
    %c0_i32_1 = arith.constant 0 : i32
    %c0_i32_2 = arith.constant 0 : i32
    return %c0_i32, %c0_i32_0, %c0_i32_1 : i32, i32, i32
  }
  func.func @transform_3(%arg0: i32) -> (i32, i32, i32) {
    %c0_i32 = arith.constant 0 : i32
    %c0_i32_0 = arith.constant 0 : i32
    %c0_i32_1 = arith.constant 0 : i32
    %c0_i32_2 = arith.constant 0 : i32
    return %c0_i32, %c0_i32_0, %c0_i32_1 : i32, i32, i32
  }
  func.func @transform_4(%arg0: i32) -> (i32, i32, i32) {
    %c0_i32 = arith.constant 0 : i32
    %c0_i32_0 = arith.constant 0 : i32
    %c0_i32_1 = arith.constant 0 : i32
    %c0_i32_2 = arith.constant 0 : i32
    return %c0_i32, %c0_i32_0, %c0_i32_1 : i32, i32, i32
  }
  func.func @transform_5(%arg0: i32) -> (i32, i32, i32) {
    %c0_i32 = arith.constant 0 : i32
    %c0_i32_0 = arith.constant 0 : i32
    %c0_i32_1 = arith.constant 0 : i32
    %c0_i32_2 = arith.constant 0 : i32
    return %c0_i32, %c0_i32_0, %c0_i32_1 : i32, i32, i32
  }
  func.func @transform_6(%arg0: i32) -> (i32, i32) {
    %c0_i32 = arith.constant 0 : i32
    %c0_i32_0 = arith.constant 0 : i32
    %c0_i32_1 = arith.constant 0 : i32
    return %c0_i32, %c0_i32_0 : i32, i32
  }
  func.func @transform_7(%arg0: i32) -> (i32, i32) {
    %c0_i32 = arith.constant 0 : i32
    %c0_i32_0 = arith.constant 0 : i32
    %c0_i32_1 = arith.constant 0 : i32
    return %c0_i32, %c0_i32_0 : i32, i32
  }
  func.func @transform_8(%arg0: i32) -> (i32, i32, i32) {
    %c0_i32 = arith.constant 0 : i32
    %c0_i32_0 = arith.constant 0 : i32
    %c0_i32_1 = arith.constant 0 : i32
    return %arg0, %c0_i32, %c0_i32_0 : i32, i32, i32
  }
}

</mosaic_0001>

<bundles_post_ra>
// kernel: upsample_block_forward.1
= control target key start
LH: loop header
LB: loop body
LE: loop exit
PB: predicated region body
PF: predicated region fallthrough
CT: control target
= control target key end

     0   :  { %s6733_s27 = smov 0   ;;  %s9052_s0 = inlined_call_operand.vmem [shape: bf16[2,16,16,4], index: 0, kind: input, shape index: {}]   ;;  %s9053_s1 = inlined_call_operand.vmem [shape: bf16[2,16,16,4], index: 1, kind: input, shape index: {}]   ;;  %s9054_s2 = inlined_call_operand.vmem [shape: bf16[18,8,8], index: 2, kind: input, shape index: {}]   ;;  %s9055_s3 = inlined_call_operand.vmem [shape: f32[2,1,8], index: 3, kind: input, shape index: {}]   ;;  %s9056_s4 = inlined_call_operand.vmem [shape: f32[2,1,8], index: 4, kind: input, shape index: {}]   ;;  %s9057_s5 = inlined_call_operand.vmem [shape: bf16[9,4,8], index: 5, kind: input, shape index: {}]   ;;  %s9058_s6 = inlined_call_operand.vmem [shape: f32[4,1], index: 6, kind: input, shape index: {}]   ;;  %s9059_s7 = inlined_call_operand.vmem [shape: f32[4,1], index: 7, kind: input, shape index: {}]   ;;  %s9060_s8 = inlined_call_operand.vmem [shape: f32[2,4,256], index: 8, kind: output, shape index: {}]  }
   0x1 LB: > { %s6146_s28 = sadd.s32 4294967295, %s6683_s27   ;;  %p6150_p0 = scmp.ge.s32.totalorder %s6683_s27, 1  ;;  %s6683_s27 = sphi %s6733_s27, %s18_s27  }
   0x2   : > { %p272_p1 = scmp.lt.s32.totalorder %s6683_s27, 3 }
   0x4   : > { %p273_p2 = pnand %p6150_p0, %p272_p1 }
   0x6   : > { %276 = sbr.rel (%p273_p2) target bundleno = 2171 (0x87b), region = 52 }
   0xb   : > { %p311_p3 = scmp.lt.s32.totalorder %s6146_s28, 1  ;;  %s6685_s11 = smov 4   ;;  %vm903_vm0 = vcmask 1043456   ;;  %vm681_vm1 = vcmask 64512   ;;  %v6686_v3 = vmov 0.0   ;;  %vm717_vm2 = vcmask 57344  }
   0xc   : > { %715 = vst.msk [vmem:[#allocation2 + $0x8] sm:$0xff] %vm681_vm1, %v6686_v3  ;;  %v6285_v4 = vld [vmem:[%s9054_s2 + $0x4] sm:$0xf]  ;;  %v804_v5 = vld [vmem:[%s9054_s2] sm:$0xf]  ;;  %vm583_vm3 = vcmask 31744  }
   0xd   : > { %s9163_s28 = smov (!%p311_p3, %s6146_s28), 1  ;;  %716 = vst.msk [vmem:[#allocation2 + $0x10] sm:$0xff] %vm681_vm1, %v6686_v3  ;;  %v905_v6 = vsel %vm903_vm0, %v6285_v4, 0  ;;  %v1045_v7 = vsel %vm903_vm0, %v804_v5, 0 }
   0xe   : > { %s6620_s29 = sshll.u32 %s9163_s28, 7  ;;  %714 = vst.msk [vmem:[#allocation2] sm:$0xff] %vm681_vm1, %v6686_v3  ;;  %914 = vmatpush.bf16.msra.mxu0 %v905_v6  ;;  %1054 = vmatpush.bf16.msra.mxu1 %v1045_v7  ;;  %s6622_s25 = sshll.u32 %s9163_s28, 3 }
   0xf   : > { %s6749_s10 = scalar_lea.vmem %s9053_s1, %s6620_s29  ;;  %720 = vst.msk [vmem:[#allocation2 + $0x220] sm:$0xff] %vm681_vm1, %v6686_v3  ;;  %6655 = vmatpush.bf16.msra.mxu2 %v905_v6  ;;  %6656 = vmatpush.bf16.msra.mxu3 %v1045_v7  ;;  %s6802_s18 = scalar_lea.vmem %s9052_s0, %s6620_s29 }
  0x10   : > { %v6641_v0 = vld [vmem:[%s6749_s10 + $0x10] sm:$0xff]  ;;  %v6639_v1 = vld [vmem:[%s6749_s10] sm:$0xff]  ;;  %v6642_v8 = vld [vmem:[%s6749_s10 + $0x18] sm:$0xff]  ;;  %721 = vst.msk [vmem:[#allocation2 + $0x228] sm:$0xff] %vm681_vm1, %v6686_v3  ;;  %s325_s30 = scalar_lea.vmem %s9060_s8, %s6622_s25 }
  0x11   : > { %v6643_v2 = vld [vmem:[%s6749_s10 + $0x20] sm:$0xff]  ;;  %555 = vrot.lane.b32.xlu1 %v6641_v0, %s6685_s11  ;;  %551 = vrot.lane.b32.xlu0 %v6639_v1, %s6685_s11  ;;  %v6640_v9 = vld [vmem:[%s6749_s10 + $0x8] sm:$0xff]  ;;  %722 = vst.msk [vmem:[#allocation2 + $0x230] sm:$0xff] %vm681_vm1, %v6686_v3 }
  0x12   : > { %559 = vrot.lane.b32.xlu2 %v6643_v2, %s6685_s11  ;;  %v6644_v10 = vld [vmem:[%s6749_s10 + $0x28] sm:$0xff]  ;;  %v6646_v17 = vld [vmem:[%s6749_s10 + $0x38] sm:$0xff]  ;;  %v6645_v18 = vld [vmem:[%s6749_s10 + $0x30] sm:$0xff]  ;;  %724 = vst.msk [vmem:[#allocation2 + $0x27] sm:$0x1] %vm717_vm2, %v6686_v3 }
  0x13   : > { %v805_v11 = vld [vmem:[#allocation2 + $0x8] sm:$0xff]  ;;  %v6647_v19 = vld [vmem:[%s6749_s10 + $0x40] sm:$0xff]  ;;  %v6649_v20 = vld [vmem:[%s6749_s10 + $0x50] sm:$0xff]  ;;  %718 = vst.msk [vmem:[#allocation2 + $0x18] sm:$0x1] %vm717_vm2, %v6686_v3 }
  0x14   : > { %v806_v12 = vld [vmem:[#allocation2 + $0x10] sm:$0xff]  ;;  %v6652_v21 = vld [vmem:[%s6749_s10 + $0x68] sm:$0xff]  ;;  %v6627_v23 = vld [vmem:[%s6802_s18 + $0x20] sm:$0xff]  ;;  %723 = vst.msk [vmem:[#allocation2 + $0x238] sm:$0x1] %vm717_vm2, %v6686_v3 }
  0x15   : > { %v757_v13 = vld [vmem:[#allocation2 + $0xf] sm:$0xff]  ;;  %v837_v14 = vpack.c.bf16 %v806_v12, %v805_v11  ;;  %v756_v15 = vld [vmem:[#allocation2 + $0x7] sm:$0xff]  ;;  %725 = vst.msk [vmem:[#allocation2 + $0x47] sm:$0x1] %vm717_vm2, %v6686_v3  ;;  %v6626_v49 = vld [vmem:[%s6802_s18 + $0x18] sm:$0xff] }
  0x16   : > { %v788_v16 = vpack.c.bf16 %v757_v13, %v756_v15  ;;  %v6653_v22 = vld [vmem:[%s6749_s10 + $0x70] sm:$0xff]  ;;  %726 = vst.msk [vmem:[#allocation2 + $0x67] sm:$0x1] %vm717_vm2, %v6686_v3  ;;  %v6628_v28 = vld [vmem:[%s6802_s18 + $0x28] sm:$0xff]  ;;  %v6631_v33 = vld [vmem:[%s6802_s18 + $0x40] sm:$0xff] }
  0x17   : > { %6286 = vmatmul.msk.bf16.vlgmr.msra.gmra.mxu0 %vm681_vm1, %v837_v14  ;;  %727 = vst.msk [vmem:[#allocation2 + $0x87] sm:$0x1] %vm717_vm2, %v6686_v3  ;;  %v6625_v38 = vld [vmem:[%s6802_s18 + $0x10] sm:$0xff]  ;;  %v6623_v39 = vld [vmem:[%s6802_s18] sm:$0xff]  ;;  %v6648_v40 = vld [vmem:[%s6749_s10 + $0x48] sm:$0xff] }
  0x18   : > { %6302 = vmatmul.msk.bf16.vlgmr.msra.gmra.mxu1 %vm681_vm1, %v788_v16  ;;  %728 = vst.msk [vmem:[#allocation2 + $0xa7] sm:$0x1] %vm717_vm2, %v6686_v3  ;;  %v6636_v54 = vld [vmem:[%s6802_s18 + $0x68] sm:$0xff]  ;;  %v6630_v58 = vld [vmem:[%s6802_s18 + $0x38] sm:$0xff]  ;;  %v6633_v13 = vld [vmem:[%s6802_s18 + $0x50] sm:$0xff] }
  0x19   : > { %557 = vrot.lane.b32.xlu1 %v6642_v8, %s6685_s11  ;;  %553 = vrot.lane.b32.xlu0 %v6640_v9, %s6685_s11  ;;  %729 = vst.msk [vmem:[#allocation2 + $0xc7] sm:$0x1] %vm717_vm2, %v6686_v3  ;;  %v6624_v62 = vld [vmem:[%s6802_s18 + $0x8] sm:$0xff]  ;;  %v6650_v16 = vld [vmem:[%s6749_s10 + $0x58] sm:$0xff] }
  0x1a   : > { %561 = vrot.lane.b32.xlu2 %v6644_v10, %s6685_s11  ;;  %730 = vst.msk [vmem:[#allocation2 + $0xe7] sm:$0x1] %vm717_vm2, %v6686_v3  ;;  %v6318_v10 = vld [vmem:[%s9054_s2 + $0x8] sm:$0xf]  ;;  %v6335_v11 = vld [vmem:[%s9054_s2 + $0xc] sm:$0xf] }
  0x1b   : > { %731 = vst.msk [vmem:[#allocation2 + $0x107] sm:$0x1] %vm717_vm2, %v6686_v3  ;;  %v1235_v14 = vsel %vm903_vm0, %v6318_v10, 0  ;;  %v1457_v15 = vsel %vm903_vm0, %v6335_v11, 0 }
  0x1c   : > { %732 = vst.msk [vmem:[#allocation2 + $0x127] sm:$0x1] %vm717_vm2, %v6686_v3  ;;  %1244 = vmatpush.bf16.msrb.mxu2 %v1235_v14  ;;  %1466 = vmatpush.bf16.msrb.mxu3 %v1457_v15 }
  0x1d   : > { %733 = vst.msk [vmem:[#allocation2 + $0x147] sm:$0x1] %vm717_vm2, %v6686_v3 }
  0x1e   : > { %734 = vst.msk [vmem:[#allocation2 + $0x167] sm:$0x1] %vm717_vm2, %v6686_v3 }
  0x1f   : > { %735 = vst.msk [vmem:[#allocation2 + $0x187] sm:$0x1] %vm717_vm2, %v6686_v3 }
  0x20   : > { %736 = vst.msk [vmem:[#allocation2 + $0x1a7] sm:$0x1] %vm717_vm2, %v6686_v3 }
  0x21   : > { %565 = vrot.lane.b32.xlu1 %v6646_v17, %s6685_s11  ;;  %563 = vrot.lane.b32.xlu0 %v6645_v18, %s6685_s11  ;;  %737 = vst.msk [vmem:[#allocation2 + $0x1c7] sm:$0x1] %vm717_vm2, %v6686_v3 }
  0x22   : > { %567 = vrot.lane.b32.xlu2 %v6647_v19, %s6685_s11  ;;  %738 = vst.msk [vmem:[#allocation2 + $0x1e7] sm:$0x1] %vm717_vm2, %v6686_v3 }
  0x23   : > { %739 = vst.msk [vmem:[#allocation2 + $0x207] sm:$0x1] %vm717_vm2, %v6686_v3 }
  0x24   : > { %740 = vst.msk [vmem:[#allocation2 + $0x38] sm:$0x1] %vm717_vm2, %v6686_v3 }
  0x25   : > { %741 = vst.msk [vmem:[#allocation2 + $0x58] sm:$0x1] %vm717_vm2, %v6686_v3 }
  0x26   : > { %742 = vst.msk [vmem:[#allocation2 + $0x78] sm:$0x1] %vm717_vm2, %v6686_v3 }
  0x27   : > { %743 = vst.msk [vmem:[#allocation2 + $0x98] sm:$0x1] %vm717_vm2, %v6686_v3 }
  0x28   : > { %744 = vst.msk [vmem:[#allocation2 + $0xb8] sm:$0x1] %vm717_vm2, %v6686_v3 }
  0x29   : > { %571 = vrot.lane.b32.xlu1 %v6649_v20, %s6685_s11  ;;  %569 = vrot.lane.b32.xlu0 %v6648_v40, %s6685_s11  ;;  %745 = vst.msk [vmem:[#allocation2 + $0xd8] sm:$0x1] %vm717_vm2, %v6686_v3 }
  0x2a   : > { %577 = vrot.lane.b32.xlu2 %v6652_v21, %s6685_s11  ;;  %746 = vst.msk [vmem:[#allocation2 + $0xf8] sm:$0x1] %vm717_vm2, %v6686_v3 }
  0x2b   : > { %747 = vst.msk [vmem:[#allocation2 + $0x118] sm:$0x1] %vm717_vm2, %v6686_v3 }
  0x2c   : > { %748 = vst.msk [vmem:[#allocation2 + $0x138] sm:$0x1] %vm717_vm2, %v6686_v3 }
  0x2d   : > { %749 = vst.msk [vmem:[#allocation2 + $0x158] sm:$0x1] %vm717_vm2, %v6686_v3 }
  0x2e   : > { %750 = vst.msk [vmem:[#allocation2 + $0x178] sm:$0x1] %vm717_vm2, %v6686_v3 }
  0x2f   : > { %751 = vst.msk [vmem:[#allocation2 + $0x198] sm:$0x1] %vm717_vm2, %v6686_v3 }
  0x30   : > { %752 = vst.msk [vmem:[#allocation2 + $0x1b8] sm:$0x1] %vm717_vm2, %v6686_v3 }
  0x31   : > { %579 = vrot.lane.b32.xlu1 %v6653_v22, %s6685_s11  ;;  %753 = vst.msk [vmem:[#allocation2 + $0x1d8] sm:$0x1] %vm717_vm2, %v6686_v3  ;;  %573 = vrot.lane.b32.xlu0 %v6650_v16, %s6685_s11 }
  0x32   : > { %754 = vst.msk [vmem:[#allocation2 + $0x1f8] sm:$0x1] %vm717_vm2, %v6686_v3 }
  0x33   : > { %755 = vst.msk [vmem:[#allocation2 + $0x218] sm:$0x1] %vm717_vm2, %v6686_v3 }
  0x6c   : > { %v560_v24 = vpop.permute.xlu2 %559 }
  0x6d   : > { %v602_v25 = vsel %vm583_vm3, %v6627_v23, %v560_v24 }
  0x6e   : > { %v656_v26 = vunpack.c.l.bf16 %v602_v25  ;;  %v657_v27 = vunpack.c.h.bf16 %v602_v25  ;;  %v6637_v25 = vld [vmem:[%s6802_s18 + $0x70] sm:$0xff] }
  0x70   : > { %690 = vst.msk [vmem:[#allocation2 + $0xa8] sm:$0xff] %vm681_vm1, %v656_v26 }
  0x71   : > { %691 = vst.msk [vmem:[#allocation2 + $0xb0] sm:$0xff] %vm681_vm1, %v657_v27 }
  0x74   : > { %v562_v29 = vpop.permute.xlu2 %561 }
  0x75   : > { %v606_v30 = vsel %vm583_vm3, %v6628_v28, %v562_v29 }
  0x76   : > { %v658_v31 = vunpack.c.l.bf16 %v606_v30  ;;  %v659_v32 = vunpack.c.h.bf16 %v606_v30 }
  0x78   : > { %692 = vst.msk [vmem:[#allocation2 + $0xc8] sm:$0xff] %vm681_vm1, %v658_v31 }
  0x79   : > { %693 = vst.msk [vmem:[#allocation2 + $0xd0] sm:$0xff] %vm681_vm1, %v659_v32 }
  0x7c   : > { %v568_v34 = vpop.permute.xlu2 %567 }
  0x7d   : > { %v618_v35 = vsel %vm583_vm3, %v6631_v33, %v568_v34 }
  0x7e   : > { %v664_v36 = vunpack.c.l.bf16 %v618_v35  ;;  %v665_v37 = vunpack.c.h.bf16 %v618_v35 }
  0x80   : > { %698 = vst.msk [vmem:[#allocation2 + $0x128] sm:$0xff] %vm681_vm1, %v664_v36 }
  0x81   : > { %699 = vst.msk [vmem:[#allocation2 + $0x130] sm:$0xff] %vm681_vm1, %v665_v37 }
  0x83   : > { %v556_v41 = vpop.permute.xlu1 %555  ;;  %v552_v42 = vpop.permute.xlu0 %551 }
  0x84   : > { %v594_v43 = vsel %vm583_vm3, %v6625_v38, %v556_v41  ;;  %v586_v44 = vsel %vm583_vm3, %v6623_v39, %v552_v42  ;;  %v578_v55 = vpop.permute.xlu2 %577 }
  0x85   : > { %v652_v45 = vunpack.c.l.bf16 %v594_v43  ;;  %v653_v46 = vunpack.c.h.bf16 %v594_v43  ;;  %v648_v47 = vunpack.c.l.bf16 %v586_v44  ;;  %v649_v48 = vunpack.c.h.bf16 %v586_v44 }
  0x86   : > { %v638_v61 = vsel %vm583_vm3, %v6636_v54, %v578_v55 }
  0x87   : > { %686 = vst.msk [vmem:[#allocation2 + $0x68] sm:$0xff] %vm681_vm1, %v652_v45  ;;  %v674_v4 = vunpack.c.l.bf16 %v638_v61  ;;  %v675_v6 = vunpack.c.h.bf16 %v638_v61  ;;  %v6651_v61 = vld [vmem:[%s6749_s10 + $0x60] sm:$0xff] }
  0x88   : > { %687 = vst.msk [vmem:[#allocation2 + $0x70] sm:$0xff] %vm681_vm1, %v653_v46  ;;  %575 = vrot.lane.b32.xlu2 %v6651_v61, %s6685_s11 }
  0x89   : > { %682 = vst.msk [vmem:[#allocation2 + $0x28] sm:$0xff] %vm681_vm1, %v648_v47 }
  0x8a   : > { %683 = vst.msk [vmem:[#allocation2 + $0x30] sm:$0xff] %vm681_vm1, %v649_v48 }
  0x8b   : > { %v558_v50 = vpop.permute.xlu1 %557  ;;  %v554_v1 = vpop.permute.xlu0 %553  ;;  %708 = vst.msk [vmem:[#allocation2 + $0x1c8] sm:$0xff] %vm681_vm1, %v674_v4 }
  0x8c   : > { %v598_v51 = vsel %vm583_vm3, %v6626_v49, %v558_v50  ;;  %v590_v7 = vsel %vm583_vm3, %v6624_v62, %v554_v1  ;;  %709 = vst.msk [vmem:[#allocation2 + $0x1d0] sm:$0xff] %vm681_vm1, %v675_v6  ;;  %v1136_v50 = vld [vmem:[#allocation2 + $0x9] sm:$0xff] }
  0x8d   : > { %v654_v52 = vunpack.c.l.bf16 %v598_v51  ;;  %v655_v53 = vunpack.c.h.bf16 %v598_v51  ;;  %v650_v12 = vunpack.c.l.bf16 %v590_v7  ;;  %v651_v3 = vunpack.c.h.bf16 %v590_v7  ;;  %v1137_v51 = vld [vmem:[#allocation2 + $0x11] sm:$0xff]  ;;  %v766_v7 = vld [vmem:[#allocation2 + $0xa7] sm:$0xff] }
  0x8e   : > { %v811_v40 = vld [vmem:[#allocation2 + $0x68] sm:$0xff]  ;;  %v816_v6 = vld [vmem:[#allocation2 + $0xb0] sm:$0xff] }
  0x8f   : > { %688 = vst.msk [vmem:[#allocation2 + $0x88] sm:$0xff] %vm681_vm1, %v654_v52  ;;  %v812_v43 = vld [vmem:[#allocation2 + $0x70] sm:$0xff]  ;;  %v762_v45 = vld [vmem:[#allocation2 + $0x67] sm:$0xff] }
  0x90   : > { %689 = vst.msk [vmem:[#allocation2 + $0x90] sm:$0xff] %vm681_vm1, %v655_v53  ;;  %v807_v56 = vld [vmem:[#allocation2 + $0x28] sm:$0xff]  ;;  %v6948_v48 = vpack.c.bf16 %v812_v43, %v811_v40  ;;  %v1168_v53 = vpack.c.bf16 %v1137_v51, %v1136_v50 }
  0x91   : > { %v758_v57 = vld [vmem:[#allocation2 + $0x27] sm:$0xff]  ;;  %v808_v59 = vld [vmem:[#allocation2 + $0x30] sm:$0xff]  ;;  %684 = vst.msk [vmem:[#allocation2 + $0x48] sm:$0xff] %vm681_vm1, %v650_v12 }
  0x92   : > { %v759_v60 = vld [vmem:[#allocation2 + $0x2f] sm:$0xff]  ;;  %v6890_v63 = vpack.c.bf16 %v808_v59, %v807_v56  ;;  %685 = vst.msk [vmem:[#allocation2 + $0x50] sm:$0xff] %vm681_vm1, %v651_v3  ;;  %v784_v22 = vld [vmem:[#allocation2 + $0x1c7] sm:$0xff] }
  0x93   : > { %v6892_v0 = vpack.c.bf16 %v759_v60, %v758_v57  ;;  %v566_v2 = vpop.permute.xlu1 %565  ;;  %v833_v21 = vld [vmem:[#allocation2 + $0x1c8] sm:$0xff]  ;;  %v834_v23 = vld [vmem:[#allocation2 + $0x1d0] sm:$0xff]  ;;  %v564_v59 = vpop.permute.xlu0 %563 }
  0x94   : > { %6287 = vmatmul.msk.bf16.gmra.mxu0 %vm681_vm1, %v6890_v63  ;;  %v614_v5 = vsel %vm583_vm3, %v6630_v58, %v566_v2  ;;  %v785_v24 = vld [vmem:[#allocation2 + $0x1cf] sm:$0xff]  ;;  %v851_v26 = vpack.c.bf16 %v834_v23, %v833_v21  ;;  %v916_v12 = vpop.f32.mrf.mxu0 }
  0x95   : > { %6303 = vmatmul.msk.bf16.gmra.mxu1 %vm681_vm1, %v6892_v0  ;;  %v662_v8 = vunpack.c.l.bf16 %v614_v5  ;;  %v663_v9 = vunpack.c.h.bf16 %v614_v5  ;;  %v6933_v27 = vpack.c.bf16 %v785_v24, %v784_v22  ;;  %v763_v46 = vld [vmem:[#allocation2 + $0x6f] sm:$0xff] }
  0x96   : > { %6300 = vmatmul.msk.bf16.vlgmr.msra.gmra.mxu2 %vm681_vm1, %v851_v26  ;;  %v791_v49 = vpack.c.bf16 %v763_v46, %v762_v45  ;;  %v813_v52 = vld [vmem:[#allocation2 + $0x88] sm:$0xff]  ;;  %v6629_v60 = vld [vmem:[%s6802_s18 + $0x30] sm:$0xff] }
  0x97   : > { %696 = vst.msk [vmem:[#allocation2 + $0x108] sm:$0xff] %vm681_vm1, %v662_v8  ;;  %6316 = vmatmul.msk.bf16.vlgmr.msra.gmra.mxu3 %vm681_vm1, %v6933_v27  ;;  %v814_v54 = vld [vmem:[#allocation2 + $0x90] sm:$0xff]  ;;  %v764_v55 = vld [vmem:[#allocation2 + $0x87] sm:$0xff]  ;;  %v610_v62 = vsel %vm583_vm3, %v6629_v60, %v564_v59 }
  0x98   : > { %697 = vst.msk [vmem:[#allocation2 + $0x110] sm:$0xff] %vm681_vm1, %v663_v9  ;;  %v809_v28 = vld [vmem:[#allocation2 + $0x48] sm:$0xff]  ;;  %v6956_v57 = vpack.c.bf16 %v814_v54, %v813_v52  ;;  %v660_v1 = vunpack.c.l.bf16 %v610_v62  ;;  %v661_v2 = vunpack.c.h.bf16 %v610_v62  ;;  %v1143_v24 = vld [vmem:[#allocation2 + $0x71] sm:$0xff] }
  0x99   : > { %v760_v29 = vld [vmem:[#allocation2 + $0x47] sm:$0xff]  ;;  %v810_v31 = vld [vmem:[#allocation2 + $0x50] sm:$0xff] }
  0x9a   : > { %v761_v32 = vld [vmem:[#allocation2 + $0x4f] sm:$0xff]  ;;  %v6939_v34 = vpack.c.bf16 %v810_v31, %v809_v28  ;;  %694 = vst.msk [vmem:[#allocation2 + $0xe8] sm:$0xff] %vm681_vm1, %v660_v1 }
  0x9b   : > { %v572_v17 = vpop.permute.xlu1 %571  ;;  %v790_v35 = vpack.c.bf16 %v761_v32, %v760_v29  ;;  %v765_v56 = vld [vmem:[#allocation2 + $0x8f] sm:$0xff]  ;;  %695 = vst.msk [vmem:[#allocation2 + $0xf0] sm:$0xff] %vm681_vm1, %v661_v2 }
  0x9c   : > { %v626_v18 = vsel %vm583_vm3, %v6633_v13, %v572_v17  ;;  %v792_v58 = vpack.c.bf16 %v765_v56, %v764_v55  ;;  %v1138_v4 = vld [vmem:[#allocation2 + $0x29] sm:$0xff]  ;;  %v1056_v13 = vpop.f32.mrf.mxu1  ;;  %v1141_v16 = vld [vmem:[#allocation2 + $0x51] sm:$0xff]  ;;  %v7022_v50 = vpop.f32.mrf.mxu0 }
  0x9d   : > { %v668_v19 = vunpack.c.l.bf16 %v626_v18  ;;  %v669_v20 = vunpack.c.h.bf16 %v626_v18  ;;  %v815_v5 = vld [vmem:[#allocation2 + $0xa8] sm:$0xff]  ;;  %v6980_v14 = vadd.f32 %v1056_v13, %v916_v12  ;;  %v818_v17 = vld [vmem:[#allocation2 + $0xd0] sm:$0xff] }
  0x9e   : > { %v767_v8 = vld [vmem:[#allocation2 + $0xaf] sm:$0xff]  ;;  %v6972_v10 = vpack.c.bf16 %v816_v6, %v815_v5  ;;  %v768_v18 = vld [vmem:[#allocation2 + $0xc7] sm:$0xff]  ;;  %v6634_v5 = vld [vmem:[%s6802_s18 + $0x58] sm:$0xff] }
  0x9f   : > { %702 = vst.msk [vmem:[#allocation2 + $0x168] sm:$0xff] %vm681_vm1, %v668_v19  ;;  %v793_v11 = vpack.c.bf16 %v767_v8, %v766_v7  ;;  %v1140_v15 = vld [vmem:[#allocation2 + $0x49] sm:$0xff]  ;;  %v1145_v40 = vld [vmem:[#allocation2 + $0x91] sm:$0xff] }
  0xa0   : > { %703 = vst.msk [vmem:[#allocation2 + $0x170] sm:$0xff] %vm681_vm1, %v669_v20  ;;  %v817_v3 = vld [vmem:[#allocation2 + $0xc8] sm:$0xff]  ;;  %v6982_v20 = vpack.c.bf16 %v1141_v16, %v1140_v15  ;;  %v824_v55 = vld [vmem:[#allocation2 + $0x130] sm:$0xff] }
  0xa1   : > { %v769_v19 = vld [vmem:[#allocation2 + $0xcf] sm:$0xff]  ;;  %v6984_v21 = vpack.c.bf16 %v818_v17, %v817_v3  ;;  %v770_v28 = vld [vmem:[#allocation2 + $0xe7] sm:$0xff] }
  0xa2   : > { %v794_v22 = vpack.c.bf16 %v769_v19, %v768_v18  ;;  %v1142_v23 = vld [vmem:[#allocation2 + $0x69] sm:$0xff]  ;;  %v1149_v16 = vld [vmem:[#allocation2 + $0xd1] sm:$0xff] }
  0xa3   : > { %v580_v30 = vpop.permute.xlu1 %579  ;;  %v820_v26 = vld [vmem:[#allocation2 + $0xf0] sm:$0xff]  ;;  %v772_v43 = vld [vmem:[#allocation2 + $0x107] sm:$0xff] }
  0xa4   : > { %v642_v33 = vsel %vm583_vm3, %v6637_v25, %v580_v30  ;;  %6288 = vmatmul.msk.bf16.gmra.mxu0 %vm681_vm1, %v6939_v34  ;;  %v819_v25 = vld [vmem:[#allocation2 + $0xe8] sm:$0xff]  ;;  %v6992_v30 = vpack.c.bf16 %v1143_v24, %v1142_v23  ;;  %v7024_v51 = vpop.f32.mrf.mxu1 }
  0xa5   : > { %v676_v36 = vunpack.c.l.bf16 %v642_v33  ;;  %v677_v37 = vunpack.c.h.bf16 %v642_v33  ;;  %6304 = vmatmul.msk.bf16.gmra.mxu1 %vm681_vm1, %v790_v35  ;;  %v771_v29 = vld [vmem:[#allocation2 + $0xef] sm:$0xff]  ;;  %v6994_v31 = vpack.c.bf16 %v820_v26, %v819_v25  ;;  %v570_v33 = vpop.permute.xlu0 %569  ;;  %v774_v56 = vld [vmem:[#allocation2 + $0x127] sm:$0xff] }
  0xa6   : > { %v6996_v32 = vpack.c.bf16 %v771_v29, %v770_v28  ;;  %v1146_v52 = vld [vmem:[#allocation2 + $0xa9] sm:$0xff] }
  0xa7   : > { %710 = vst.msk [vmem:[#allocation2 + $0x1e8] sm:$0xff] %vm681_vm1, %v676_v36  ;;  %v823_v54 = vld [vmem:[#allocation2 + $0x128] sm:$0xff] }
  0xa8   : > { %711 = vst.msk [vmem:[#allocation2 + $0x1f0] sm:$0xff] %vm681_vm1, %v677_v37  ;;  %v7030_v1 = vpack.c.bf16 %v824_v55, %v823_v54  ;;  %v1148_v15 = vld [vmem:[#allocation2 + $0xc9] sm:$0xff]  ;;  %v1151_v55 = vld [vmem:[#allocation2 + $0xf1] sm:$0xff] }
  0xa9   : > { %v1150_v54 = vld [vmem:[#allocation2 + $0xe9] sm:$0xff] }
  0xae   : > { %v835_v38 = vld [vmem:[#allocation2 + $0x1e8] sm:$0xff] }
  0xaf   : > { %v786_v39 = vld [vmem:[#allocation2 + $0x1e7] sm:$0xff]  ;;  %v836_v41 = vld [vmem:[#allocation2 + $0x1f0] sm:$0xff] }
  0xb0   : > { %v787_v42 = vld [vmem:[#allocation2 + $0x1ef] sm:$0xff]  ;;  %v852_v44 = vpack.c.bf16 %v836_v41, %v835_v38 }
  0xb1   : > { %v6946_v47 = vpack.c.bf16 %v787_v42, %v786_v39  ;;  %v1144_v39 = vld [vmem:[#allocation2 + $0x89] sm:$0xff] }
  0xb2   : > { %6301 = vmatmul.msk.bf16.gmra.mxu2 %vm681_vm1, %v852_v44  ;;  %v821_v41 = vld [vmem:[#allocation2 + $0x108] sm:$0xff]  ;;  %v822_v42 = vld [vmem:[#allocation2 + $0x110] sm:$0xff]  ;;  %v7009_v45 = vpack.c.bf16 %v1145_v40, %v1144_v39 }
  0xb3   : > { %6317 = vmatmul.msk.bf16.gmra.mxu3 %vm681_vm1, %v6946_v47  ;;  %v773_v44 = vld [vmem:[#allocation2 + $0x10f] sm:$0xff]  ;;  %v7011_v46 = vpack.c.bf16 %v822_v42, %v821_v41 }
  0xb4   : > { %6289 = vmatmul.msk.bf16.gmra.mxu0 %vm681_vm1, %v6948_v48 }
  0xb5   : > { %6305 = vmatmul.msk.bf16.gmra.mxu1 %vm681_vm1, %v791_v49 }
  0xc2   : > { %6319 = vmatmul.msk.bf16.vlgmr.msrb.gmra.mxu2 %vm681_vm1, %v1168_v53  ;;  %v1147_v53 = vld [vmem:[#allocation2 + $0xb1] sm:$0xff] }
  0xc3   : > { %6336 = vmatmul.msk.bf16.vlgmr.msrb.gmra.mxu3 %vm681_vm1, %v6892_v0  ;;  %v1139_v0 = vld [vmem:[#allocation2 + $0x31] sm:$0xff]  ;;  %v7026_v61 = vpack.c.bf16 %v1147_v53, %v1146_v52 }
  0xc4   : > { %6290 = vmatmul.msk.bf16.gmra.mxu0 %vm681_vm1, %v6956_v57  ;;  %v6970_v9 = vpack.c.bf16 %v1139_v0, %v1138_v4  ;;  %v6654_v4 = vld [vmem:[%s6749_s10 + $0x78] sm:$0xff]  ;;  %v574_v0 = vpop.permute.xlu0 %573 }
  0xc5   : > { %6306 = vmatmul.msk.bf16.gmra.mxu1 %vm681_vm1, %v792_v58  ;;  %581 = vrot.lane.b32.xlu0 %v6654_v4, %s6685_s11  ;;  %v630_v8 = vsel %vm583_vm3, %v6634_v5, %v574_v0  ;;  %v779_v4 = vld [vmem:[#allocation2 + $0x16f] sm:$0xff]  ;;  %v7079_v0 = vpack.c.bf16 %v1151_v55, %v1150_v54 }
  0xc6   : > { %v670_v12 = vunpack.c.l.bf16 %v630_v8  ;;  %v671_v13 = vunpack.c.h.bf16 %v630_v8 }
  0xc8   : > { %704 = vst.msk [vmem:[#allocation2 + $0x188] sm:$0xff] %vm681_vm1, %v670_v12 }
  0xc9   : > { %705 = vst.msk [vmem:[#allocation2 + $0x190] sm:$0xff] %vm681_vm1, %v671_v13 }
  0xd2   : > { %6320 = vmatmul.msk.bf16.gmra.mxu2 %vm681_vm1, %v6970_v9 }
  0xd3   : > { %6337 = vmatmul.msk.bf16.gmra.mxu3 %vm681_vm1, %v790_v35  ;;  %v6632_v35 = vld [vmem:[%s6802_s18 + $0x48] sm:$0xff] }
  0xd4   : > { %6291 = vmatmul.msk.bf16.gmra.mxu0 %vm681_vm1, %v6972_v10  ;;  %v622_v36 = vsel %vm583_vm3, %v6632_v35, %v570_v33 }
  0xd5   : > { %6307 = vmatmul.msk.bf16.gmra.mxu1 %vm681_vm1, %v793_v11  ;;  %v666_v37 = vunpack.c.l.bf16 %v622_v36  ;;  %v667_v38 = vunpack.c.h.bf16 %v622_v36  ;;  %v6352_v36 = vld [vmem:[%s9054_s2 + $0x10] sm:$0xf] }
  0xd7   : > { %700 = vst.msk [vmem:[#allocation2 + $0x148] sm:$0xff] %vm681_vm1, %v666_v37 }
  0xd8   : > { %701 = vst.msk [vmem:[#allocation2 + $0x150] sm:$0xff] %vm681_vm1, %v667_v38  ;;  %v1679_v38 = vsel %vm903_vm0, %v6352_v36, 0  ;;  %v830_v36 = vld [vmem:[#allocation2 + $0x190] sm:$0xff] }
  0xd9   : > { %1688 = vmatpush.bf16.msrb.mxu0 %v1679_v38 }
  0xde   : > { %v825_v3 = vld [vmem:[#allocation2 + $0x148] sm:$0xff] }
  0xdf   : > { %v826_v17 = vld [vmem:[#allocation2 + $0x150] sm:$0xff]  ;;  %v776_v18 = vld [vmem:[#allocation2 + $0x147] sm:$0xff] }
  0xe0   : > { %v777_v19 = vld [vmem:[#allocation2 + $0x14f] sm:$0xff]  ;;  %v7051_v23 = vpack.c.bf16 %v826_v17, %v825_v3 }
  0xe1   : > { %v7053_v24 = vpack.c.bf16 %v777_v19, %v776_v18 }
  0xe2   : > { %6321 = vmatmul.msk.bf16.gmra.mxu2 %vm681_vm1, %v6982_v20  ;;  %v576_v37 = vpop.permute.xlu2 %575 }
  0xe3   : > { %6338 = vmatmul.msk.bf16.gmra.mxu3 %vm681_vm1, %v791_v49  ;;  %v7013_v49 = vpack.c.bf16 %v773_v44, %v772_v43 }
  0xe4   : > { %6292 = vmatmul.msk.bf16.gmra.mxu0 %vm681_vm1, %v6984_v21 }
  0xe5   : > { %6308 = vmatmul.msk.bf16.gmra.mxu1 %vm681_vm1, %v794_v22 }
  0xf2   : > { %6322 = vmatmul.msk.bf16.gmra.mxu2 %vm681_vm1, %v6992_v30 }
  0xf3   : > { %6339 = vmatmul.msk.bf16.gmra.mxu3 %vm681_vm1, %v792_v58  ;;  %v775_v58 = vld [vmem:[#allocation2 + $0x12f] sm:$0xff] }
  0xf4   : > { %6293 = vmatmul.msk.bf16.gmra.mxu0 %vm681_vm1, %v6994_v31  ;;  %v7032_v2 = vpack.c.bf16 %v775_v58, %v774_v56  ;;  %v827_v58 = vld [vmem:[#allocation2 + $0x168] sm:$0xff] }
  0xf5   : > { %6309 = vmatmul.msk.bf16.gmra.mxu1 %vm681_vm1, %v6996_v32 }
 0x102   : > { %6323 = vmatmul.msk.bf16.gmra.mxu2 %vm681_vm1, %v7009_v45 }
 0x103   : > { %6340 = vmatmul.msk.bf16.gmra.mxu3 %vm681_vm1, %v793_v11 }
 0x104   : > { %6294 = vmatmul.msk.bf16.gmra.mxu0 %vm681_vm1, %v7011_v46 }
 0x105   : > { %6310 = vmatmul.msk.bf16.gmra.mxu1 %vm681_vm1, %v7013_v49 }
 0x111   : > { %v921_v59 = vpop.f32.mrf.mxu0 }
 0x112   : > { %v1061_v60 = vpop.f32.mrf.mxu1  ;;  %6324 = vmatmul.msk.bf16.gmra.mxu2 %vm681_vm1, %v7026_v61 }
 0x113   : > { %v7028_v62 = vadd.f32 %v1061_v60, %v921_v59  ;;  %6341 = vmatmul.msk.bf16.gmra.mxu3 %vm681_vm1, %v794_v22  ;;  %v7049_v22 = vpack.c.bf16 %v1149_v16, %v1148_v15  ;;  %v828_v59 = vld [vmem:[#allocation2 + $0x170] sm:$0xff]  ;;  %v778_v60 = vld [vmem:[#allocation2 + $0x167] sm:$0xff] }
 0x114   : > { %6295 = vmatmul.msk.bf16.gmra.mxu0 %vm681_vm1, %v7030_v1  ;;  %v7081_v5 = vpack.c.bf16 %v828_v59, %v827_v58 }
 0x115   : > { %6311 = vmatmul.msk.bf16.gmra.mxu1 %vm681_vm1, %v7032_v2 }
 0x119   : > { %v923_v6 = vpop.f32.mrf.mxu0  ;;  %v986_v29 = vpop.f32.mrf.mxu2 }
 0x11a   : > { %v1063_v7 = vpop.f32.mrf.mxu1  ;;  %v1126_v33 = vpop.f32.mrf.mxu3 }
 0x11b   : > { %v7045_v11 = vadd.f32 %v1063_v7, %v923_v6  ;;  %v7065_v35 = vadd.f32 %v1126_v33, %v986_v29  ;;  %v7083_v6 = vpack.c.bf16 %v779_v4, %v778_v60  ;;  %v829_v33 = vld [vmem:[#allocation2 + $0x188] sm:$0xff]  ;;  %v1059_v4 = vadd.f32 %v7024_v51, %v7022_v50 }
 0x121   : > { %v926_v25 = vpop.f32.mrf.mxu0  ;;  %v988_v52 = vpop.f32.mrf.mxu2 }
 0x122   : > { %6325 = vmatmul.msk.bf16.gmra.mxu2 %vm681_vm1, %v7049_v22  ;;  %v1066_v26 = vpop.f32.mrf.mxu1  ;;  %v1128_v53 = vpop.f32.mrf.mxu3 }
 0x123   : > { %6342 = vmatmul.msk.bf16.gmra.mxu3 %vm681_vm1, %v6996_v32  ;;  %v7059_v28 = vadd.f32 %v1066_v26, %v926_v25  ;;  %v6635_v32 = vld [vmem:[%s6802_s18 + $0x60] sm:$0xff]  ;;  %v7077_v56 = vadd.f32 %v1128_v53, %v988_v52  ;;  %v1152_v25 = vld [vmem:[#allocation2 + $0x109] sm:$0xff]  ;;  %v1153_v26 = vld [vmem:[#allocation2 + $0x111] sm:$0xff] }
 0x124   : > { %6296 = vmatmul.msk.bf16.gmra.mxu0 %vm681_vm1, %v7051_v23  ;;  %v634_v39 = vsel %vm583_vm3, %v6635_v32, %v576_v37  ;;  %v780_v37 = vld [vmem:[#allocation2 + $0x187] sm:$0xff]  ;;  %v781_v32 = vld [vmem:[#allocation2 + $0x18f] sm:$0xff]  ;;  %v7101_v38 = vpack.c.bf16 %v1153_v26, %v1152_v25 }
 0x125   : > { %6312 = vmatmul.msk.bf16.gmra.mxu1 %vm681_vm1, %v7053_v24  ;;  %v672_v40 = vunpack.c.l.bf16 %v634_v39  ;;  %v673_v41 = vunpack.c.h.bf16 %v634_v39  ;;  %v7103_v39 = vpack.c.bf16 %v830_v36, %v829_v33 }
 0x127   : > { %706 = vst.msk [vmem:[#allocation2 + $0x1a8] sm:$0xff] %vm681_vm1, %v672_v40  ;;  %v7105_v40 = vpack.c.bf16 %v781_v32, %v780_v37 }
 0x128   : > { %707 = vst.msk [vmem:[#allocation2 + $0x1b0] sm:$0xff] %vm681_vm1, %v673_v41 }
 0x129   : > { %v928_v42 = vpop.f32.mrf.mxu0 }
 0x12a   : > { %v1068_v43 = vpop.f32.mrf.mxu1 }
 0x12b   : > { %v7074_v44 = vadd.f32 %v1068_v43, %v928_v42  ;;  %v6369_v43 = vld [vmem:[%s9054_s2 + $0x14] sm:$0xf] }
 0x12c   : > { %v1901_v53 = vsel %vm903_vm0, %v6369_v43, 0 }
 0x12d   : > { %1910 = vmatpush.bf16.msrb.mxu1 %v1901_v53 }
 0x12e   : > { %v782_v25 = vld [vmem:[#allocation2 + $0x1a7] sm:$0xff] }
 0x12f   : > { %v783_v26 = vld [vmem:[#allocation2 + $0x1af] sm:$0xff] }
 0x130   : > { %v7134_v37 = vpack.c.bf16 %v783_v26, %v782_v25 }
 0x131   : > { %v931_v7 = vpop.f32.mrf.mxu0 }
 0x132   : > { %6326 = vmatmul.msk.bf16.gmra.mxu2 %vm681_vm1, %v7079_v0  ;;  %v1071_v8 = vpop.f32.mrf.mxu1 }
 0x133   : > { %6343 = vmatmul.msk.bf16.gmra.mxu3 %vm681_vm1, %v7013_v49  ;;  %v7089_v12 = vadd.f32 %v1071_v8, %v931_v7 }
 0x134   : > { %6297 = vmatmul.msk.bf16.gmra.mxu0 %vm681_vm1, %v7081_v5 }
 0x135   : > { %v991_v13 = vpop.f32.mrf.mxu2  ;;  %6313 = vmatmul.msk.bf16.gmra.mxu1 %vm681_vm1, %v7083_v6 }
 0x136   : > { %v1131_v15 = vpop.f32.mrf.mxu3 }
 0x137   : > { %v7095_v16 = vadd.f32 %v1131_v15, %v991_v13  ;;  %v1154_v15 = vld [vmem:[#allocation2 + $0x129] sm:$0xff] }
 0x139   : > { %v933_v3 = vpop.f32.mrf.mxu0 }
 0x13a   : > { %v1073_v17 = vpop.f32.mrf.mxu1 }
 0x13b   : > { %v7097_v18 = vadd.f32 %v1073_v17, %v933_v3  ;;  %v1155_v3 = vld [vmem:[#allocation2 + $0x131] sm:$0xff] }
 0x13d   : > { %v993_v19 = vpop.f32.mrf.mxu2 }
 0x13e   : > { %v1133_v49 = vpop.f32.mrf.mxu3 }
 0x13f   : > { %v7099_v29 = vadd.f32 %v1133_v49, %v993_v19  ;;  %v831_v19 = vld [vmem:[#allocation2 + $0x1a8] sm:$0xff]  ;;  %v832_v49 = vld [vmem:[#allocation2 + $0x1b0] sm:$0xff] }
 0x140   : > { %v7132_v36 = vpack.c.bf16 %v832_v49, %v831_v19 }
 0x141   : > { %v936_v41 = vpop.f32.mrf.mxu0 }
 0x142   : > { %6327 = vmatmul.msk.bf16.gmra.mxu2 %vm681_vm1, %v7101_v38  ;;  %v1076_v42 = vpop.f32.mrf.mxu1 }
 0x143   : > { %6344 = vmatmul.msk.bf16.gmra.mxu3 %vm681_vm1, %v7032_v2  ;;  %v7114_v52 = vadd.f32 %v1076_v42, %v936_v41 }
 0x144   : > { %6298 = vmatmul.msk.bf16.gmra.mxu0 %vm681_vm1, %v7103_v39 }
 0x145   : > { %v1246_v54 = vpop.f32.mrf.mxu2  ;;  %6314 = vmatmul.msk.bf16.gmra.mxu1 %vm681_vm1, %v7105_v40 }
 0x146   : > { %v1468_v55 = vpop.f32.mrf.mxu3  ;;  %v1326_v2 = vadd.f32 %v1246_v54, %v6980_v14  ;;  %v7130_v14 = vpack.c.bf16 %v1155_v3, %v1154_v15 }
 0x148   : > { %v7122_v58 = vadd.f32 %v1468_v55, %v1326_v2 }
 0x149   : > { %v938_v59 = vpop.f32.mrf.mxu0 }
 0x14a   : > { %v1078_v60 = vpop.f32.mrf.mxu1 }
 0x14b   : > { %v7126_v7 = vadd.f32 %v1078_v60, %v938_v59  ;;  %v1156_v60 = vld [vmem:[#allocation2 + $0x149] sm:$0xff] }
 0x14d   : > { %v1248_v8 = vpop.f32.mrf.mxu2 }
 0x14e   : > { %v1470_v13 = vpop.f32.mrf.mxu3  ;;  %v1327_v17 = vadd.f32 %v1248_v8, %v1059_v4  ;;  %v1157_v4 = vld [vmem:[#allocation2 + $0x151] sm:$0xff] }
 0x14f   : > { %v7154_v15 = vpack.c.bf16 %v1157_v4, %v1156_v60 }
 0x150   : > { %v7128_v33 = vadd.f32 %v1470_v13, %v1327_v17 }
 0x151   : > { %v941_v50 = vpop.f32.mrf.mxu0 }
 0x152   : > { %6328 = vmatmul.msk.bf16.gmra.mxu2 %vm681_vm1, %v7130_v14  ;;  %v1081_v51 = vpop.f32.mrf.mxu1 }
 0x153   : > { %6345 = vmatmul.msk.bf16.gmra.mxu3 %vm681_vm1, %v7053_v24  ;;  %v7140_v32 = vadd.f32 %v1081_v51, %v941_v50 }
 0x154   : > { %6299 = vmatmul.msk.bf16.gmra.mxu0 %vm681_vm1, %v7132_v36 }
 0x155   : > { %v1251_v41 = vpop.f32.mrf.mxu2  ;;  %6315 = vmatmul.msk.bf16.gmra.mxu1 %vm681_vm1, %v7134_v37 }
 0x156   : > { %v1473_v42 = vpop.f32.mrf.mxu3  ;;  %v1328_v43 = vadd.f32 %v1251_v41, %v7028_v62 }
 0x158   : > { %v7147_v53 = vadd.f32 %v1473_v42, %v1328_v43  ;;  %v1158_v42 = vld [vmem:[#allocation2 + $0x169] sm:$0xff]  ;;  %v1159_v43 = vld [vmem:[#allocation2 + $0x171] sm:$0xff] }
 0x159   : > { %v943_v54 = vpop.f32.mrf.mxu0 }
 0x15a   : > { %v1083_v55 = vpop.f32.mrf.mxu1 }
 0x15b   : > { %v7149_v2 = vadd.f32 %v1083_v55, %v943_v54 }
 0x15d   : > { %v1253_v24 = vpop.f32.mrf.mxu2 }
 0x15e   : > { %v1475_v59 = vpop.f32.mrf.mxu3  ;;  %v1329_v8 = vadd.f32 %v1253_v24, %v7045_v11 }
 0x160   : > { %v7152_v13 = vadd.f32 %v1475_v59, %v1329_v8 }
 0x161   : > { %v946_v62 = vpop.f32.mrf.mxu0 }
 0x162   : > { %6329 = vmatmul.msk.bf16.gmra.mxu2 %vm681_vm1, %v7154_v15  ;;  %v1086_v3 = vpop.f32.mrf.mxu1 }
 0x163   : > { %6346 = vmatmul.msk.bf16.gmra.mxu3 %vm681_vm1, %v7083_v6  ;;  %v7160_v17 = vadd.f32 %v1086_v3, %v946_v62 }
 0x164   : > { %6353 = vmatmul.msk.bf16.vlgmr.msrb.gmra.mxu0 %vm681_vm1, %v6890_v63  ;;  %v7174_v63 = vpack.c.bf16 %v1159_v43, %v1158_v42  ;;  %v6638_v43 = vld [vmem:[%s6802_s18 + $0x78] sm:$0xff] }
 0x165   : > { %v1256_v19 = vpop.f32.mrf.mxu2  ;;  %6370 = vmatmul.msk.bf16.vlgmr.msrb.gmra.mxu1 %vm681_vm1, %v6970_v9 }
 0x166   : > { %v1478_v49 = vpop.f32.mrf.mxu3  ;;  %v1330_v11 = vadd.f32 %v1256_v19, %v7059_v28 }
 0x168   : > { %v7167_v25 = vadd.f32 %v1478_v49, %v1330_v11  ;;  %v1160_v49 = vld [vmem:[#allocation2 + $0x189] sm:$0xff]  ;;  %v1161_v11 = vld [vmem:[#allocation2 + $0x191] sm:$0xff] }
 0x169   : > { %v948_v26 = vpop.f32.mrf.mxu0 }
 0x16a   : > { %v1088_v50 = vpop.f32.mrf.mxu1 }
 0x16b   : > { %v7169_v51 = vadd.f32 %v1088_v50, %v948_v26 }
 0x16d   : > { %v1258_v6 = vpop.f32.mrf.mxu2 }
 0x16e   : > { %v1480_v41 = vpop.f32.mrf.mxu3  ;;  %v1331_v54 = vadd.f32 %v1258_v6, %v7074_v44 }
 0x170   : > { %v7172_v55 = vadd.f32 %v1480_v41, %v1331_v54 }
 0x171   : > { %v951_v9 = vpop.f32.mrf.mxu0 }
 0x172   : > { %6330 = vmatmul.msk.bf16.gmra.mxu2 %vm681_vm1, %v7174_v63  ;;  %v1091_v28 = vpop.f32.mrf.mxu1 }
 0x173   : > { %6347 = vmatmul.msk.bf16.gmra.mxu3 %vm681_vm1, %v7105_v40  ;;  %v7180_v24 = vadd.f32 %v1091_v28, %v951_v9  ;;  %v582_v9 = vpop.permute.xlu0 %581 }
 0x174   : > { %6354 = vmatmul.msk.bf16.gmra.mxu0 %vm681_vm1, %v6939_v34  ;;  %v7194_v34 = vpack.c.bf16 %v1161_v11, %v1160_v49 }
 0x175   : > { %v1261_v59 = vpop.f32.mrf.mxu2  ;;  %6371 = vmatmul.msk.bf16.gmra.mxu1 %vm681_vm1, %v6982_v20 }
 0x176   : > { %v1483_v60 = vpop.f32.mrf.mxu3  ;;  %v1332_v44 = vadd.f32 %v1261_v59, %v7089_v12 }
 0x178   : > { %v7187_v4 = vadd.f32 %v1483_v60, %v1332_v44 }
 0x179   : > { %v953_v8 = vpop.f32.mrf.mxu0 }
 0x17a   : > { %v1093_v62 = vpop.f32.mrf.mxu1 }
 0x17b   : > { %v7189_v3 = vadd.f32 %v1093_v62, %v953_v8 }
 0x17d   : > { %v1263_v40 = vpop.f32.mrf.mxu2 }
 0x17e   : > { %v1485_v19 = vpop.f32.mrf.mxu3  ;;  %v1333_v26 = vadd.f32 %v1263_v40, %v7097_v18 }
 0x180   : > { %v7192_v50 = vadd.f32 %v1485_v19, %v1333_v26  ;;  %v1163_v19 = vld [vmem:[#allocation2 + $0x1b1] sm:$0xff] }
 0x181   : > { %v956_v20 = vpop.f32.mrf.mxu0 }
 0x182   : > { %6331 = vmatmul.msk.bf16.gmra.mxu2 %vm681_vm1, %v7194_v34  ;;  %v1096_v12 = vpop.f32.mrf.mxu1 }
 0x183   : > { %6348 = vmatmul.msk.bf16.gmra.mxu3 %vm681_vm1, %v7134_v37  ;;  %v7200_v6 = vadd.f32 %v1096_v12, %v956_v20  ;;  %v646_v37 = vsel %vm583_vm3, %v6638_v43, %v582_v9 }
 0x184   : > { %6355 = vmatmul.msk.bf16.gmra.mxu0 %vm681_vm1, %v6948_v48  ;;  %v678_v60 = vunpack.c.l.bf16 %v646_v37  ;;  %v679_v44 = vunpack.c.h.bf16 %v646_v37  ;;  %v1162_v48 = vld [vmem:[#allocation2 + $0x1a9] sm:$0xff] }
 0x185   : > { %v1266_v41 = vpop.f32.mrf.mxu2  ;;  %6372 = vmatmul.msk.bf16.gmra.mxu1 %vm681_vm1, %v6992_v30  ;;  %v7218_v49 = vpack.c.bf16 %v1163_v19, %v1162_v48 }
 0x186   : > { %v1488_v42 = vpop.f32.mrf.mxu3  ;;  %v1334_v18 = vadd.f32 %v1266_v41, %v7114_v52  ;;  %712 = vst.msk [vmem:[#allocation2 + $0x208] sm:$0xff] %vm681_vm1, %v678_v60 }
 0x187   : > { %713 = vst.msk [vmem:[#allocation2 + $0x210] sm:$0xff] %vm681_vm1, %v679_v44 }
 0x188   : > { %v7208_v54 = vadd.f32 %v1488_v42, %v1334_v18 }
 0x189   : > { %v958_v28 = vpop.f32.mrf.mxu0 }
 0x18a   : > { %v1098_v59 = vpop.f32.mrf.mxu1 }
 0x18b   : > { %v7211_v8 = vadd.f32 %v1098_v59, %v958_v28  ;;  %v1164_v28 = vld [vmem:[#allocation2 + $0x1c9] sm:$0xff]  ;;  %v1165_v59 = vld [vmem:[#allocation2 + $0x1d1] sm:$0xff] }
 0x18d   : > { %v1268_v62 = vpop.f32.mrf.mxu2 }
 0x18e   : > { %v1490_v40 = vpop.f32.mrf.mxu3  ;;  %v1335_v30 = vadd.f32 %v1268_v62, %v7126_v7  ;;  %v6386_v62 = vld [vmem:[%s9054_s2 + $0x18] sm:$0xf] }
 0x18f   : > { %v2124_v48 = vsel %vm903_vm0, %v6386_v62, 0 }
 0x190   : > { %v7216_v52 = vadd.f32 %v1490_v40, %v1335_v30  ;;  %2133 = vmatpush.bf16.msra.mxu2 %v2124_v48 }
 0x191   : > { %v961_v11 = vpop.f32.mrf.mxu0 }
 0x192   : > { %6332 = vmatmul.msk.bf16.gmra.mxu2 %vm681_vm1, %v7218_v49  ;;  %v1101_v26 = vpop.f32.mrf.mxu1 }
 0x193   : > { %6349 = vmatmul.msk.bf16.gmra.mxu3 %vm681_vm1, %v6933_v27  ;;  %v7224_v20 = vadd.f32 %v1101_v26, %v961_v11 }
 0x194   : > { %6356 = vmatmul.msk.bf16.gmra.mxu0 %vm681_vm1, %v6956_v57  ;;  %v7238_v57 = vpack.c.bf16 %v1165_v59, %v1164_v28  ;;  %v1166_v28 = vld [vmem:[#allocation2 + $0x1e9] sm:$0xff]  ;;  %v1167_v59 = vld [vmem:[#allocation2 + $0x1f1] sm:$0xff] }
 0x195   : > { %v1271_v12 = vpop.f32.mrf.mxu2  ;;  %6373 = vmatmul.msk.bf16.gmra.mxu1 %vm681_vm1, %v7009_v45 }
 0x196   : > { %v1493_v41 = vpop.f32.mrf.mxu3  ;;  %v1336_v7 = vadd.f32 %v1271_v12, %v7140_v32 }
 0x198   : > { %v7231_v42 = vadd.f32 %v1493_v41, %v1336_v7  ;;  %v1388_v7 = vld [vmem:[#allocation2 + $0x207] sm:$0xff] }
 0x199   : > { %v963_v18 = vpop.f32.mrf.mxu0 }
 0x19a   : > { %v1103_v43 = vpop.f32.mrf.mxu1 }
 0x19b   : > { %v7233_v9 = vadd.f32 %v1103_v43, %v963_v18  ;;  %v1389_v18 = vld [vmem:[#allocation2 + $0x20f] sm:$0xff] }
 0x19d   : > { %v1273_v27 = vpop.f32.mrf.mxu2 }
 0x19e   : > { %v1495_v37 = vpop.f32.mrf.mxu3  ;;  %v1337_v60 = vadd.f32 %v1273_v27, %v7149_v2  ;;  %v6403_v2 = vld [vmem:[%s9054_s2 + $0x1c] sm:$0xf] }
 0x19f   : > { %v2346_v19 = vsel %vm903_vm0, %v6403_v2, 0 }
 0x1a0   : > { %v7236_v44 = vadd.f32 %v1495_v37, %v1337_v60  ;;  %2355 = vmatpush.bf16.msra.mxu3 %v2346_v19 }
 0x1a1   : > { %v966_v45 = vpop.f32.mrf.mxu0 }
 0x1a2   : > { %6333 = vmatmul.msk.bf16.gmra.mxu2 %vm681_vm1, %v7238_v57  ;;  %v1106_v32 = vpop.f32.mrf.mxu1 }
 0x1a3   : > { %6350 = vmatmul.msk.bf16.gmra.mxu3 %vm681_vm1, %v6946_v47  ;;  %v7250_v40 = vadd.f32 %v1106_v32, %v966_v45 }
 0x1a4   : > { %6357 = vmatmul.msk.bf16.gmra.mxu0 %vm681_vm1, %v6972_v10  ;;  %v7264_v10 = vpack.c.bf16 %v1389_v18, %v1388_v7  ;;  %v2026_v18 = vld [vmem:[#allocation2 + $0x4f] sm:$0xff] }
 0x1a5   : > { %v1276_v30 = vpop.f32.mrf.mxu2  ;;  %6374 = vmatmul.msk.bf16.gmra.mxu1 %vm681_vm1, %v7026_v61  ;;  %v7268_v61 = vpack.c.bf16 %v1167_v59, %v1166_v28 }
 0x1a6   : > { %v1498_v11 = vpop.f32.mrf.mxu3  ;;  %v1338_v47 = vadd.f32 %v1276_v30, %v7160_v17 }
 0x1a8   : > { %v7259_v26 = vadd.f32 %v1498_v11, %v1338_v47 }
 0x1a9   : > { %v968_v12 = vpop.f32.mrf.mxu0 }
 0x1aa   : > { %v1108_v41 = vpop.f32.mrf.mxu1 }
 0x1ab   : > { %v7261_v43 = vadd.f32 %v1108_v41, %v968_v12  ;;  %v2025_v12 = vld [vmem:[#allocation2 + $0x47] sm:$0xff] }
 0x1ac   : > { %v2057_v59 = vpack.c.bf16 %v2026_v18, %v2025_v12  ;;  %v2027_v12 = vld [vmem:[#allocation2 + $0x67] sm:$0xff]  ;;  %v2028_v18 = vld [vmem:[#allocation2 + $0x6f] sm:$0xff] }
 0x1ad   : > { %v1278_v27 = vpop.f32.mrf.mxu2 }
 0x1ae   : > { %v1500_v37 = vpop.f32.mrf.mxu3  ;;  %v1339_v60 = vadd.f32 %v1278_v27, %v7169_v51  ;;  %v2247_v27 = vld [vmem:[#allocation2 + $0x48] sm:$0xff] }
 0x1b0   : > { %v7266_v45 = vadd.f32 %v1500_v37, %v1339_v60  ;;  %v2248_v37 = vld [vmem:[#allocation2 + $0x50] sm:$0xff] }
 0x1b1   : > { %v971_v17 = vpop.f32.mrf.mxu0 }
 0x1b2   : > { %6334 = vmatmul.msk.bf16.gmra.mxu2 %vm681_vm1, %v7268_v61  ;;  %v1111_v32 = vpop.f32.mrf.mxu1 }
 0x1b3   : > { %6351 = vmatmul.msk.bf16.gmra.mxu3 %vm681_vm1, %v7264_v10  ;;  %v7274_v62 = vadd.f32 %v1111_v32, %v971_v17 }
 0x1b4   : > { %6358 = vmatmul.msk.bf16.gmra.mxu0 %vm681_vm1, %v6984_v21 }
 0x1b5   : > { %v1281_v2 = vpop.f32.mrf.mxu2  ;;  %6375 = vmatmul.msk.bf16.gmra.mxu1 %vm681_vm1, %v7049_v22  ;;  %v2279_v22 = vpack.c.bf16 %v2248_v37, %v2247_v27  ;;  %v2249_v27 = vld [vmem:[#allocation2 + $0x68] sm:$0xff]  ;;  %v2250_v37 = vld [vmem:[#allocation2 + $0x70] sm:$0xff] }
 0x1b6   : > { %v1503_v48 = vpop.f32.mrf.mxu3  ;;  %v1340_v51 = vadd.f32 %v1281_v2, %v7180_v24 }
 0x1b8   : > { %v7281_v19 = vadd.f32 %v1503_v48, %v1340_v51 }
 0x1b9   : > { %v973_v30 = vpop.f32.mrf.mxu0 }
 0x1ba   : > { %v1113_v11 = vpop.f32.mrf.mxu1 }
 0x1bb   : > { %v7283_v47 = vadd.f32 %v1113_v11, %v973_v30 }
 0x1bd   : > { %v1283_v41 = vpop.f32.mrf.mxu2 }
 0x1be   : > { %v1505_v7 = vpop.f32.mrf.mxu3  ;;  %v1341_v28 = vadd.f32 %v1283_v41, %v7189_v3 }
 0x1c0   : > { %v7286_v21 = vadd.f32 %v1505_v7, %v1341_v28 }
 0x1c1   : > { %v976_v24 = vpop.f32.mrf.mxu0 }
 0x1c2   : > { %6387 = vmatmul.msk.bf16.vlgmr.msra.gmra.mxu2 %vm681_vm1, %v2057_v59  ;;  %v1116_v60 = vpop.f32.mrf.mxu1  ;;  %v2058_v59 = vpack.c.bf16 %v2028_v18, %v2027_v12  ;;  %v2029_v12 = vld [vmem:[#allocation2 + $0x87] sm:$0xff]  ;;  %v2030_v18 = vld [vmem:[#allocation2 + $0x8f] sm:$0xff] }
 0x1c3   : > { %6404 = vmatmul.msk.bf16.vlgmr.msra.gmra.mxu3 %vm681_vm1, %v2279_v22  ;;  %v7290_v17 = vadd.f32 %v1116_v60, %v976_v24 }
 0x1c4   : > { %6359 = vmatmul.msk.bf16.gmra.mxu0 %vm681_vm1, %v6994_v31 }
 0x1c5   : > { %v1286_v32 = vpop.f32.mrf.mxu2  ;;  %6376 = vmatmul.msk.bf16.gmra.mxu1 %vm681_vm1, %v7079_v0  ;;  %v2280_v0 = vpack.c.bf16 %v2250_v37, %v2249_v27  ;;  %v2251_v27 = vld [vmem:[#allocation2 + $0x88] sm:$0xff]  ;;  %v2252_v37 = vld [vmem:[#allocation2 + $0x90] sm:$0xff] }
 0x1c6   : > { %v1508_v2 = vpop.f32.mrf.mxu3  ;;  %v1342_v3 = vadd.f32 %v1286_v32, %v7200_v6 }
 0x1c8   : > { %v7297_v48 = vadd.f32 %v1508_v2, %v1342_v3 }
 0x1c9   : > { %v978_v51 = vpop.f32.mrf.mxu0 }
 0x1ca   : > { %v1118_v30 = vpop.f32.mrf.mxu1 }
 0x1cb   : > { %v7299_v11 = vadd.f32 %v1118_v30, %v978_v51 }
 0x1cd   : > { %v1288_v41 = vpop.f32.mrf.mxu2 }
 0x1ce   : > { %v1510_v7 = vpop.f32.mrf.mxu3  ;;  %v1343_v28 = vadd.f32 %v1288_v41, %v7211_v8 }
 0x1d0   : > { %v7302_v31 = vadd.f32 %v1510_v7, %v1343_v28 }
 0x1d1   : > { %v981_v6 = vpop.f32.mrf.mxu0 }
 0x1d2   : > { %6388 = vmatmul.msk.bf16.gmra.mxu2 %vm681_vm1, %v2058_v59  ;;  %v1121_v22 = vpop.f32.mrf.mxu1  ;;  %v2059_v59 = vpack.c.bf16 %v2030_v18, %v2029_v12  ;;  %v2032_v18 = vld [vmem:[#allocation2 + $0xaf] sm:$0xff] }
 0x1d3   : > { %6405 = vmatmul.msk.bf16.gmra.mxu3 %vm681_vm1, %v2280_v0  ;;  %v7306_v24 = vadd.f32 %v1121_v22, %v981_v6 }
 0x1d4   : > { %6360 = vmatmul.msk.bf16.gmra.mxu0 %vm681_vm1, %v7011_v46 }
 0x1d5   : > { %v1291_v60 = vpop.f32.mrf.mxu2  ;;  %6377 = vmatmul.msk.bf16.gmra.mxu1 %vm681_vm1, %v7101_v38  ;;  %v2281_v38 = vpack.c.bf16 %v2252_v37, %v2251_v27  ;;  %v2253_v27 = vld [vmem:[#allocation2 + $0xa8] sm:$0xff]  ;;  %v2254_v37 = vld [vmem:[#allocation2 + $0xb0] sm:$0xff] }
 0x1d6   : > { %v1513_v32 = vpop.f32.mrf.mxu3  ;;  %v1344_v8 = vadd.f32 %v1291_v60, %v7224_v20 }
 0x1d8   : > { %v7313_v2 = vadd.f32 %v1513_v32, %v1344_v8 }
 0x1d9   : > { %v983_v3 = vpop.f32.mrf.mxu0 }
 0x1da   : > { %v1123_v51 = vpop.f32.mrf.mxu1 }
 0x1db   : > { %v7315_v30 = vadd.f32 %v1123_v51, %v983_v3 }
 0x1dd   : > { %v1293_v41 = vpop.f32.mrf.mxu2 }
 0x1de   : > { %v1515_v7 = vpop.f32.mrf.mxu3  ;;  %v1345_v28 = vadd.f32 %v1293_v41, %v7233_v9  ;;  %v2031_v41 = vld [vmem:[#allocation2 + $0xa7] sm:$0xff] }
 0x1e0   : > { %v7318_v46 = vadd.f32 %v1515_v7, %v1345_v28 }
 0x1e1   : > { %v1690_v20 = vpop.f32.mrf.mxu0 }
 0x1e2   : > { %6389 = vmatmul.msk.bf16.gmra.mxu2 %vm681_vm1, %v2059_v59  ;;  %v1912_v0 = vpop.f32.mrf.mxu1  ;;  %v1770_v6 = vadd.f32 %v1690_v20, %v7122_v58 }
 0x1e3   : > { %6406 = vmatmul.msk.bf16.gmra.mxu3 %vm681_vm1, %v2281_v38 }
 0x1e4   : > { %v7323_v32 = vadd.f32 %v1912_v0, %v1770_v6  ;;  %6361 = vmatmul.msk.bf16.gmra.mxu0 %vm681_vm1, %v7030_v1 }
 0x1e5   : > { %v1296_v22 = vpop.f32.mrf.mxu2  ;;  %6378 = vmatmul.msk.bf16.gmra.mxu1 %vm681_vm1, %v7130_v14  ;;  %v2060_v14 = vpack.c.bf16 %v2032_v18, %v2031_v41  ;;  %v2256_v18 = vld [vmem:[#allocation2 + $0xd0] sm:$0xff] }
 0x1e6   : > { %v1518_v60 = vpop.f32.mrf.mxu3  ;;  %v1346_v9 = vadd.f32 %v1296_v22, %v7250_v40  ;;  %v2282_v40 = vpack.c.bf16 %v2254_v37, %v2253_v27 }
 0x1e8   : > { %v7330_v8 = vadd.f32 %v1518_v60, %v1346_v9 }
 0x1e9   : > { %v1692_v3 = vpop.f32.mrf.mxu0 }
 0x1ea   : > { %v1914_v51 = vpop.f32.mrf.mxu1  ;;  %v1771_v12 = vadd.f32 %v1692_v3, %v7128_v33 }
 0x1ec   : > { %v7333_v28 = vadd.f32 %v1914_v51, %v1771_v12  ;;  %v2033_v12 = vld [vmem:[#allocation2 + $0xc7] sm:$0xff] }
 0x1ed   : > { %v1298_v58 = vpop.f32.mrf.mxu2 }
 0x1ee   : > { %v1520_v7 = vpop.f32.mrf.mxu3  ;;  %v1347_v1 = vadd.f32 %v1298_v58, %v7261_v43  ;;  %v2034_v58 = vld [vmem:[#allocation2 + $0xcf] sm:$0xff] }
 0x1f0   : > { %v7336_v59 = vadd.f32 %v1520_v7, %v1347_v1  ;;  %v2255_v7 = vld [vmem:[#allocation2 + $0xc8] sm:$0xff] }
 0x1f1   : > { %v1695_v38 = vpop.f32.mrf.mxu0 }
 0x1f2   : > { %6390 = vmatmul.msk.bf16.gmra.mxu2 %vm681_vm1, %v2060_v14  ;;  %v1917_v33 = vpop.f32.mrf.mxu1  ;;  %v1772_v20 = vadd.f32 %v1695_v38, %v7147_v53 }
 0x1f3   : > { %6407 = vmatmul.msk.bf16.gmra.mxu3 %vm681_vm1, %v2282_v40 }
 0x1f4   : > { %v7341_v22 = vadd.f32 %v1917_v33, %v1772_v20  ;;  %6362 = vmatmul.msk.bf16.gmra.mxu0 %vm681_vm1, %v7051_v23  ;;  %v6420_v20 = vld [vmem:[%s9054_s2 + $0x20] sm:$0xf] }
 0x1f5   : > { %v1301_v0 = vpop.f32.mrf.mxu2  ;;  %6379 = vmatmul.msk.bf16.gmra.mxu1 %vm681_vm1, %v7154_v15  ;;  %v2061_v15 = vpack.c.bf16 %v2034_v58, %v2033_v12  ;;  %v2036_v12 = vld [vmem:[#allocation2 + $0xef] sm:$0xff] }
 0x1f6   : > { %v1523_v6 = vpop.f32.mrf.mxu3  ;;  %v1348_v43 = vadd.f32 %v1301_v0, %v7274_v62  ;;  %v2283_v62 = vpack.c.bf16 %v2256_v18, %v2255_v7  ;;  %v2568_v0 = vsel %vm903_vm0, %v6420_v20, 0  ;;  %v2037_v20 = vld [vmem:[#allocation2 + $0x107] sm:$0xff] }
 0x1f7   : > { %2577 = vmatpush.bf16.msra.mxu0 %v2568_v0 }
 0x1f8   : > { %v7348_v60 = vadd.f32 %v1523_v6, %v1348_v43 }
 0x1f9   : > { %v1697_v9 = vpop.f32.mrf.mxu0 }
 0x1fa   : > { %v1919_v3 = vpop.f32.mrf.mxu1  ;;  %v1773_v51 = vadd.f32 %v1697_v9, %v7152_v13 }
 0x1fc   : > { %v7351_v27 = vadd.f32 %v1919_v3, %v1773_v51  ;;  %v2035_v3 = vld [vmem:[#allocation2 + $0xe7] sm:$0xff] }
 0x1fd   : > { %v1303_v53 = vpop.f32.mrf.mxu2  ;;  %v2062_v7 = vpack.c.bf16 %v2036_v12, %v2035_v3 }
 0x1fe   : > { %v1525_v41 = vpop.f32.mrf.mxu3  ;;  %v1349_v23 = vadd.f32 %v1303_v53, %v7283_v47  ;;  %v2258_v53 = vld [vmem:[#allocation2 + $0xf0] sm:$0xff] }
 0x200   : > { %v7354_v37 = vadd.f32 %v1525_v41, %v1349_v23 }
 0x201   : > { %v1700_v1 = vpop.f32.mrf.mxu0 }
 0x202   : > { %6391 = vmatmul.msk.bf16.gmra.mxu2 %vm681_vm1, %v2061_v15  ;;  %v1922_v13 = vpop.f32.mrf.mxu1  ;;  %v1774_v14 = vadd.f32 %v1700_v1, %v7167_v25 }
 0x203   : > { %6408 = vmatmul.msk.bf16.gmra.mxu3 %vm681_vm1, %v2283_v62 }
 0x204   : > { %v7359_v33 = vadd.f32 %v1922_v13, %v1774_v14  ;;  %6363 = vmatmul.msk.bf16.gmra.mxu0 %vm681_vm1, %v7081_v5 }
 0x205   : > { %v1306_v40 = vpop.f32.mrf.mxu2  ;;  %6380 = vmatmul.msk.bf16.gmra.mxu1 %vm681_vm1, %v7174_v63  ;;  %v2257_v63 = vld [vmem:[#allocation2 + $0xe8] sm:$0xff] }
 0x206   : > { %v1528_v38 = vpop.f32.mrf.mxu3  ;;  %v1350_v47 = vadd.f32 %v1306_v40, %v7290_v17  ;;  %v2284_v18 = vpack.c.bf16 %v2258_v53, %v2257_v63 }
 0x208   : > { %v7370_v6 = vadd.f32 %v1528_v38, %v1350_v47 }
 0x209   : > { %v1702_v25 = vpop.f32.mrf.mxu0 }
 0x20a   : > { %v1924_v43 = vpop.f32.mrf.mxu1  ;;  %v1775_v9 = vadd.f32 %v1702_v25, %v7172_v55  ;;  %v2038_v25 = vld [vmem:[#allocation2 + $0x10f] sm:$0xff] }
 0x20c   : > { %v7373_v17 = vadd.f32 %v1924_v43, %v1775_v9  ;;  %v2259_v43 = vld [vmem:[#allocation2 + $0x108] sm:$0xff]  ;;  %v2260_v9 = vld [vmem:[#allocation2 + $0x110] sm:$0xff] }
 0x20d   : > { %v1308_v5 = vpop.f32.mrf.mxu2 }
 0x20e   : > { %v1530_v51 = vpop.f32.mrf.mxu3  ;;  %v1351_v41 = vadd.f32 %v1308_v5, %v7299_v11 }
 0x210   : > { %v7376_v58 = vadd.f32 %v1530_v51, %v1351_v41 }
 0x211   : > { %v1705_v23 = vpop.f32.mrf.mxu0 }
 0x212   : > { %6392 = vmatmul.msk.bf16.gmra.mxu2 %vm681_vm1, %v2062_v7  ;;  %v1927_v55 = vpop.f32.mrf.mxu1  ;;  %v1776_v15 = vadd.f32 %v1705_v23, %v7187_v4 }
 0x213   : > { %6409 = vmatmul.msk.bf16.gmra.mxu3 %vm681_vm1, %v2284_v18 }
 0x214   : > { %v7381_v13 = vadd.f32 %v1927_v55, %v1776_v15  ;;  %6364 = vmatmul.msk.bf16.gmra.mxu0 %vm681_vm1, %v7103_v39 }
 0x215   : > { %v1311_v62 = vpop.f32.mrf.mxu2  ;;  %6381 = vmatmul.msk.bf16.gmra.mxu1 %vm681_vm1, %v7194_v34  ;;  %v2063_v34 = vpack.c.bf16 %v2038_v25, %v2037_v20  ;;  %v1607_v20 = vld [vmem:[#allocation2 + $0x1d0] sm:$0xff] }
 0x216   : > { %v1533_v1 = vpop.f32.mrf.mxu3  ;;  %v1352_v11 = vadd.f32 %v1311_v62, %v7306_v24  ;;  %v2285_v24 = vpack.c.bf16 %v2260_v9, %v2259_v43 }
 0x218   : > { %v7388_v14 = vadd.f32 %v1533_v1, %v1352_v11  ;;  %v2040_v1 = vld [vmem:[#allocation2 + $0x12f] sm:$0xff] }
 0x219   : > { %v1707_v40 = vpop.f32.mrf.mxu0  ;;  %v2261_v11 = vld [vmem:[#allocation2 + $0x128] sm:$0xff] }
 0x21a   : > { %v1929_v38 = vpop.f32.mrf.mxu1  ;;  %v1777_v47 = vadd.f32 %v1707_v40, %v7192_v50  ;;  %v2262_v40 = vld [vmem:[#allocation2 + $0x130] sm:$0xff] }
 0x21c   : > { %v7391_v3 = vadd.f32 %v1929_v38, %v1777_v47  ;;  %v1606_v47 = vld [vmem:[#allocation2 + $0x1c8] sm:$0xff] }
 0x21d   : > { %v1313_v4 = vpop.f32.mrf.mxu2  ;;  %v7419_v25 = vpack.c.bf16 %v1607_v20, %v1606_v47 }
 0x21e   : > { %v1535_v0 = vpop.f32.mrf.mxu3  ;;  %v1353_v39 = vadd.f32 %v1313_v4, %v7315_v30 }
 0x220   : > { %v7394_v5 = vadd.f32 %v1535_v0, %v1353_v39 }
 0x221   : > { %v1710_v51 = vpop.f32.mrf.mxu0 }
 0x222   : > { %6393 = vmatmul.msk.bf16.gmra.mxu2 %vm681_vm1, %v2063_v34  ;;  %v1932_v50 = vpop.f32.mrf.mxu1  ;;  %v1778_v12 = vadd.f32 %v1710_v51, %v7208_v54  ;;  %v2039_v54 = vld [vmem:[#allocation2 + $0x127] sm:$0xff] }
 0x223   : > { %6410 = vmatmul.msk.bf16.gmra.mxu3 %vm681_vm1, %v2285_v24 }
 0x224   : > { %v7399_v41 = vadd.f32 %v1932_v50, %v1778_v12  ;;  %6365 = vmatmul.msk.bf16.gmra.mxu0 %vm681_vm1, %v7132_v36  ;;  %v2041_v50 = vld [vmem:[#allocation2 + $0x147] sm:$0xff] }
 0x225   : > { %v1316_v63 = vpop.f32.mrf.mxu2  ;;  %6382 = vmatmul.msk.bf16.gmra.mxu1 %vm681_vm1, %v7218_v49  ;;  %v2064_v49 = vpack.c.bf16 %v2040_v1, %v2039_v54  ;;  %v1609_v1 = vld [vmem:[#allocation2 + $0x1f0] sm:$0xff] }
 0x226   : > { %v1538_v53 = vpop.f32.mrf.mxu3  ;;  %v1354_v30 = vadd.f32 %v1316_v63, %v7065_v35  ;;  %v2286_v35 = vpack.c.bf16 %v2262_v40, %v2261_v11 }
 0x228   : > { %v7406_v7 = vadd.f32 %v1538_v53, %v1354_v30  ;;  %v2042_v53 = vld [vmem:[#allocation2 + $0x14f] sm:$0xff] }
 0x229   : > { %v1712_v18 = vpop.f32.mrf.mxu0  ;;  %v2263_v30 = vld [vmem:[#allocation2 + $0x148] sm:$0xff] }
 0x22a   : > { %v7408_v23 = vpop.f32.mrf.mxu1  ;;  %v7411_v55 = vadd.f32 %v1712_v18, %v7216_v52  ;;  %v2264_v18 = vld [vmem:[#allocation2 + $0x150] sm:$0xff] }
 0x22d   : > { %v1318_v15 = vpop.f32.mrf.mxu2 }
 0x22e   : > { %v1540_v62 = vpop.f32.mrf.mxu3  ;;  %v1355_v36 = vadd.f32 %v1318_v15, %v7077_v56 }
 0x230   : > { %v7414_v38 = vadd.f32 %v1540_v62, %v1355_v36  ;;  %v1608_v62 = vld [vmem:[#allocation2 + $0x1e8] sm:$0xff] }
 0x231   : > { %v1715_v52 = vpop.f32.mrf.mxu0  ;;  %v7441_v36 = vpack.c.bf16 %v1609_v1, %v1608_v62 }
 0x232   : > { %6394 = vmatmul.msk.bf16.gmra.mxu2 %vm681_vm1, %v2064_v49  ;;  %v1937_v4 = vpop.f32.mrf.mxu1  ;;  %v1780_v0 = vadd.f32 %v1715_v52, %v7231_v42 }
 0x233   : > { %6411 = vmatmul.msk.bf16.gmra.mxu3 %vm681_vm1, %v2286_v35 }
 0x234   : > { %v7421_v39 = vadd.f32 %v1937_v4, %v1780_v0  ;;  %6366 = vmatmul.msk.bf16.gmra.mxu0 %vm681_vm1, %v7419_v25  ;;  %v2043_v0 = vld [vmem:[#allocation2 + $0x167] sm:$0xff] }
 0x235   : > { %v1321_v43 = vpop.f32.mrf.mxu2  ;;  %6383 = vmatmul.msk.bf16.gmra.mxu1 %vm681_vm1, %v7238_v57  ;;  %v2065_v57 = vpack.c.bf16 %v2042_v53, %v2041_v50  ;;  %v2266_v50 = vld [vmem:[#allocation2 + $0x170] sm:$0xff] }
 0x236   : > { %v1543_v9 = vpop.f32.mrf.mxu3  ;;  %v1356_v56 = vadd.f32 %v1321_v43, %v7095_v16  ;;  %v2287_v16 = vpack.c.bf16 %v2264_v18, %v2263_v30  ;;  %v1611_v30 = vld [vmem:[#allocation2 + $0x210] sm:$0xff] }
 0x237   : > { %v1832_v18 = vld [vmem:[#allocation2 + $0x209] sm:$0xff] }
 0x238   : > { %v7428_v34 = vadd.f32 %v1543_v9, %v1356_v56  ;;  %v2044_v56 = vld [vmem:[#allocation2 + $0x16f] sm:$0xff] }
 0x239   : > { %v1717_v24 = vpop.f32.mrf.mxu0 }
 0x23a   : > { %v7430_v51 = vpop.f32.mrf.mxu1  ;;  %v7433_v42 = vadd.f32 %v1717_v24, %v7236_v44  ;;  %v2265_v24 = vld [vmem:[#allocation2 + $0x168] sm:$0xff] }
 0x23b   : > { %v2288_v53 = vpack.c.bf16 %v2266_v50, %v2265_v24  ;;  %v2268_v24 = vld [vmem:[#allocation2 + $0x190] sm:$0xff] }
 0x23d   : > { %v1323_v12 = vpop.f32.mrf.mxu2 }
 0x23e   : > { %v1545_v63 = vpop.f32.mrf.mxu3  ;;  %v1357_v54 = vadd.f32 %v1323_v12, %v7099_v29 }
 0x240   : > { %v7436_v15 = vadd.f32 %v1545_v63, %v1357_v54  ;;  %v1833_v54 = vld [vmem:[#allocation2 + $0x211] sm:$0xff] }
 0x241   : > { %v1720_v44 = vpop.f32.mrf.mxu0  ;;  %v7465_v1 = vpack.c.bf16 %v1833_v54, %v1832_v18 }
 0x242   : > { %6395 = vmatmul.msk.bf16.gmra.mxu2 %vm681_vm1, %v2065_v57  ;;  %v1942_v11 = vpop.f32.mrf.mxu1  ;;  %v1782_v40 = vadd.f32 %v1720_v44, %v7259_v26 }
 0x243   : > { %6412 = vmatmul.msk.bf16.gmra.mxu3 %vm681_vm1, %v2287_v16 }
 0x244   : > { %v7443_v47 = vadd.f32 %v1942_v11, %v1782_v40  ;;  %6367 = vmatmul.msk.bf16.gmra.mxu0 %vm681_vm1, %v7441_v36 }
 0x245   : > { %v2135_v49 = vpop.f32.mrf.mxu2  ;;  %6384 = vmatmul.msk.bf16.gmra.mxu1 %vm681_vm1, %v7268_v61  ;;  %v1610_v61 = vld [vmem:[#allocation2 + $0x208] sm:$0xff] }
 0x246   : > { %v2357_v35 = vpop.f32.mrf.mxu3  ;;  %v2215_v29 = vadd.f32 %v2135_v49, %v7323_v32  ;;  %v2066_v32 = vpack.c.bf16 %v2044_v56, %v2043_v0  ;;  %v7463_v62 = vpack.c.bf16 %v1611_v30, %v1610_v61  ;;  %v2267_v56 = vld [vmem:[#allocation2 + $0x188] sm:$0xff] }
 0x248   : > { %v7450_v20 = vadd.f32 %v2357_v35, %v2215_v29 }
 0x249   : > { %v1722_v52 = vpop.f32.mrf.mxu0 }
 0x24a   : > { %v7452_v4 = vpop.f32.mrf.mxu1  ;;  %v7455_v26 = vadd.f32 %v1722_v52, %v7266_v45  ;;  %v2045_v52 = vld [vmem:[#allocation2 + $0x187] sm:$0xff] }
 0x24d   : > { %v2137_v43 = vpop.f32.mrf.mxu2 }
 0x24e   : > { %v2359_v9 = vpop.f32.mrf.mxu3  ;;  %v2216_v12 = vadd.f32 %v2137_v43, %v7333_v28 }
 0x250   : > { %v7458_v63 = vadd.f32 %v2359_v9, %v2216_v12  ;;  %v2046_v9 = vld [vmem:[#allocation2 + $0x18f] sm:$0xff] }
 0x251   : > { %v1725_v45 = vpop.f32.mrf.mxu0  ;;  %v2067_v61 = vpack.c.bf16 %v2046_v9, %v2045_v52  ;;  %v2047_v52 = vld [vmem:[#allocation2 + $0x1a7] sm:$0xff] }
 0x252   : > { %6396 = vmatmul.msk.bf16.gmra.mxu2 %vm681_vm1, %v2066_v32  ;;  %v1947_v57 = vpop.f32.mrf.mxu1  ;;  %v1784_v16 = vadd.f32 %v1725_v45, %v7281_v19  ;;  %v2469_v32 = vld [vmem:[#allocation2 + $0x49] sm:$0xff] }
 0x253   : > { %6413 = vmatmul.msk.bf16.gmra.mxu3 %vm681_vm1, %v2288_v53  ;;  %v2470_v53 = vld [vmem:[#allocation2 + $0x51] sm:$0xff]  ;;  %v2269_v9 = vld [vmem:[#allocation2 + $0x1a8] sm:$0xff] }
 0x254   : > { %v7467_v11 = vadd.f32 %v1947_v57, %v1784_v16  ;;  %6368 = vmatmul.msk.bf16.gmra.mxu0 %vm681_vm1, %v7463_v62  ;;  %v2501_v54 = vpack.c.bf16 %v2470_v53, %v2469_v32  ;;  %v2472_v32 = vld [vmem:[#allocation2 + $0x71] sm:$0xff] }
 0x255   : > { %v2140_v28 = vpop.f32.mrf.mxu2  ;;  %6385 = vmatmul.msk.bf16.gmra.mxu1 %vm681_vm1, %v7465_v1 }
 0x256   : > { %v2362_v44 = vpop.f32.mrf.mxu3  ;;  %v2217_v40 = vadd.f32 %v2140_v28, %v7341_v22  ;;  %v2289_v22 = vpack.c.bf16 %v2268_v24, %v2267_v56  ;;  %v2270_v56 = vld [vmem:[#allocation2 + $0x1b0] sm:$0xff] }
 0x258   : > { %v7474_v49 = vadd.f32 %v2362_v44, %v2217_v40 }
 0x259   : > { %v1727_v35 = vpop.f32.mrf.mxu0 }
 0x25a   : > { %v7476_v19 = vpop.f32.mrf.mxu1  ;;  %v7479_v29 = vadd.f32 %v1727_v35, %v7286_v21 }
 0x25d   : > { %v2142_v0 = vpop.f32.mrf.mxu2 }
 0x25e   : > { %v2364_v43 = vpop.f32.mrf.mxu3  ;;  %v2218_v50 = vadd.f32 %v2142_v0, %v7351_v27 }
 0x260   : > { %v7482_v12 = vadd.f32 %v2364_v43, %v2218_v50  ;;  %v2048_v43 = vld [vmem:[#allocation2 + $0x1af] sm:$0xff] }
 0x261   : > { %v1730_v21 = vpop.f32.mrf.mxu0 }
 0x262   : > { %6397 = vmatmul.msk.bf16.gmra.mxu2 %vm681_vm1, %v2067_v61  ;;  %v1952_v30 = vpop.f32.mrf.mxu1  ;;  %v1786_v18 = vadd.f32 %v1730_v21, %v7297_v48  ;;  %v2068_v61 = vpack.c.bf16 %v2048_v43, %v2047_v52  ;;  %v2050_v43 = vld [vmem:[#allocation2 + $0x1cf] sm:$0xff] }
 0x263   : > { %6414 = vmatmul.msk.bf16.gmra.mxu3 %vm681_vm1, %v2289_v22  ;;  %v2471_v22 = vld [vmem:[#allocation2 + $0x69] sm:$0xff] }
 0x264   : > { %v7487_v16 = vadd.f32 %v1952_v30, %v1786_v18  ;;  %6421 = vmatmul.msk.bf16.vlgmr.msra.gmra.mxu0 %vm681_vm1, %v2501_v54  ;;  %v2502_v30 = vpack.c.bf16 %v2472_v32, %v2471_v22 }
 0x265   : > { %v2145_v45 = vpop.f32.mrf.mxu2 }
 0x266   : > { %v2367_v57 = vpop.f32.mrf.mxu3  ;;  %v2219_v27 = vadd.f32 %v2145_v45, %v7359_v33  ;;  %v2290_v33 = vpack.c.bf16 %v2270_v56, %v2269_v9 }
 0x268   : > { %v7491_v28 = vadd.f32 %v2367_v57, %v2219_v27 }
 0x269   : > { %v1732_v44 = vpop.f32.mrf.mxu0 }
 0x26a   : > { %v7493_v40 = vpop.f32.mrf.mxu1  ;;  %v7496_v35 = vadd.f32 %v1732_v44, %v7302_v31 }
 0x26d   : > { %v2147_v0 = vpop.f32.mrf.mxu2 }
 0x26e   : > { %v2369_v48 = vpop.f32.mrf.mxu3  ;;  %v2220_v24 = vadd.f32 %v2147_v0, %v7373_v17 }
 0x270   : > { %v7499_v50 = vadd.f32 %v2369_v48, %v2220_v24 }
 0x271   : > { %v1735_v31 = vpop.f32.mrf.mxu0 }
 0x272   : > { %6398 = vmatmul.msk.bf16.gmra.mxu2 %vm681_vm1, %v2068_v61  ;;  %v1957_v53 = vpop.f32.mrf.mxu1  ;;  %v1788_v21 = vadd.f32 %v1735_v31, %v7313_v2  ;;  %v2049_v2 = vld [vmem:[#allocation2 + $0x1c7] sm:$0xff] }
 0x273   : > { %6415 = vmatmul.msk.bf16.gmra.mxu3 %vm681_vm1, %v2290_v33  ;;  %v2069_v24 = vpack.c.bf16 %v2050_v43, %v2049_v2  ;;  %v2473_v61 = vld [vmem:[#allocation2 + $0x89] sm:$0xff]  ;;  %v2474_v33 = vld [vmem:[#allocation2 + $0x91] sm:$0xff] }
 0x274   : > { %v7504_v45 = vadd.f32 %v1957_v53, %v1788_v21  ;;  %6422 = vmatmul.msk.bf16.gmra.mxu0 %vm681_vm1, %v2502_v30  ;;  %v2503_v32 = vpack.c.bf16 %v2474_v33, %v2473_v61  ;;  %v2475_v61 = vld [vmem:[#allocation2 + $0xa9] sm:$0xff] }
 0x275   : > { %v2150_v18 = vpop.f32.mrf.mxu2 }
 0x276   : > { %v2372_v54 = vpop.f32.mrf.mxu3  ;;  %v2221_v17 = vadd.f32 %v2150_v18, %v7381_v13 }
 0x278   : > { %v7508_v57 = vadd.f32 %v2372_v54, %v2221_v17 }
 0x279   : > { %v1737_v27 = vpop.f32.mrf.mxu0 }
 0x27a   : > { %v7510_v44 = vpop.f32.mrf.mxu1  ;;  %v7513_v52 = vadd.f32 %v1737_v27, %v7318_v46 }
 0x27d   : > { %v2152_v0 = vpop.f32.mrf.mxu2 }
 0x27e   : > { %v2374_v48 = vpop.f32.mrf.mxu3  ;;  %v2222_v9 = vadd.f32 %v2152_v0, %v7391_v3  ;;  %v2051_v0 = vld [vmem:[#allocation2 + $0x1e7] sm:$0xff] }
 0x280   : > { %v7516_v56 = vadd.f32 %v2374_v48, %v2222_v9  ;;  %v2052_v48 = vld [vmem:[#allocation2 + $0x1ef] sm:$0xff] }
 0x281   : > { %v1740_v13 = vpop.f32.mrf.mxu0 }
 0x282   : > { %6399 = vmatmul.msk.bf16.gmra.mxu2 %vm681_vm1, %v2069_v24  ;;  %v1962_v22 = vpop.f32.mrf.mxu1  ;;  %v1790_v46 = vadd.f32 %v1740_v13, %v7330_v8  ;;  %v2070_v24 = vpack.c.bf16 %v2052_v48, %v2051_v0 }
 0x283   : > { %6416 = vmatmul.msk.bf16.gmra.mxu3 %vm681_vm1, %v7419_v25  ;;  %v2001_v25 = vadd.f32 %v7408_v23, %v7411_v55  ;;  %v2476_v23 = vld [vmem:[#allocation2 + $0xb1] sm:$0xff] }
 0x284   : > { %v7522_v21 = vadd.f32 %v1962_v22, %v1790_v46  ;;  %6423 = vmatmul.msk.bf16.gmra.mxu0 %vm681_vm1, %v2503_v32  ;;  %v2504_v13 = vpack.c.bf16 %v2476_v23, %v2475_v61  ;;  %v2277_v23 = vld [vmem:[#allocation2 + $0x228] sm:$0xff] }
 0x285   : > { %v2155_v31 = vpop.f32.mrf.mxu2 }
 0x286   : > { %v2377_v53 = vpop.f32.mrf.mxu3  ;;  %v2223_v3 = vadd.f32 %v2155_v31, %v7399_v41  ;;  %v6438_v41 = vld [vmem:[%s9054_s2 + $0x28] sm:$0xf] }
 0x287   : > { %v2976_v43 = vsel %vm903_vm0, %v6438_v41, 0 }
 0x288   : > { %v7526_v30 = vadd.f32 %v2377_v53, %v2223_v3  ;;  %2985 = vmatpush.bf16.msra.mxu1 %v2976_v43  ;;  %v2055_v43 = vld [vmem:[#allocation2 + $0x227] sm:$0xff] }
 0x289   : > { %v1742_v18 = vpop.f32.mrf.mxu0 }
 0x28a   : > { %v7528_v54 = vpop.f32.mrf.mxu1  ;;  %v7533_v17 = vadd.f32 %v1742_v18, %v7336_v59 }
 0x28b   : > { %9072 = vst [vmem:[#allocation3_spill] sm:$0xff] %v7528_v54 }
 0x28c   : > { %9073 = vst [vmem:[#allocation4_spill] sm:$0xff] %v7533_v17 }
 0x28d   : > { %v2157_v8 = vpop.f32.mrf.mxu2 }
 0x28e   : > { %v2379_v27 = vpop.f32.mrf.mxu3  ;;  %v2224_v2 = vadd.f32 %v2157_v8, %v2001_v25  ;;  %v2478_v25 = vld [vmem:[#allocation2 + $0xd1] sm:$0xff] }
 0x290   : > { %v7539_v9 = vadd.f32 %v2379_v27, %v2224_v2 }
 0x291   : > { %v1745_v59 = vpop.f32.mrf.mxu0 }
 0x292   : > { %6400 = vmatmul.msk.bf16.gmra.mxu2 %vm681_vm1, %v2070_v24  ;;  %v1967_v55 = vpop.f32.mrf.mxu1  ;;  %v1792_v33 = vadd.f32 %v1745_v59, %v7348_v60  ;;  %v2477_v60 = vld [vmem:[#allocation2 + $0xc9] sm:$0xff] }
 0x293   : > { %6417 = vmatmul.msk.bf16.gmra.mxu3 %vm681_vm1, %v7441_v36  ;;  %v2505_v48 = vpack.c.bf16 %v2478_v25, %v2477_v60  ;;  %v2480_v60 = vld [vmem:[#allocation2 + $0xf1] sm:$0xff] }
 0x294   : > { %v7549_v32 = vadd.f32 %v1967_v55, %v1792_v33  ;;  %6424 = vmatmul.msk.bf16.gmra.mxu0 %vm681_vm1, %v2504_v13 }
 0x295   : > { %v7545_v22 = vpop.f32.mrf.mxu2 }
 0x296   : > { %v7547_v46 = vpop.f32.mrf.mxu3  ;;  %9074 = vst [vmem:[#allocation5_spill] sm:$0xff] %v7549_v32  ;;  %v2487_v32 = vld [vmem:[#allocation2 + $0x169] sm:$0xff] }
 0x299   : > { %v1747_v31 = vpop.f32.mrf.mxu0 }
 0x29a   : > { %v7552_v53 = vpop.f32.mrf.mxu1  ;;  %v7555_v3 = vadd.f32 %v1747_v31, %v7354_v37  ;;  %v2479_v31 = vld [vmem:[#allocation2 + $0xe9] sm:$0xff] }
 0x29b   : > { %9075 = vst [vmem:[#allocation6_spill] sm:$0xff] %v7552_v53 }
 0x29c   : > { %9076 = vst [vmem:[#allocation7_spill] sm:$0xff] %v7555_v3 }
 0x29d   : > { %v7557_v36 = vpop.f32.mrf.mxu2 }
 0x29e   : > { %v7559_v18 = vpop.f32.mrf.mxu3 }
 0x2a1   : > { %v1750_v8 = vpop.f32.mrf.mxu0 }
 0x2a2   : > { %6401 = vmatmul.msk.bf16.gmra.mxu2 %vm681_vm1, %v7264_v10  ;;  %v1972_v27 = vpop.f32.mrf.mxu1  ;;  %v1794_v0 = vadd.f32 %v1750_v8, %v7370_v6  ;;  %v2056_v10 = vld [vmem:[#allocation2 + $0x22f] sm:$0xff] }
 0x2a3   : > { %6418 = vmatmul.msk.bf16.gmra.mxu3 %vm681_vm1, %v7463_v62  ;;  %v2278_v62 = vld [vmem:[#allocation2 + $0x230] sm:$0xff]  ;;  %v2072_v33 = vpack.c.bf16 %v2056_v10, %v2055_v43 }
 0x2a4   : > { %v7570_v41 = vadd.f32 %v1972_v27, %v1794_v0  ;;  %6425 = vmatmul.msk.bf16.gmra.mxu0 %vm681_vm1, %v2505_v48  ;;  %v2294_v13 = vpack.c.bf16 %v2278_v62, %v2277_v23  ;;  %v2506_v0 = vpack.c.bf16 %v2480_v60, %v2479_v31  ;;  %v2827_v31 = vld [vmem:[#allocation2 + $0x7] sm:$0xff] }
 0x2a5   : > { %v7566_v2 = vpop.f32.mrf.mxu2 }
 0x2a6   : > { %v7568_v37 = vpop.f32.mrf.mxu3  ;;  %9077 = vst [vmem:[#allocation8_spill] sm:$0xff] %v7570_v41 }
 0x2a9   : > { %v1752_v24 = vpop.f32.mrf.mxu0 }
 0x2aa   : > { %v7573_v61 = vpop.f32.mrf.mxu1  ;;  %v7576_v59 = vadd.f32 %v1752_v24, %v7376_v58 }
 0x2ab   : > { %9078 = vst [vmem:[#allocation9_spill] sm:$0xff] %v7573_v61 }
 0x2ac   : > { %9079 = vst [vmem:[#allocation10_spill] sm:$0xff] %v7576_v59 }
 0x2ad   : > { %v7578_v6 = vpop.f32.mrf.mxu2 }
 0x2ae   : > { %v7580_v55 = vpop.f32.mrf.mxu3 }
 0x2b1   : > { %v1755_v25 = vpop.f32.mrf.mxu0 }
 0x2b2   : > { %6402 = vmatmul.msk.bf16.gmra.mxu2 %vm681_vm1, %v2072_v33  ;;  %v1977_v8 = vpop.f32.mrf.mxu1  ;;  %v1796_v27 = vadd.f32 %v1755_v25, %v7388_v14  ;;  %v6437_v14 = vld [vmem:[%s9054_s2 + $0x24] sm:$0xf] }
 0x2b3   : > { %6419 = vmatmul.msk.bf16.gmra.mxu3 %vm681_vm1, %v2294_v13  ;;  %v6471_v13 = vld [vmem:[%s9054_s2 + $0x2c] sm:$0xf]  ;;  %v3116_v60 = vsel %vm903_vm0, %v6437_v14, 0 }
 0x2b4   : > { %v7589_v24 = vadd.f32 %v1977_v8, %v1796_v27  ;;  %6426 = vmatmul.msk.bf16.gmra.mxu0 %vm681_vm1, %v2506_v0  ;;  %v3306_v25 = vsel %vm903_vm0, %v6471_v13, 0  ;;  %v2828_v8 = vld [vmem:[#allocation2 + $0xf] sm:$0xff]  ;;  %3125 = vmatpush.bf16.msrb.mxu2 %v3116_v60 }
 0x2b5   : > { %v7585_v48 = vpop.f32.mrf.mxu2  ;;  %3315 = vmatpush.bf16.msrb.mxu3 %v3306_v25  ;;  %v3207_v27 = vld [vmem:[#allocation2 + $0x9] sm:$0xff]  ;;  %v3208_v0 = vld [vmem:[#allocation2 + $0x11] sm:$0xff] }
 0x2b6   : > { %v7587_v58 = vpop.f32.mrf.mxu3  ;;  %9080 = vst [vmem:[#allocation11_spill] sm:$0xff] %v7589_v24  ;;  %v2878_v25 = vld [vmem:[#allocation2 + $0x10] sm:$0xff] }
 0x2b9   : > { %v1757_v43 = vpop.f32.mrf.mxu0 }
 0x2ba   : > { %v7592_v10 = vpop.f32.mrf.mxu1  ;;  %v7595_v23 = vadd.f32 %v1757_v43, %v7394_v5  ;;  %v2859_v5 = vpack.c.bf16 %v2828_v8, %v2827_v31  ;;  %v2481_v43 = vld [vmem:[#allocation2 + $0x109] sm:$0xff] }
 0x2bb   : > { %9081 = vst [vmem:[#allocation12_spill] sm:$0xff] %v7592_v10  ;;  %v2482_v10 = vld [vmem:[#allocation2 + $0x111] sm:$0xff]  ;;  %v2877_v31 = vld [vmem:[#allocation2 + $0x8] sm:$0xff] }
 0x2bc   : > { %9082 = vst [vmem:[#allocation13_spill] sm:$0xff] %v7595_v23  ;;  %v3239_v23 = vpack.c.bf16 %v3208_v0, %v3207_v27  ;;  %v2507_v14 = vpack.c.bf16 %v2482_v10, %v2481_v43  ;;  %v2909_v8 = vpack.c.bf16 %v2878_v25, %v2877_v31  ;;  %v2483_v10 = vld [vmem:[#allocation2 + $0x129] sm:$0xff] }
 0x2bd   : > { %v7597_v62 = vpop.f32.mrf.mxu2 }
 0x2be   : > { %v7599_v33 = vpop.f32.mrf.mxu3  ;;  %6439 = vmatmul.msk.bf16.vlgmr.msra.gmra.mxu1 %vm681_vm1, %v2909_v8 }
 0x2c1   : > { %v1760_v24 = vpop.f32.mrf.mxu0 }
 0x2c2   : > { %v1982_v61 = vpop.f32.mrf.mxu1  ;;  %6455 = vmatmul.msk.bf16.vlgmr.msrb.gmra.mxu2 %vm681_vm1, %v2859_v5  ;;  %v1798_v59 = vadd.f32 %v1760_v24, %v7406_v7 }
 0x2c3   : > { %6472 = vmatmul.msk.bf16.vlgmr.msrb.gmra.mxu3 %vm681_vm1, %v3239_v23 }
 0x2c4   : > { %v7616_v60 = vadd.f32 %v1982_v61, %v1798_v59  ;;  %6427 = vmatmul.msk.bf16.gmra.mxu0 %vm681_vm1, %v2507_v14  ;;  %v2484_v61 = vld [vmem:[#allocation2 + $0x131] sm:$0xff] }
 0x2c5   : > { %v7612_v41 = vpop.f32.mrf.mxu2  ;;  %v2508_v14 = vpack.c.bf16 %v2484_v61, %v2483_v10  ;;  %v7647_v10 = vld [vmem:[%s9055_s3] ss:$0 sm:$0xff] }
 0x2c6   : > { %v7614_v13 = vpop.f32.mrf.mxu3  ;;  %9083 = vst [vmem:[#allocation14_spill] sm:$0xff] %v7616_v60  ;;  %v2485_v60 = vld [vmem:[#allocation2 + $0x149] sm:$0xff] }
 0x2c9   : > { %v1762_v27 = vpop.f32.mrf.mxu0 }
 0x2ca   : > { %v7619_v0 = vpop.f32.mrf.mxu1  ;;  %v7622_v5 = vadd.f32 %v1762_v27, %v7414_v38 }
 0x2cb   : > { %9084 = vst [vmem:[#allocation15_spill] sm:$0xff] %v7619_v0 }
 0x2cc   : > { %9085 = vst [vmem:[#allocation16_spill] sm:$0xff] %v7622_v5 }
 0x2cd   : > { %v7625_v7 = vpop.f32.mrf.mxu2 }
 0x2ce   : > { %v7627_v24 = vpop.f32.mrf.mxu3 }
 0x2d1   : > { %v1765_v59 = vpop.f32.mrf.mxu0 }
 0x2d2   : > { %v1800_v23 = vadd.f32 %v1765_v59, %v7428_v34  ;;  %v1987_v43 = vpop.f32.mrf.mxu1  ;;  %v2486_v34 = vld [vmem:[#allocation2 + $0x151] sm:$0xff] }
 0x2d4   : > { %v7634_v0 = vadd.f32 %v1987_v43, %v1800_v23  ;;  %6428 = vmatmul.msk.bf16.gmra.mxu0 %vm681_vm1, %v2508_v14  ;;  %v7653_v23 = vld [vmem:[%s9056_s4] ss:$0 sm:$0xff] }
 0x2d5   : > { %v7630_v31 = vpop.f32.mrf.mxu2 }
 0x2d6   : > { %v7632_v25 = vpop.f32.mrf.mxu3  ;;  %9086 = vst [vmem:[#allocation17_spill] sm:$0xff] %v7634_v0 }
 0x2d9   : > { %v1767_v38 = vpop.f32.mrf.mxu0 }
 0x2da   : > { %v7638_v8 = vadd.f32 %v1767_v38, %v7436_v15  ;;  %v2509_v15 = vpack.c.bf16 %v2486_v34, %v2485_v60 }
 0x2dc   : > { %9087 = vst [vmem:[#allocation18_spill] sm:$0xff] %v7638_v8 }
 0x2dd   : > { %v7640_v27 = vpop.f32.mrf.mxu2 }
 0x2de   : > { %v7642_v5 = vpop.f32.mrf.mxu3 }
 0x2e1   : > { %v2579_v61 = vpop.f32.mrf.mxu0 }
 0x2e2   : > { %v2659_v59 = vadd.f32 %v2579_v61, %v7450_v20 }
 0x2e4   : > { %v2695_v38 = vmul.f32 %v7647_v10, %v2659_v59  ;;  %6429 = vmatmul.msk.bf16.gmra.mxu0 %vm681_vm1, %v2509_v15  ;;  %v2488_v59 = vld [vmem:[#allocation2 + $0x171] sm:$0xff] }
 0x2e5   : > { %v7655_v43 = vpop.f32.mrf.mxu2 }
 0x2e6   : > { %v7657_v14 = vpop.f32.mrf.mxu3  ;;  %v2731_v8 = vadd.f32 %v7653_v23, %v2695_v38  ;;  %v2510_v38 = vpack.c.bf16 %v2488_v59, %v2487_v32 }
 0x2e7   : > { %9088 = vst [vmem:[#allocation19_spill] sm:$0xff] %v7657_v14 }
 0x2e8   : > { %v2763_v0 = vmax.f32 %v2731_v8, 0.0 }
 0x2e9   : > { %v2581_v53 = vpop.f32.mrf.mxu0 }
 0x2ea   : > { %2795 = vst.msk [vmem:[#allocation2 + $0x28] sm:$0xff] %vm681_vm1, %v2763_v0  ;;  %v2660_v20 = vadd.f32 %v2581_v53, %v7458_v63 }
 0x2ec   : > { %v2696_v60 = vmul.f32 %v7647_v10, %v2660_v20 }
 0x2ed   : > { %v7664_v61 = vpop.f32.mrf.mxu2 }
 0x2ee   : > { %9089 = vst [vmem:[#allocation20_spill] sm:$0xff] %v7664_v61  ;;  %v7666_v3 = vpop.f32.mrf.mxu3  ;;  %v2732_v34 = vadd.f32 %v7653_v23, %v2696_v60 }
 0x2ef   : > { %9090 = vst [vmem:[#allocation21_spill] sm:$0xff] %v7666_v3 }
 0x2f0   : > { %v2764_v54 = vmax.f32 %v2732_v34, 0.0 }
 0x2f1   : > { %v2584_v15 = vpop.f32.mrf.mxu0  ;;  %v2879_v3 = vld [vmem:[#allocation2 + $0x28] sm:$0xff] }
 0x2f2   : > { %2796 = vst.msk [vmem:[#allocation2 + $0x30] sm:$0xff] %vm681_vm1, %v2764_v54  ;;  %v2661_v8 = vadd.f32 %v2584_v15, %v7474_v49  ;;  %v2829_v61 = vld [vmem:[#allocation2 + $0x27] sm:$0xff] }
 0x2f4   : > { %v2697_v53 = vmul.f32 %v7647_v10, %v2661_v8  ;;  %6430 = vmatmul.msk.bf16.gmra.mxu0 %vm681_vm1, %v2510_v38 }
 0x2f5   : > { %v7672_v0 = vpop.f32.mrf.mxu2 }
 0x2f6   : > { %v7674_v63 = vpop.f32.mrf.mxu3  ;;  %v2733_v20 = vadd.f32 %v7653_v23, %v2697_v53 }
 0x2f7   : > { %9091 = vst [vmem:[#allocation22_spill] sm:$0xff] %v7674_v63 }
 0x2f8   : > { %v2765_v60 = vmax.f32 %v2733_v20, 0.0 }
 0x2f9   : > { %v2586_v34 = vpop.f32.mrf.mxu0  ;;  %v2880_v17 = vld [vmem:[#allocation2 + $0x30] sm:$0xff] }
 0x2fa   : > { %v2830_v14 = vld [vmem:[#allocation2 + $0x2f] sm:$0xff]  ;;  %2797 = vst.msk [vmem:[#allocation2 + $0x48] sm:$0xff] %vm681_vm1, %v2765_v60  ;;  %v2662_v49 = vadd.f32 %v2586_v34, %v7482_v12  ;;  %v2910_v32 = vpack.c.bf16 %v2880_v17, %v2879_v3 }
 0x2fb   : > { %v3209_v54 = vld [vmem:[#allocation2 + $0x29] sm:$0xff]  ;;  %v7681_v59 = vpack.c.bf16 %v2830_v14, %v2829_v61  ;;  %v3210_v15 = vld [vmem:[#allocation2 + $0x31] sm:$0xff] }
 0x2fc   : > { %v3240_v8 = vpack.c.bf16 %v3210_v15, %v3209_v54  ;;  %v2698_v53 = vmul.f32 %v7647_v10, %v2662_v49  ;;  %6440 = vmatmul.msk.bf16.gmra.mxu1 %vm681_vm1, %v2910_v32  ;;  %v2489_v17 = vld [vmem:[#allocation2 + $0x189] sm:$0xff]  ;;  %v2490_v3 = vld [vmem:[#allocation2 + $0x191] sm:$0xff] }
 0x2fd   : > { %v7683_v63 = vpop.f32.mrf.mxu2  ;;  %6456 = vmatmul.msk.bf16.gmra.mxu2 %vm681_vm1, %v7681_v59  ;;  %v2511_v60 = vpack.c.bf16 %v2490_v3, %v2489_v17 }
 0x2fe   : > { %9092 = vst [vmem:[#allocation23_spill] sm:$0xff] %v7683_v63  ;;  %v7685_v38 = vpop.f32.mrf.mxu3  ;;  %6473 = vmatmul.msk.bf16.gmra.mxu3 %vm681_vm1, %v3240_v8  ;;  %v2734_v12 = vadd.f32 %v7653_v23, %v2698_v53 }
 0x2ff   : > { %9093 = vst [vmem:[#allocation24_spill] sm:$0xff] %v7685_v38 }
 0x300   : > { %v2766_v14 = vmax.f32 %v2734_v12, 0.0 }
 0x301   : > { %v2589_v61 = vpop.f32.mrf.mxu0  ;;  %v2881_v8 = vld [vmem:[#allocation2 + $0x48] sm:$0xff] }
 0x302   : > { %2798 = vst.msk [vmem:[#allocation2 + $0x50] sm:$0xff] %vm681_vm1, %v2766_v14  ;;  %v2663_v20 = vadd.f32 %v2589_v61, %v7491_v28  ;;  %v2831_v53 = vld [vmem:[#allocation2 + $0x47] sm:$0xff] }
 0x304   : > { %v2699_v49 = vmul.f32 %v7647_v10, %v2663_v20  ;;  %6431 = vmatmul.msk.bf16.gmra.mxu0 %vm681_vm1, %v2511_v60 }
 0x305   : > { %v7695_v34 = vpop.f32.mrf.mxu2 }
 0x306   : > { %v7697_v54 = vpop.f32.mrf.mxu3  ;;  %v2735_v32 = vadd.f32 %v7653_v23, %v2699_v49 }
 0x307   : > { %9094 = vst [vmem:[#allocation25_spill] sm:$0xff] %v7697_v54 }
 0x308   : > { %v2767_v15 = vmax.f32 %v2735_v32, 0.0 }
 0x309   : > { %v2591_v12 = vpop.f32.mrf.mxu0  ;;  %v2882_v38 = vld [vmem:[#allocation2 + $0x50] sm:$0xff] }
 0x30a   : > { %v2832_v63 = vld [vmem:[#allocation2 + $0x4f] sm:$0xff]  ;;  %2799 = vst.msk [vmem:[#allocation2 + $0x68] sm:$0xff] %vm681_vm1, %v2767_v15  ;;  %v2664_v28 = vadd.f32 %v2591_v12, %v7499_v50  ;;  %v2911_v17 = vpack.c.bf16 %v2882_v38, %v2881_v8 }
 0x30b   : > { %v3211_v14 = vld [vmem:[#allocation2 + $0x49] sm:$0xff]  ;;  %v7704_v3 = vpack.c.bf16 %v2832_v63, %v2831_v53  ;;  %v3212_v61 = vld [vmem:[#allocation2 + $0x51] sm:$0xff] }
 0x30c   : > { %v3241_v20 = vpack.c.bf16 %v3212_v61, %v3211_v14  ;;  %v2700_v49 = vmul.f32 %v7647_v10, %v2664_v28  ;;  %6441 = vmatmul.msk.bf16.gmra.mxu1 %vm681_vm1, %v2911_v17  ;;  %v2491_v38 = vld [vmem:[#allocation2 + $0x1a9] sm:$0xff]  ;;  %v2492_v63 = vld [vmem:[#allocation2 + $0x1b1] sm:$0xff] }
 0x30d   : > { %v7706_v54 = vpop.f32.mrf.mxu2  ;;  %6457 = vmatmul.msk.bf16.gmra.mxu2 %vm681_vm1, %v7704_v3  ;;  %v2512_v53 = vpack.c.bf16 %v2492_v63, %v2491_v38 }
 0x30e   : > { %9095 = vst [vmem:[#allocation26_spill] sm:$0xff] %v7706_v54  ;;  %v7708_v60 = vpop.f32.mrf.mxu3  ;;  %6474 = vmatmul.msk.bf16.gmra.mxu3 %vm681_vm1, %v3241_v20  ;;  %v2736_v50 = vadd.f32 %v7653_v23, %v2700_v49 }
 0x30f   : > { %9096 = vst [vmem:[#allocation27_spill] sm:$0xff] %v7708_v60 }
 0x310   : > { %v2768_v32 = vmax.f32 %v2736_v50, 0.0 }
 0x311   : > { %v2594_v15 = vpop.f32.mrf.mxu0  ;;  %v2883_v20 = vld [vmem:[#allocation2 + $0x68] sm:$0xff] }
 0x312   : > { %2800 = vst.msk [vmem:[#allocation2 + $0x70] sm:$0xff] %vm681_vm1, %v2768_v32  ;;  %v2665_v8 = vadd.f32 %v2594_v15, %v7508_v57  ;;  %v2833_v49 = vld [vmem:[#allocation2 + $0x67] sm:$0xff] }
 0x314   : > { %v2701_v28 = vmul.f32 %v7647_v10, %v2665_v8  ;;  %6432 = vmatmul.msk.bf16.gmra.mxu0 %vm681_vm1, %v2512_v53 }
 0x315   : > { %v7718_v12 = vpop.f32.mrf.mxu2 }
 0x316   : > { %v7720_v14 = vpop.f32.mrf.mxu3  ;;  %v2737_v17 = vadd.f32 %v7653_v23, %v2701_v28 }
 0x317   : > { %9097 = vst [vmem:[#allocation28_spill] sm:$0xff] %v7720_v14 }
 0x318   : > { %v2769_v61 = vmax.f32 %v2737_v17, 0.0 }
 0x319   : > { %v2596_v50 = vpop.f32.mrf.mxu0  ;;  %v2884_v60 = vld [vmem:[#allocation2 + $0x70] sm:$0xff] }
 0x31a   : > { %v2834_v54 = vld [vmem:[#allocation2 + $0x6f] sm:$0xff]  ;;  %2801 = vst.msk [vmem:[#allocation2 + $0x88] sm:$0xff] %vm681_vm1, %v2769_v61  ;;  %v2666_v57 = vadd.f32 %v2596_v50, %v7516_v56  ;;  %v2912_v38 = vpack.c.bf16 %v2884_v60, %v2883_v20 }
 0x31b   : > { %v3213_v32 = vld [vmem:[#allocation2 + $0x69] sm:$0xff]  ;;  %v7727_v63 = vpack.c.bf16 %v2834_v54, %v2833_v49  ;;  %v3214_v15 = vld [vmem:[#allocation2 + $0x71] sm:$0xff] }
 0x31c   : > { %v3242_v8 = vpack.c.bf16 %v3214_v15, %v3213_v32  ;;  %v2702_v53 = vmul.f32 %v7647_v10, %v2666_v57  ;;  %6442 = vmatmul.msk.bf16.gmra.mxu1 %vm681_vm1, %v2912_v38  ;;  %v2493_v60 = vld [vmem:[#allocation2 + $0x1c9] sm:$0xff]  ;;  %v2494_v54 = vld [vmem:[#allocation2 + $0x1d1] sm:$0xff] }
 0x31d   : > { %v7729_v14 = vpop.f32.mrf.mxu2  ;;  %6458 = vmatmul.msk.bf16.gmra.mxu2 %vm681_vm1, %v7727_v63  ;;  %v2513_v49 = vpack.c.bf16 %v2494_v54, %v2493_v60 }
 0x31e   : > { %9098 = vst [vmem:[#allocation29_spill] sm:$0xff] %v7729_v14  ;;  %6475 = vmatmul.msk.bf16.gmra.mxu3 %vm681_vm1, %v3242_v8  ;;  %v7736_v28 = vpop.f32.mrf.mxu3  ;;  %v2738_v56 = vadd.f32 %v7653_v23, %v2702_v53 }
 0x31f   : > { %9099 = vst [vmem:[#allocation30_spill] sm:$0xff] %v7736_v28 }
 0x320   : > { %v2770_v17 = vmax.f32 %v2738_v56, 0.0 }
 0x321   : > { %v2599_v61 = vpop.f32.mrf.mxu0  ;;  %v2885_v8 = vld [vmem:[#allocation2 + $0x88] sm:$0xff] }
 0x322   : > { %2802 = vst.msk [vmem:[#allocation2 + $0x90] sm:$0xff] %vm681_vm1, %v2770_v17  ;;  %v2667_v20 = vadd.f32 %v2599_v61, %v7526_v30  ;;  %v2835_v53 = vld [vmem:[#allocation2 + $0x87] sm:$0xff] }
 0x324   : > { %v2703_v32 = vmul.f32 %v7647_v10, %v2667_v20  ;;  %6433 = vmatmul.msk.bf16.gmra.mxu0 %vm681_vm1, %v2513_v49  ;;  %v2225_v49 = vadd.f32 %v7545_v22, %v7421_v39  ;;  %v2003_v22 = vadd.f32 %v7430_v51, %v7433_v42 }
 0x325   : > { %v7741_v50 = vpop.f32.mrf.mxu2 }
 0x326   : > { %v2739_v57 = vadd.f32 %v7653_v23, %v2703_v32  ;;  %v7746_v38 = vpop.f32.mrf.mxu3 }
 0x328   : > { %v2771_v15 = vmax.f32 %v2739_v57, 0.0 }
 0x329   : > { %v2601_v56 = vpop.f32.mrf.mxu0  ;;  %v2886_v28 = vld [vmem:[#allocation2 + $0x90] sm:$0xff] }
 0x32a   : > { %v2836_v14 = vld [vmem:[#allocation2 + $0x8f] sm:$0xff]  ;;  %2803 = vst.msk [vmem:[#allocation2 + $0xa8] sm:$0xff] %vm681_vm1, %v2771_v15  ;;  %v2668_v30 = vadd.f32 %v2601_v56, %v7539_v9  ;;  %v2913_v60 = vpack.c.bf16 %v2886_v28, %v2885_v8  ;;  %v2447_v15 = vadd.f32 %v7547_v46, %v2225_v49 }
 0x32b   : > { %v3215_v17 = vld [vmem:[#allocation2 + $0x89] sm:$0xff]  ;;  %v7750_v54 = vpack.c.bf16 %v2836_v14, %v2835_v53  ;;  %v3216_v61 = vld [vmem:[#allocation2 + $0x91] sm:$0xff] }
 0x32c   : > { %v3243_v20 = vpack.c.bf16 %v3216_v61, %v3215_v17  ;;  %v2704_v32 = vmul.f32 %v7647_v10, %v2668_v30  ;;  %6443 = vmatmul.msk.bf16.gmra.mxu1 %vm681_vm1, %v2913_v60  ;;  %v2495_v14 = vld [vmem:[#allocation2 + $0x1e9] sm:$0xff]  ;;  %v2496_v28 = vld [vmem:[#allocation2 + $0x1f1] sm:$0xff]  ;;  %v2226_v30 = vadd.f32 %v7557_v36, %v2003_v22 }
 0x32d   : > { %6459 = vmatmul.msk.bf16.gmra.mxu2 %vm681_vm1, %v7750_v54  ;;  %v7759_v57 = vpop.f32.mrf.mxu2  ;;  %v2514_v17 = vpack.c.bf16 %v2496_v28, %v2495_v14 }
 0x32e   : > { %6476 = vmatmul.msk.bf16.gmra.mxu3 %vm681_vm1, %v3243_v20  ;;  %v2740_v9 = vadd.f32 %v7653_v23, %v2704_v32  ;;  %v7763_v53 = vpop.f32.mrf.mxu3  ;;  %v2448_v20 = vadd.f32 %v7559_v18, %v2226_v30  ;;  %v2227_v18 = vadd.f32 %v7566_v2, %v7443_v47  ;;  %v2005_v47 = vadd.f32 %v7452_v4, %v7455_v26 }
 0x330   : > { %v2772_v8 = vmax.f32 %v2740_v9, 0.0 }
 0x331   : > { %v2604_v39 = vpop.f32.mrf.mxu0  ;;  %v2887_v32 = vld [vmem:[#allocation2 + $0xa8] sm:$0xff] }
 0x332   : > { %2804 = vst.msk [vmem:[#allocation2 + $0xb0] sm:$0xff] %vm681_vm1, %v2772_v8  ;;  %v2669_v56 = vadd.f32 %v2604_v39, %v2447_v15  ;;  %v2837_v9 = vld [vmem:[#allocation2 + $0xa7] sm:$0xff] }
 0x334   : > { %v2705_v60 = vmul.f32 %v7647_v10, %v2669_v56  ;;  %6434 = vmatmul.msk.bf16.gmra.mxu0 %vm681_vm1, %v2514_v17 }
 0x335   : > { %v7772_v46 = vpop.f32.mrf.mxu2 }
 0x336   : > { %v2741_v61 = vadd.f32 %v7653_v23, %v2705_v60  ;;  %v7775_v51 = vpop.f32.mrf.mxu3  ;;  %v2449_v60 = vadd.f32 %v7568_v37, %v2227_v18  ;;  %v6488_v37 = vld [vmem:[%s9054_s2 + $0x30] sm:$0xf] }
 0x337   : > { %v3528_v4 = vsel %vm903_vm0, %v6488_v37, 0 }
 0x338   : > { %v2773_v49 = vmax.f32 %v2741_v61, 0.0  ;;  %v7789_v61 = vpop.f32.mrf.mxu1  ;;  %3537 = vmatpush.bf16.msrb.mxu0 %v3528_v4  ;;  %v2500_v4 = vld [vmem:[#allocation2 + $0x231] sm:$0xff] }
 0x339   : > { %v2606_v42 = vpop.f32.mrf.mxu0  ;;  %v2888_v15 = vld [vmem:[#allocation2 + $0xb0] sm:$0xff] }
 0x33a   : > { %v2838_v14 = vld [vmem:[#allocation2 + $0xaf] sm:$0xff]  ;;  %2805 = vst.msk [vmem:[#allocation2 + $0xc8] sm:$0xff] %vm681_vm1, %v2773_v49  ;;  %v2670_v36 = vadd.f32 %v2606_v42, %v2448_v20  ;;  %v2914_v8 = vpack.c.bf16 %v2888_v15, %v2887_v32  ;;  %v2228_v42 = vadd.f32 %v7578_v6, %v2005_v47 }
 0x33b   : > { %v3217_v28 = vld [vmem:[#allocation2 + $0xa9] sm:$0xff]  ;;  %v7778_v39 = vpack.c.bf16 %v2838_v14, %v2837_v9  ;;  %v3218_v22 = vld [vmem:[#allocation2 + $0xb1] sm:$0xff] }
 0x33c   : > { %v3244_v56 = vpack.c.bf16 %v3218_v22, %v3217_v28  ;;  %v2706_v17 = vmul.f32 %v7647_v10, %v2670_v36  ;;  %6444 = vmatmul.msk.bf16.gmra.mxu1 %vm681_vm1, %v2914_v8  ;;  %v2450_v26 = vadd.f32 %v7580_v55, %v2228_v42  ;;  %v2229_v42 = vadd.f32 %v7585_v48, %v7467_v11 }
 0x33d   : > { %6460 = vmatmul.msk.bf16.gmra.mxu2 %vm681_vm1, %v7778_v39  ;;  %v7791_v49 = vpop.f32.mrf.mxu2 }
 0x33e   : > { %6477 = vmatmul.msk.bf16.gmra.mxu3 %vm681_vm1, %v3244_v56  ;;  %v2742_v30 = vadd.f32 %v7653_v23, %v2706_v17  ;;  %v7796_v9 = vpop.f32.mrf.mxu3 }
 0x340   : > { %v2774_v20 = vmax.f32 %v2742_v30, 0.0  ;;  %v2987_v6 = vpop.f32.mrf.mxu1 }
 0x341   : > { %v2609_v32 = vpop.f32.mrf.mxu0  ;;  %v2889_v36 = vld [vmem:[#allocation2 + $0xc8] sm:$0xff] }
 0x342   : > { %2806 = vst.msk [vmem:[#allocation2 + $0xd0] sm:$0xff] %vm681_vm1, %v2774_v20  ;;  %v2671_v2 = vadd.f32 %v2609_v32, %v2449_v60  ;;  %v2839_v8 = vld [vmem:[#allocation2 + $0xc7] sm:$0xff] }
 0x344   : > { %v2707_v15 = vmul.f32 %v7647_v10, %v2671_v2  ;;  %6435 = vmatmul.msk.bf16.gmra.mxu0 %vm681_vm1, %v7465_v1 }
 0x345   : > { %v3127_v1 = vpop.f32.mrf.mxu2 }
 0x346   : > { %v2743_v14 = vadd.f32 %v7653_v23, %v2707_v15  ;;  %v3128_v47 = vadd.f32 %v3127_v1, %v2987_v6  ;;  %v3317_v55 = vpop.f32.mrf.mxu3 }
 0x348   : > { %v2775_v28 = vmax.f32 %v2743_v14, 0.0  ;;  %v7819_v37 = vadd.f32 %v3317_v55, %v3128_v47  ;;  %v2499_v14 = vld [vmem:[#allocation2 + $0x229] sm:$0xff] }
 0x349   : > { %v2611_v22 = vpop.f32.mrf.mxu0  ;;  %v2890_v56 = vld [vmem:[#allocation2 + $0xd0] sm:$0xff]  ;;  %v2516_v11 = vpack.c.bf16 %v2500_v4, %v2499_v14  ;;  %v2231_v14 = vadd.f32 %v7612_v41, %v7487_v16 }
 0x34a   : > { %v2840_v18 = vld [vmem:[#allocation2 + $0xcf] sm:$0xff]  ;;  %2807 = vst.msk [vmem:[#allocation2 + $0xe8] sm:$0xff] %vm681_vm1, %v2775_v28  ;;  %v2672_v30 = vadd.f32 %v2611_v22, %v2450_v26  ;;  %v2915_v60 = vpack.c.bf16 %v2890_v56, %v2889_v36  ;;  %v2451_v28 = vadd.f32 %v7587_v58, %v2229_v42 }
 0x34b   : > { %v3219_v17 = vld [vmem:[#allocation2 + $0xc9] sm:$0xff]  ;;  %v7809_v20 = vpack.c.bf16 %v2840_v18, %v2839_v8  ;;  %v3220_v32 = vld [vmem:[#allocation2 + $0xd1] sm:$0xff]  ;;  %v2007_v8 = vadd.f32 %v7476_v19, %v7479_v29 }
 0x34c   : > { %v7811_v2 = vpack.c.bf16 %v3220_v32, %v3219_v17  ;;  %v2708_v15 = vmul.f32 %v7647_v10, %v2672_v30  ;;  %6445 = vmatmul.msk.bf16.gmra.mxu1 %vm681_vm1, %v2915_v60 }
 0x34d   : > { %6461 = vmatmul.msk.bf16.gmra.mxu2 %vm681_vm1, %v7809_v20  ;;  %v2230_v22 = vadd.f32 %v7597_v62, %v2007_v8 }
 0x34e   : > { %6478 = vmatmul.msk.bf16.gmra.mxu3 %vm681_vm1, %v7811_v2  ;;  %v2744_v26 = vadd.f32 %v7653_v23, %v2708_v15 }
 0x34f   : > { %v2452_v17 = vadd.f32 %v7599_v33, %v2230_v22 }
 0x350   : > { %v2776_v36 = vmax.f32 %v2744_v26, 0.0  ;;  %v2453_v26 = vadd.f32 %v7614_v13, %v2231_v14 }
 0x351   : > { %v2614_v48 = vpop.f32.mrf.mxu0  ;;  %v2891_v1 = vld [vmem:[#allocation2 + $0xe8] sm:$0xff] }
 0x352   : > { %2808 = vst.msk [vmem:[#allocation2 + $0xf0] sm:$0xff] %vm681_vm1, %v2776_v36  ;;  %v2673_v6 = vadd.f32 %v2614_v48, %v2451_v28  ;;  %v2841_v30 = vld [vmem:[#allocation2 + $0xe7] sm:$0xff] }
 0x354   : > { %v2709_v56 = vmul.f32 %v7647_v10, %v2673_v6  ;;  %6436 = vmatmul.msk.bf16.gmra.mxu0 %vm681_vm1, %v2516_v11  ;;  %v2009_v11 = vadd.f32 %v7493_v40, %v7496_v35 }
 0x356   : > { %v2745_v18 = vadd.f32 %v7653_v23, %v2709_v56  ;;  %v2232_v41 = vadd.f32 %v7625_v7, %v2009_v11 }
 0x358   : > { %v2777_v58 = vmax.f32 %v2745_v18, 0.0  ;;  %v2454_v6 = vadd.f32 %v7627_v24, %v2232_v41  ;;  %v2233_v24 = vadd.f32 %v7630_v31, %v7504_v45  ;;  %v2011_v45 = vadd.f32 %v7510_v44, %v7513_v52 }
 0x359   : > { %v2616_v60 = vpop.f32.mrf.mxu0  ;;  %v2892_v32 = vld [vmem:[#allocation2 + $0xf0] sm:$0xff] }
 0x35a   : > { %v2842_v47 = vld [vmem:[#allocation2 + $0xef] sm:$0xff]  ;;  %2809 = vst.msk [vmem:[#allocation2 + $0x108] sm:$0xff] %vm681_vm1, %v2777_v58  ;;  %v2674_v29 = vadd.f32 %v2616_v60, %v2452_v17  ;;  %v2916_v55 = vpack.c.bf16 %v2892_v32, %v2891_v1 }
 0x35b   : > { %v3221_v19 = vld [vmem:[#allocation2 + $0xe9] sm:$0xff]  ;;  %v7834_v62 = vpack.c.bf16 %v2842_v47, %v2841_v30  ;;  %v3222_v42 = vld [vmem:[#allocation2 + $0xf1] sm:$0xff]  ;;  %v2455_v47 = vadd.f32 %v7632_v25, %v2233_v24  ;;  %v7882_v25 = vpop.f32.mrf.mxu2 }
 0x35c   : > { %v3246_v15 = vpack.c.bf16 %v3222_v42, %v3221_v19  ;;  %v2710_v33 = vmul.f32 %v7647_v10, %v2674_v29  ;;  %6446 = vmatmul.msk.bf16.gmra.mxu1 %vm681_vm1, %v2916_v55  ;;  %v7872_v29 = vpop.f32.mrf.mxu1  ;;  %v2234_v42 = vadd.f32 %v7640_v27, %v2011_v45  ;;  %v9101_v24 = vld [vmem:[#allocation4_spill] sm:$0xff] }
 0x35d   : > { %6462 = vmatmul.msk.bf16.gmra.mxu2 %vm681_vm1, %v7834_v62 }
 0x35e   : > { %6479 = vmatmul.msk.bf16.gmra.mxu3 %vm681_vm1, %v3246_v15  ;;  %v2746_v4 = vadd.f32 %v7653_v23, %v2710_v33  ;;  %v2456_v33 = vadd.f32 %v7642_v5, %v2234_v42  ;;  %v2235_v5 = vadd.f32 %v7655_v43, %v7522_v21 }
 0x360   : > { %v2778_v28 = vmax.f32 %v2746_v4, 0.0  ;;  %v7885_v4 = vpop.f32.mrf.mxu3 }
 0x361   : > { %v2619_v36 = vpop.f32.mrf.mxu0  ;;  %v2893_v22 = vld [vmem:[#allocation2 + $0x108] sm:$0xff] }
 0x362   : > { %2810 = vst.msk [vmem:[#allocation2 + $0x110] sm:$0xff] %vm681_vm1, %v2778_v28  ;;  %v2675_v16 = vadd.f32 %v2619_v36, %v2453_v26  ;;  %v2843_v56 = vld [vmem:[#allocation2 + $0x107] sm:$0xff] }
 0x364   : > { %v2711_v48 = vmul.f32 %v7647_v10, %v2675_v16  ;;  %6489 = vmatmul.msk.bf16.vlgmr.msrb.gmra.mxu0 %vm681_vm1, %v7681_v59 }
 0x366   : > { %v2747_v8 = vadd.f32 %v7653_v23, %v2711_v48 }
 0x368   : > { %v2779_v13 = vmax.f32 %v2747_v8, 0.0 }
 0x369   : > { %v2621_v18 = vpop.f32.mrf.mxu0  ;;  %v2894_v17 = vld [vmem:[#allocation2 + $0x110] sm:$0xff] }
 0x36a   : > { %v2844_v40 = vld [vmem:[#allocation2 + $0x10f] sm:$0xff]  ;;  %2811 = vst.msk [vmem:[#allocation2 + $0x128] sm:$0xff] %vm681_vm1, %v2779_v13  ;;  %v2676_v58 = vadd.f32 %v2621_v18, %v2454_v6  ;;  %v7855_v7 = vpack.c.bf16 %v2894_v17, %v2893_v22  ;;  %v9100_v17 = vld [vmem:[#allocation19_spill] sm:$0xff] }
 0x36b   : > { %v3223_v35 = vld [vmem:[#allocation2 + $0x109] sm:$0xff]  ;;  %v7857_v1 = vpack.c.bf16 %v2844_v40, %v2843_v56  ;;  %v3224_v30 = vld [vmem:[#allocation2 + $0x111] sm:$0xff]  ;;  %v2457_v40 = vadd.f32 %v9100_v17, %v2235_v5 }
 0x36c   : > { %v7859_v59 = vpack.c.bf16 %v3224_v30, %v3223_v35  ;;  %v2712_v60 = vmul.f32 %v7647_v10, %v2676_v58  ;;  %6447 = vmatmul.msk.bf16.gmra.mxu1 %vm681_vm1, %v7855_v7 }
 0x36d   : > { %6463 = vmatmul.msk.bf16.gmra.mxu2 %vm681_vm1, %v7857_v1 }
 0x36e   : > { %6480 = vmatmul.msk.bf16.gmra.mxu3 %vm681_vm1, %v7859_v59  ;;  %v2748_v32 = vadd.f32 %v7653_v23, %v2712_v60  ;;  %v9102_v60 = vld [vmem:[#allocation3_spill] sm:$0xff] }
 0x370   : > { %v2780_v19 = vmax.f32 %v2748_v32, 0.0  ;;  %v2013_v32 = vadd.f32 %v9102_v60, %v9101_v24  ;;  %v9106_v24 = vld [vmem:[#allocation22_spill] sm:$0xff] }
 0x371   : > { %v2624_v55 = vpop.f32.mrf.mxu0  ;;  %v2895_v44 = vld [vmem:[#allocation2 + $0x128] sm:$0xff] }
 0x372   : > { %2812 = vst.msk [vmem:[#allocation2 + $0x130] sm:$0xff] %vm681_vm1, %v2780_v19  ;;  %v2677_v31 = vadd.f32 %v2624_v55, %v2455_v47  ;;  %v2845_v52 = vld [vmem:[#allocation2 + $0x127] sm:$0xff] }
 0x373   : > { %v9103_v55 = vld [vmem:[#allocation20_spill] sm:$0xff] }
 0x374   : > { %v2713_v15 = vmul.f32 %v7647_v10, %v2677_v31  ;;  %6490 = vmatmul.msk.bf16.gmra.mxu0 %vm681_vm1, %v7704_v3  ;;  %v2236_v45 = vadd.f32 %v9103_v55, %v2013_v32 }
 0x376   : > { %v2749_v14 = vadd.f32 %v7653_v23, %v2713_v15 }
 0x378   : > { %v2781_v26 = vmax.f32 %v2749_v14, 0.0  ;;  %v9104_v14 = vld [vmem:[#allocation21_spill] sm:$0xff] }
 0x379   : > { %v2626_v28 = vpop.f32.mrf.mxu0  ;;  %v2992_v36 = vpop.f32.mrf.mxu1  ;;  %v2896_v11 = vld [vmem:[#allocation2 + $0x130] sm:$0xff] }
 0x37a   : > { %v2846_v27 = vld [vmem:[#allocation2 + $0x12f] sm:$0xff]  ;;  %2813 = vst.msk [vmem:[#allocation2 + $0x148] sm:$0xff] %vm681_vm1, %v2781_v26  ;;  %v2678_v41 = vadd.f32 %v2626_v28, %v2456_v33  ;;  %v7888_v48 = vpack.c.bf16 %v2896_v11, %v2895_v44  ;;  %v2458_v33 = vadd.f32 %v9104_v14, %v2236_v45 }
 0x37b   : > { %v3225_v16 = vld [vmem:[#allocation2 + $0x129] sm:$0xff]  ;;  %v7890_v8 = vpack.c.bf16 %v2846_v27, %v2845_v52  ;;  %v3226_v6 = vld [vmem:[#allocation2 + $0x131] sm:$0xff] }
 0x37c   : > { %v7892_v13 = vpack.c.bf16 %v3226_v6, %v3225_v16  ;;  %v2714_v22 = vmul.f32 %v7647_v10, %v2678_v41  ;;  %6448 = vmatmul.msk.bf16.gmra.mxu1 %vm681_vm1, %v7888_v48 }
 0x37d   : > { %6464 = vmatmul.msk.bf16.gmra.mxu2 %vm681_vm1, %v7890_v8 }
 0x37e   : > { %6481 = vmatmul.msk.bf16.gmra.mxu3 %vm681_vm1, %v7892_v13  ;;  %v2750_v56 = vadd.f32 %v7653_v23, %v2714_v22 }
 0x380   : > { %v3132_v18 = vpop.f32.mrf.mxu2  ;;  %v2782_v35 = vmax.f32 %v2750_v56, 0.0 }
 0x381   : > { %v3133_v58 = vadd.f32 %v3132_v18, %v2992_v36  ;;  %v3322_v30 = vpop.f32.mrf.mxu3  ;;  %v2629_v21 = vpop.f32.mrf.mxu0  ;;  %v2897_v28 = vld [vmem:[#allocation2 + $0x148] sm:$0xff] }
 0x382   : > { %v2994_v43 = vpop.f32.mrf.mxu1  ;;  %2814 = vst.msk [vmem:[#allocation2 + $0x150] sm:$0xff] %vm681_vm1, %v2782_v35  ;;  %v2679_v19 = vadd.f32 %v2629_v21, %v2457_v40  ;;  %v2847_v36 = vld [vmem:[#allocation2 + $0x147] sm:$0xff]  ;;  %v9105_v35 = vld [vmem:[#allocation5_spill] sm:$0xff] }
 0x383   : > { %v7908_v47 = vadd.f32 %v3322_v30, %v3133_v58  ;;  %v2237_v58 = vadd.f32 %v7672_v0, %v9105_v35 }
 0x384   : > { %v2715_v31 = vmul.f32 %v7647_v10, %v2679_v19  ;;  %6491 = vmatmul.msk.bf16.gmra.mxu0 %vm681_vm1, %v7727_v63 }
 0x385   : > { %v2459_v60 = vadd.f32 %v9106_v24, %v2237_v58 }
 0x386   : > { %v2751_v42 = vadd.f32 %v7653_v23, %v2715_v31  ;;  %v9107_v31 = vld [vmem:[#allocation7_spill] sm:$0xff] }
 0x388   : > { %v3134_v15 = vpop.f32.mrf.mxu2  ;;  %v2783_v26 = vmax.f32 %v2751_v42, 0.0  ;;  %v9108_v42 = vld [vmem:[#allocation6_spill] sm:$0xff] }
 0x389   : > { %v3135_v44 = vadd.f32 %v3134_v15, %v2994_v43  ;;  %v3324_v52 = vpop.f32.mrf.mxu3  ;;  %v2631_v11 = vpop.f32.mrf.mxu0  ;;  %v2898_v16 = vld [vmem:[#allocation2 + $0x150] sm:$0xff]  ;;  %v2015_v15 = vadd.f32 %v9108_v42, %v9107_v31 }
 0x38a   : > { %v2997_v27 = vpop.f32.mrf.mxu1  ;;  %v2848_v41 = vld [vmem:[#allocation2 + $0x14f] sm:$0xff]  ;;  %2815 = vst.msk [vmem:[#allocation2 + $0x168] sm:$0xff] %vm681_vm1, %v2783_v26  ;;  %v2680_v22 = vadd.f32 %v2631_v11, %v2458_v33  ;;  %v7919_v56 = vpack.c.bf16 %v2898_v16, %v2897_v28 }
 0x38b   : > { %v3227_v6 = vld [vmem:[#allocation2 + $0x149] sm:$0xff]  ;;  %v7917_v5 = vadd.f32 %v3324_v52, %v3135_v44  ;;  %v7921_v18 = vpack.c.bf16 %v2848_v41, %v2847_v36  ;;  %v3228_v17 = vld [vmem:[#allocation2 + $0x151] sm:$0xff]  ;;  %v9109_v52 = vld [vmem:[#allocation23_spill] sm:$0xff] }
 0x38c   : > { %v7923_v40 = vpack.c.bf16 %v3228_v17, %v3227_v6  ;;  %v2716_v30 = vmul.f32 %v7647_v10, %v2680_v22  ;;  %6449 = vmatmul.msk.bf16.gmra.mxu1 %vm681_vm1, %v7919_v56  ;;  %v6505_v26 = vld [vmem:[%s9054_s2 + $0x34] sm:$0xf]  ;;  %v2238_v28 = vadd.f32 %v9109_v52, %v2015_v15  ;;  %v9110_v16 = vld [vmem:[#allocation24_spill] sm:$0xff] }
 0x38d   : > { %6465 = vmatmul.msk.bf16.gmra.mxu2 %vm681_vm1, %v7921_v18  ;;  %v3750_v44 = vsel %vm903_vm0, %v6505_v26, 0  ;;  %v9112_v52 = vld [vmem:[#allocation25_spill] sm:$0xff] }
 0x38e   : > { %6482 = vmatmul.msk.bf16.gmra.mxu3 %vm681_vm1, %v7923_v40  ;;  %v2752_v21 = vadd.f32 %v7653_v23, %v2716_v30  ;;  %3759 = vmatpush.bf16.msrb.mxu1 %v3750_v44  ;;  %v2460_v41 = vadd.f32 %v9110_v16, %v2238_v28 }
 0x390   : > { %v3137_v43 = vpop.f32.mrf.mxu2  ;;  %v2784_v32 = vmax.f32 %v2752_v21, 0.0 }
 0x391   : > { %v3138_v19 = vadd.f32 %v3137_v43, %v2997_v27  ;;  %v3327_v55 = vpop.f32.mrf.mxu3  ;;  %v2634_v0 = vpop.f32.mrf.mxu0  ;;  %v2899_v35 = vld [vmem:[#allocation2 + $0x168] sm:$0xff] }
 0x392   : > { %v2999_v45 = vpop.f32.mrf.mxu1  ;;  %2816 = vst.msk [vmem:[#allocation2 + $0x170] sm:$0xff] %vm681_vm1, %v2784_v32  ;;  %v2681_v33 = vadd.f32 %v2634_v0, %v2459_v60  ;;  %v2849_v58 = vld [vmem:[#allocation2 + $0x167] sm:$0xff] }
 0x393   : > { %v7939_v14 = vadd.f32 %v3327_v55, %v3138_v19 }
 0x394   : > { %v2717_v36 = vmul.f32 %v7647_v10, %v2681_v33  ;;  %6492 = vmatmul.msk.bf16.gmra.mxu0 %vm681_vm1, %v7750_v54 }
 0x396   : > { %v2753_v11 = vadd.f32 %v7653_v23, %v2717_v36 }
 0x398   : > { %v3139_v27 = vpop.f32.mrf.mxu2  ;;  %v2785_v6 = vmax.f32 %v2753_v11, 0.0 }
 0x399   : > { %v3140_v22 = vadd.f32 %v3139_v27, %v2999_v45  ;;  %v3329_v17 = vpop.f32.mrf.mxu3  ;;  %v2636_v30 = vpop.f32.mrf.mxu0  ;;  %v2900_v43 = vld [vmem:[#allocation2 + $0x170] sm:$0xff]  ;;  %v9111_v45 = vld [vmem:[#allocation8_spill] sm:$0xff] }
 0x39a   : > { %v3002_v21 = vpop.f32.mrf.mxu1  ;;  %v2850_v24 = vld [vmem:[#allocation2 + $0x16f] sm:$0xff]  ;;  %2817 = vst.msk [vmem:[#allocation2 + $0x188] sm:$0xff] %vm681_vm1, %v2785_v6  ;;  %v2682_v19 = vadd.f32 %v2636_v30, %v2460_v41  ;;  %v7954_v55 = vpack.c.bf16 %v2900_v43, %v2899_v35  ;;  %v2239_v15 = vadd.f32 %v7695_v34, %v9111_v45  ;;  %v9113_v41 = vld [vmem:[#allocation10_spill] sm:$0xff] }
 0x39b   : > { %v3229_v60 = vld [vmem:[#allocation2 + $0x169] sm:$0xff]  ;;  %v7952_v32 = vadd.f32 %v3329_v17, %v3140_v22  ;;  %v7956_v0 = vpack.c.bf16 %v2850_v24, %v2849_v58  ;;  %v3230_v31 = vld [vmem:[#allocation2 + $0x171] sm:$0xff] }
 0x39c   : > { %v7958_v42 = vpack.c.bf16 %v3230_v31, %v3229_v60  ;;  %v2718_v33 = vmul.f32 %v7647_v10, %v2682_v19  ;;  %6450 = vmatmul.msk.bf16.gmra.mxu1 %vm681_vm1, %v7954_v55  ;;  %v2461_v28 = vadd.f32 %v9112_v52, %v2239_v15  ;;  %v9114_v6 = vld [vmem:[#allocation9_spill] sm:$0xff]  ;;  %v9115_v58 = vld [vmem:[#allocation26_spill] sm:$0xff]  ;;  %v9116_v60 = vld [vmem:[#allocation27_spill] sm:$0xff] }
 0x39d   : > { %6466 = vmatmul.msk.bf16.gmra.mxu2 %vm681_vm1, %v7956_v0  ;;  %v2017_v22 = vadd.f32 %v9114_v6, %v9113_v41 }
 0x39e   : > { %6483 = vmatmul.msk.bf16.gmra.mxu3 %vm681_vm1, %v7958_v42  ;;  %v2754_v26 = vadd.f32 %v7653_v23, %v2718_v33 }
 0x39f   : > { %v2240_v30 = vadd.f32 %v9115_v58, %v2017_v22 }
 0x3a0   : > { %v3142_v44 = vpop.f32.mrf.mxu2  ;;  %v2786_v36 = vmax.f32 %v2754_v26, 0.0 }
 0x3a1   : > { %v3143_v11 = vadd.f32 %v3142_v44, %v3002_v21  ;;  %v3332_v27 = vpop.f32.mrf.mxu3  ;;  %v2639_v34 = vpop.f32.mrf.mxu0  ;;  %v2462_v19 = vadd.f32 %v9116_v60, %v2240_v30  ;;  %v2901_v33 = vld [vmem:[#allocation2 + $0x188] sm:$0xff] }
 0x3a2   : > { %v3004_v16 = vpop.f32.mrf.mxu1  ;;  %2818 = vst.msk [vmem:[#allocation2 + $0x190] sm:$0xff] %vm681_vm1, %v2786_v36  ;;  %v2683_v35 = vadd.f32 %v2639_v34, %v2461_v28  ;;  %v2851_v26 = vld [vmem:[#allocation2 + $0x187] sm:$0xff] }
 0x3a3   : > { %v7974_v17 = vadd.f32 %v3332_v27, %v3143_v11 }
 0x3a4   : > { %v2719_v43 = vmul.f32 %v7647_v10, %v2683_v35  ;;  %6493 = vmatmul.msk.bf16.gmra.mxu0 %vm681_vm1, %v7778_v39 }
 0x3a6   : > { %v2755_v21 = vadd.f32 %v7653_v23, %v2719_v43 }
 0x3a8   : > { %v3144_v24 = vpop.f32.mrf.mxu2  ;;  %v2787_v31 = vmax.f32 %v2755_v21, 0.0 }
 0x3a9   : > { %v3145_v45 = vadd.f32 %v3144_v24, %v3004_v16  ;;  %v3334_v15 = vpop.f32.mrf.mxu3  ;;  %v2641_v44 = vpop.f32.mrf.mxu0  ;;  %v2902_v28 = vld [vmem:[#allocation2 + $0x190] sm:$0xff]  ;;  %v9117_v16 = vld [vmem:[#allocation11_spill] sm:$0xff]  ;;  %v9118_v24 = vld [vmem:[#allocation28_spill] sm:$0xff] }
 0x3aa   : > { %v3007_v52 = vpop.f32.mrf.mxu1  ;;  %v2852_v36 = vld [vmem:[#allocation2 + $0x18f] sm:$0xff]  ;;  %2819 = vst.msk [vmem:[#allocation2 + $0x1a8] sm:$0xff] %vm681_vm1, %v2787_v31  ;;  %v2684_v34 = vadd.f32 %v2641_v44, %v2462_v19  ;;  %v7985_v41 = vpack.c.bf16 %v2902_v28, %v2901_v33  ;;  %v2241_v58 = vadd.f32 %v7718_v12, %v9117_v16 }
 0x3ab   : > { %v3231_v11 = vld [vmem:[#allocation2 + $0x189] sm:$0xff]  ;;  %v7983_v27 = vadd.f32 %v3334_v15, %v3145_v45  ;;  %v7987_v6 = vpack.c.bf16 %v2852_v36, %v2851_v26  ;;  %v3232_v22 = vld [vmem:[#allocation2 + $0x191] sm:$0xff] }
 0x3ac   : > { %v7989_v35 = vpack.c.bf16 %v3232_v22, %v3231_v11  ;;  %v2720_v30 = vmul.f32 %v7647_v10, %v2684_v34  ;;  %6451 = vmatmul.msk.bf16.gmra.mxu1 %vm681_vm1, %v7985_v41  ;;  %v2463_v60 = vadd.f32 %v9118_v24, %v2241_v58  ;;  %v9119_v33 = vld [vmem:[#allocation13_spill] sm:$0xff]  ;;  %v9120_v26 = vld [vmem:[#allocation12_spill] sm:$0xff]  ;;  %v9122_v58 = vld [vmem:[#allocation30_spill] sm:$0xff] }
 0x3ad   : > { %6467 = vmatmul.msk.bf16.gmra.mxu2 %vm681_vm1, %v7987_v6  ;;  %v2019_v44 = vadd.f32 %v9120_v26, %v9119_v33  ;;  %v9121_v11 = vld [vmem:[#allocation29_spill] sm:$0xff] }
 0x3ae   : > { %6484 = vmatmul.msk.bf16.gmra.mxu3 %vm681_vm1, %v7989_v35  ;;  %v2756_v43 = vadd.f32 %v7653_v23, %v2720_v30 }
 0x3af   : > { %v2242_v34 = vadd.f32 %v9121_v11, %v2019_v44 }
 0x3b0   : > { %v3147_v21 = vpop.f32.mrf.mxu2  ;;  %v2788_v19 = vmax.f32 %v2756_v43, 0.0 }
 0x3b1   : > { %v3148_v31 = vadd.f32 %v3147_v21, %v3007_v52  ;;  %v3337_v45 = vpop.f32.mrf.mxu3  ;;  %v2644_v12 = vpop.f32.mrf.mxu0  ;;  %v2464_v30 = vadd.f32 %v9122_v58, %v2242_v34  ;;  %v2903_v33 = vld [vmem:[#allocation2 + $0x1a8] sm:$0xff] }
 0x3b2   : > { %v3009_v15 = vpop.f32.mrf.mxu1  ;;  %2820 = vst.msk [vmem:[#allocation2 + $0x1b0] sm:$0xff] %vm681_vm1, %v2788_v19  ;;  %v2685_v36 = vadd.f32 %v2644_v12, %v2463_v60  ;;  %v2853_v19 = vld [vmem:[#allocation2 + $0x1a7] sm:$0xff] }
 0x3b3   : > { %v8005_v28 = vadd.f32 %v3337_v45, %v3148_v31 }
 0x3b4   : > { %v2721_v22 = vmul.f32 %v7647_v10, %v2685_v36  ;;  %6494 = vmatmul.msk.bf16.gmra.mxu0 %vm681_vm1, %v7809_v20 }
 0x3b6   : > { %v2757_v52 = vadd.f32 %v7653_v23, %v2721_v22 }
 0x3b8   : > { %v3149_v16 = vpop.f32.mrf.mxu2  ;;  %v2789_v43 = vmax.f32 %v2757_v52, 0.0 }
 0x3b9   : > { %v3150_v21 = vadd.f32 %v3149_v16, %v3009_v15  ;;  %v3339_v24 = vpop.f32.mrf.mxu3  ;;  %v2646_v31 = vpop.f32.mrf.mxu0  ;;  %v2904_v60 = vld [vmem:[#allocation2 + $0x1b0] sm:$0xff]  ;;  %v9125_v15 = vld [vmem:[#allocation14_spill] sm:$0xff] }
 0x3ba   : > { %v3012_v45 = vpop.f32.mrf.mxu1  ;;  %v2854_v12 = vld [vmem:[#allocation2 + $0x1af] sm:$0xff]  ;;  %2821 = vst.msk [vmem:[#allocation2 + $0x1c8] sm:$0xff] %vm681_vm1, %v2789_v43  ;;  %v2686_v36 = vadd.f32 %v2646_v31, %v2464_v30  ;;  %v8016_v11 = vpack.c.bf16 %v2904_v60, %v2903_v33  ;;  %v2243_v16 = vadd.f32 %v7741_v50, %v9125_v15 }
 0x3bb   : > { %v3233_v26 = vld [vmem:[#allocation2 + $0x1a9] sm:$0xff]  ;;  %v8014_v44 = vadd.f32 %v3339_v24, %v3150_v21  ;;  %v8018_v22 = vpack.c.bf16 %v2854_v12, %v2853_v19  ;;  %v3234_v34 = vld [vmem:[#allocation2 + $0x1b1] sm:$0xff]  ;;  %v9127_v12 = vld [vmem:[#allocation15_spill] sm:$0xff] }
 0x3bc   : > { %9123 = vst [vmem:[#allocation19_spill] sm:$0xff] %v8016_v11  ;;  %v8020_v52 = vpack.c.bf16 %v3234_v34, %v3233_v26  ;;  %v2722_v58 = vmul.f32 %v7647_v10, %v2686_v36  ;;  %6452 = vmatmul.msk.bf16.gmra.mxu1 %vm681_vm1, %v8016_v11  ;;  %v2465_v21 = vadd.f32 %v7746_v38, %v2243_v16  ;;  %v9126_v60 = vld [vmem:[#allocation16_spill] sm:$0xff] }
 0x3bd   : > { %6468 = vmatmul.msk.bf16.gmra.mxu2 %vm681_vm1, %v8018_v22  ;;  %v2021_v26 = vadd.f32 %v9127_v12, %v9126_v60 }
 0x3be   : > { %9124 = vst [vmem:[#allocation4_spill] sm:$0xff] %v8020_v52  ;;  %6485 = vmatmul.msk.bf16.gmra.mxu3 %vm681_vm1, %v8020_v52  ;;  %v2758_v30 = vadd.f32 %v7653_v23, %v2722_v58 }
 0x3bf   : > { %v2244_v15 = vadd.f32 %v7759_v57, %v2021_v26 }
 0x3c0   : > { %v3152_v43 = vpop.f32.mrf.mxu2  ;;  %v2790_v24 = vmax.f32 %v2758_v30, 0.0 }
 0x3c1   : > { %v3153_v33 = vadd.f32 %v3152_v43, %v3012_v45  ;;  %v3342_v19 = vpop.f32.mrf.mxu3  ;;  %v2649_v50 = vpop.f32.mrf.mxu0  ;;  %v2466_v16 = vadd.f32 %v7763_v53, %v2244_v15  ;;  %v2905_v12 = vld [vmem:[#allocation2 + $0x1c8] sm:$0xff]  ;;  %v6539_v15 = vld [vmem:[%s9054_s2 + $0x3c] sm:$0xf] }
 0x3c2   : > { %v3014_v31 = vpop.f32.mrf.mxu1  ;;  %2822 = vst.msk [vmem:[#allocation2 + $0x1d0] sm:$0xff] %vm681_vm1, %v2790_v24  ;;  %v2687_v34 = vadd.f32 %v2649_v50, %v2465_v21  ;;  %v2855_v24 = vld [vmem:[#allocation2 + $0x1c7] sm:$0xff] }
 0x3c3   : > { %v8036_v36 = vadd.f32 %v3342_v19, %v3153_v33 }
 0x3c4   : > { %v2723_v58 = vmul.f32 %v7647_v10, %v2687_v34  ;;  %6495 = vmatmul.msk.bf16.gmra.mxu0 %vm681_vm1, %v7834_v62 }
 0x3c6   : > { %v2759_v38 = vadd.f32 %v7653_v23, %v2723_v58 }
 0x3c8   : > { %v3154_v45 = vpop.f32.mrf.mxu2  ;;  %v2791_v30 = vmax.f32 %v2759_v38, 0.0 }
 0x3c9   : > { %v3155_v43 = vadd.f32 %v3154_v45, %v3014_v31  ;;  %v3344_v60 = vpop.f32.mrf.mxu3  ;;  %v2651_v33 = vpop.f32.mrf.mxu0  ;;  %v2906_v21 = vld [vmem:[#allocation2 + $0x1d0] sm:$0xff]  ;;  %v6522_v31 = vld [vmem:[%s9054_s2 + $0x38] sm:$0xf]  ;;  %v4194_v45 = vsel %vm903_vm0, %v6539_v15, 0 }
 0x3ca   : > { %v3017_v19 = vpop.f32.mrf.mxu1  ;;  %v2856_v50 = vld [vmem:[#allocation2 + $0x1cf] sm:$0xff]  ;;  %2823 = vst.msk [vmem:[#allocation2 + $0x1e8] sm:$0xff] %vm681_vm1, %v2791_v30  ;;  %v2688_v26 = vadd.f32 %v2651_v33, %v2466_v16  ;;  %v8047_v34 = vpack.c.bf16 %v2906_v21, %v2905_v12  ;;  %v3972_v38 = vsel %vm903_vm0, %v6522_v31, 0  ;;  %v6676_v12 = vld [vmem:[%s9056_s4] ss:$0 sm:$0xff]  ;;  %4203 = vmatpush.bf16.msra.mxu3 %v4194_v45  ;;  %v9131_v31 = vld [vmem:[#allocation18_spill] sm:$0xff] }
 0x3cb   : > { %v3235_v57 = vld [vmem:[#allocation2 + $0x1c9] sm:$0xff]  ;;  %v8045_v10 = vadd.f32 %v3344_v60, %v3155_v43  ;;  %v8049_v23 = vpack.c.bf16 %v2856_v50, %v2855_v24  ;;  %v3236_v53 = vld [vmem:[#allocation2 + $0x1d1] sm:$0xff]  ;;  %v6675_v43 = vld [vmem:[%s9055_s3] ss:$0 sm:$0xff]  ;;  %3981 = vmatpush.bf16.msra.mxu2 %v3972_v38  ;;  %v2023_v15 = vadd.f32 %v7789_v61, %v9131_v31 }
 0x3cc   : > { %9128 = vst [vmem:[#allocation3_spill] sm:$0xff] %v8047_v34  ;;  %v8057_v58 = vpack.c.bf16 %v3236_v53, %v3235_v57  ;;  %v9130_v16 = vld [vmem:[#allocation17_spill] sm:$0xff]  ;;  %v2724_v60 = vmul.f32 %v6675_v43, %v2688_v26  ;;  %6453 = vmatmul.msk.bf16.gmra.mxu1 %vm681_vm1, %v8047_v34 }
 0x3cd   : > { %v2245_v30 = vadd.f32 %v7772_v46, %v9130_v16  ;;  %6469 = vmatmul.msk.bf16.gmra.mxu2 %vm681_vm1, %v8049_v23 }
 0x3ce   : > { %9129 = vst [vmem:[#allocation20_spill] sm:$0xff] %v8057_v58  ;;  %6486 = vmatmul.msk.bf16.gmra.mxu3 %vm681_vm1, %v8057_v58  ;;  %v2760_v46 = vadd.f32 %v6676_v12, %v2724_v60  ;;  %v2246_v58 = vadd.f32 %v7791_v49, %v2023_v15 }
 0x3cf   : > { %v2467_v33 = vadd.f32 %v7775_v51, %v2245_v30 }
 0x3d0   : > { %v3157_v24 = vpop.f32.mrf.mxu2  ;;  %v2792_v21 = vmax.f32 %v2760_v46, 0.0 }
 0x3d1   : > { %v3158_v50 = vadd.f32 %v3157_v24, %v3017_v19  ;;  %v3347_v57 = vpop.f32.mrf.mxu3  ;;  %v2654_v26 = vpop.f32.mrf.mxu0  ;;  %v2468_v19 = vadd.f32 %v7796_v9, %v2246_v58  ;;  %v2907_v34 = vld [vmem:[#allocation2 + $0x1e8] sm:$0xff] }
 0x3d2   : > { %v3019_v53 = vpop.f32.mrf.mxu1  ;;  %2824 = vst.msk [vmem:[#allocation2 + $0x1f0] sm:$0xff] %vm681_vm1, %v2792_v21  ;;  %v2689_v16 = vadd.f32 %v2654_v26, %v2467_v33  ;;  %v2857_v61 = vld [vmem:[#allocation2 + $0x1e7] sm:$0xff] }
 0x3d3   : > { %v8079_v38 = vadd.f32 %v3347_v57, %v3158_v50 }
 0x3d4   : > { %v2725_v60 = vmul.f32 %v6675_v43, %v2689_v16  ;;  %6496 = vmatmul.msk.bf16.gmra.mxu0 %vm681_vm1, %v7857_v1 }
 0x3d6   : > { %v2761_v51 = vadd.f32 %v6676_v12, %v2725_v60 }
 0x3d8   : > { %v3159_v45 = vpop.f32.mrf.mxu2  ;;  %v2793_v30 = vmax.f32 %v2761_v51, 0.0 }
 0x3d9   : > { %v3160_v46 = vadd.f32 %v3159_v45, %v3019_v53  ;;  %v3349_v24 = vpop.f32.mrf.mxu3  ;;  %v2656_v31 = vpop.f32.mrf.mxu0  ;;  %v2908_v50 = vld [vmem:[#allocation2 + $0x1f0] sm:$0xff] }
 0x3da   : > { %v3022_v21 = vpop.f32.mrf.mxu1  ;;  %v2858_v57 = vld [vmem:[#allocation2 + $0x1ef] sm:$0xff]  ;;  %2825 = vst.msk [vmem:[#allocation2 + $0x208] sm:$0xff] %vm681_vm1, %v2793_v30  ;;  %v2690_v26 = vadd.f32 %v2656_v31, %v2468_v19  ;;  %v8088_v15 = vpack.c.bf16 %v2908_v50, %v2907_v34 }
 0x3db   : > { %v3237_v33 = vld [vmem:[#allocation2 + $0x1e9] sm:$0xff]  ;;  %v8086_v49 = vadd.f32 %v3349_v24, %v3160_v46  ;;  %v8090_v16 = vpack.c.bf16 %v2858_v57, %v2857_v61  ;;  %v3238_v9 = vld [vmem:[#allocation2 + $0x1f1] sm:$0xff] }
 0x3dc   : > { %9132 = vst [vmem:[#allocation21_spill] sm:$0xff] %v8088_v15  ;;  %v8092_v58 = vpack.c.bf16 %v3238_v9, %v3237_v33  ;;  %v2726_v53 = vmul.f32 %v6675_v43, %v2690_v26  ;;  %6454 = vmatmul.msk.bf16.gmra.mxu1 %vm681_vm1, %v8088_v15  ;;  %v3652_v31 = vld [vmem:[#allocation2 + $0x30] sm:$0xff]  ;;  %v3651_v9 = vld [vmem:[#allocation2 + $0x28] sm:$0xff] }
 0x3dd   : > { %6470 = vmatmul.msk.bf16.gmra.mxu2 %vm681_vm1, %v8090_v16  ;;  %v3873_v50 = vld [vmem:[#allocation2 + $0x29] sm:$0xff] }
 0x3de   : > { %9133 = vst [vmem:[#allocation5_spill] sm:$0xff] %v8092_v58  ;;  %6487 = vmatmul.msk.bf16.gmra.mxu3 %vm681_vm1, %v8092_v58  ;;  %v2762_v60 = vadd.f32 %v6676_v12, %v2726_v53  ;;  %v3874_v12 = vld [vmem:[#allocation2 + $0x31] sm:$0xff] }
 0x3e0   : > { %v3162_v51 = vpop.f32.mrf.mxu2  ;;  %v2794_v45 = vmax.f32 %v2762_v60, 0.0  ;;  %v3683_v60 = vpack.c.bf16 %v3652_v31, %v3651_v9 }
 0x3e1   : > { %v3163_v34 = vadd.f32 %v3162_v51, %v3022_v21  ;;  %v3352_v19 = vpop.f32.mrf.mxu3  ;;  %v3539_v46 = vpop.f32.mrf.mxu0  ;;  %v3905_v51 = vpack.c.bf16 %v3874_v12, %v3873_v50  ;;  %v3654_v50 = vld [vmem:[#allocation2 + $0x50] sm:$0xff] }
 0x3e2   : > { %v3024_v30 = vpop.f32.mrf.mxu1  ;;  %2826 = vst.msk [vmem:[#allocation2 + $0x210] sm:$0xff] %vm681_vm1, %v2794_v45  ;;  %v8104_v43 = vadd.f32 %v3539_v46, %v7819_v37  ;;  %v3875_v12 = vld [vmem:[#allocation2 + $0x49] sm:$0xff] }
 0x3e3   : > { %v8101_v24 = vadd.f32 %v3352_v19, %v3163_v34 }
 0x3e4   : > { %6497 = vmatmul.msk.bf16.gmra.mxu0 %vm681_vm1, %v7890_v8 }
 0x3e8   : > { %v3164_v61 = vpop.f32.mrf.mxu2 }
 0x3e9   : > { %v3165_v57 = vadd.f32 %v3164_v61, %v3024_v30  ;;  %v3354_v33 = vpop.f32.mrf.mxu3  ;;  %v8108_v26 = vpop.f32.mrf.mxu0 }
 0x3ea   : > { %v3027_v21 = vpop.f32.mrf.mxu1 }
 0x3eb   : > { %v8110_v53 = vadd.f32 %v3354_v33, %v3165_v57  ;;  %v3876_v57 = vld [vmem:[#allocation2 + $0x51] sm:$0xff] }
 0x3ec   : > { %6506 = vmatmul.msk.bf16.vlgmr.msrb.gmra.mxu1 %vm681_vm1, %v3683_v60 }
 0x3ed   : > { %6523 = vmatmul.msk.bf16.vlgmr.msra.gmra.mxu2 %vm681_vm1, %v3905_v51 }
 0x3ee   : > { %6540 = vmatmul.msk.bf16.vlgmr.msra.gmra.mxu3 %vm681_vm1, %v7704_v3 }
 0x3f0   : > { %v3167_v37 = vpop.f32.mrf.mxu2 }
 0x3f1   : > { %v3168_v45 = vadd.f32 %v3167_v37, %v3027_v21  ;;  %v3357_v34 = vpop.f32.mrf.mxu3  ;;  %v3544_v30 = vpop.f32.mrf.mxu0  ;;  %v3653_v21 = vld [vmem:[#allocation2 + $0x48] sm:$0xff] }
 0x3f2   : > { %v3029_v19 = vpop.f32.mrf.mxu1  ;;  %v8119_v61 = vadd.f32 %v3544_v30, %v7908_v47  ;;  %v8130_v47 = vpack.c.bf16 %v3876_v57, %v3875_v12  ;;  %v3656_v57 = vld [vmem:[#allocation2 + $0x70] sm:$0xff] }
 0x3f3   : > { %v8116_v46 = vadd.f32 %v3357_v34, %v3168_v45  ;;  %v8128_v45 = vpack.c.bf16 %v3654_v50, %v3653_v21 }
 0x3f4   : > { %6498 = vmatmul.msk.bf16.gmra.mxu0 %vm681_vm1, %v7921_v18  ;;  %9134 = vst [vmem:[#allocation22_spill] sm:$0xff] %v8130_v47 }
 0x3f8   : > { %v3169_v31 = vpop.f32.mrf.mxu2 }
 0x3f9   : > { %v3170_v33 = vadd.f32 %v3169_v31, %v3029_v19  ;;  %v3359_v9 = vpop.f32.mrf.mxu3  ;;  %v3546_v60 = vpop.f32.mrf.mxu0 }
 0x3fa   : > { %v3032_v3 = vpop.f32.mrf.mxu1  ;;  %v8126_v37 = vadd.f32 %v3546_v60, %v7917_v5  ;;  %v3878_v60 = vld [vmem:[#allocation2 + $0x71] sm:$0xff] }
 0x3fb   : > { %v8123_v51 = vadd.f32 %v3359_v9, %v3170_v33  ;;  %v3877_v9 = vld [vmem:[#allocation2 + $0x69] sm:$0xff] }
 0x3fc   : > { %6507 = vmatmul.msk.bf16.gmra.mxu1 %vm681_vm1, %v8128_v45 }
 0x3fd   : > { %6524 = vmatmul.msk.bf16.gmra.mxu2 %vm681_vm1, %v8130_v47 }
 0x3fe   : > { %6541 = vmatmul.msk.bf16.gmra.mxu3 %vm681_vm1, %v7727_v63 }
 0x400   : > { %v3172_v34 = vpop.f32.mrf.mxu2 }
 0x401   : > { %v3173_v19 = vadd.f32 %v3172_v34, %v3032_v3  ;;  %v3362_v30 = vpop.f32.mrf.mxu3  ;;  %v3549_v33 = vpop.f32.mrf.mxu0  ;;  %v3655_v3 = vld [vmem:[#allocation2 + $0x68] sm:$0xff] }
 0x402   : > { %v3034_v31 = vpop.f32.mrf.mxu1  ;;  %v8141_v50 = vadd.f32 %v3549_v33, %v7939_v14  ;;  %v8152_v14 = vpack.c.bf16 %v3878_v60, %v3877_v9  ;;  %v3658_v9 = vld [vmem:[#allocation2 + $0x90] sm:$0xff] }
 0x403   : > { %v8138_v5 = vadd.f32 %v3362_v30, %v3173_v19  ;;  %v8150_v30 = vpack.c.bf16 %v3656_v57, %v3655_v3  ;;  %v3879_v60 = vld [vmem:[#allocation2 + $0x89] sm:$0xff]  ;;  %v3880_v3 = vld [vmem:[#allocation2 + $0x91] sm:$0xff] }
 0x404   : > { %6499 = vmatmul.msk.bf16.gmra.mxu0 %vm681_vm1, %v7956_v0  ;;  %9135 = vst [vmem:[#allocation7_spill] sm:$0xff] %v8152_v14 }
 0x408   : > { %v3174_v12 = vpop.f32.mrf.mxu2 }
 0x409   : > { %v3175_v21 = vadd.f32 %v3174_v12, %v3034_v31  ;;  %v3364_v47 = vpop.f32.mrf.mxu3  ;;  %v3551_v58 = vpop.f32.mrf.mxu0 }
 0x40a   : > { %v3037_v63 = vpop.f32.mrf.mxu1  ;;  %v8148_v19 = vadd.f32 %v3551_v58, %v7952_v32 }
 0x40b   : > { %v8145_v34 = vadd.f32 %v3364_v47, %v3175_v21 }
 0x40c   : > { %6508 = vmatmul.msk.bf16.gmra.mxu1 %vm681_vm1, %v8150_v30 }
 0x40d   : > { %6525 = vmatmul.msk.bf16.gmra.mxu2 %vm681_vm1, %v8152_v14 }
 0x40e   : > { %6542 = vmatmul.msk.bf16.gmra.mxu3 %vm681_vm1, %v7750_v54 }
 0x410   : > { %v3177_v31 = vpop.f32.mrf.mxu2 }
 0x411   : > { %v3178_v33 = vadd.f32 %v3177_v31, %v3037_v63  ;;  %v3367_v47 = vpop.f32.mrf.mxu3  ;;  %v3554_v21 = vpop.f32.mrf.mxu0  ;;  %v3657_v63 = vld [vmem:[#allocation2 + $0x88] sm:$0xff] }
 0x412   : > { %v3039_v12 = vpop.f32.mrf.mxu1  ;;  %v8163_v58 = vadd.f32 %v3554_v21, %v7974_v17  ;;  %v8174_v17 = vpack.c.bf16 %v3880_v3, %v3879_v60  ;;  %v3660_v60 = vld [vmem:[#allocation2 + $0xb0] sm:$0xff] }
 0x413   : > { %v8160_v32 = vadd.f32 %v3367_v47, %v3178_v33  ;;  %v8172_v47 = vpack.c.bf16 %v3658_v9, %v3657_v63  ;;  %v3881_v3 = vld [vmem:[#allocation2 + $0xa9] sm:$0xff]  ;;  %v3882_v63 = vld [vmem:[#allocation2 + $0xb1] sm:$0xff] }
 0x414   : > { %6500 = vmatmul.msk.bf16.gmra.mxu0 %vm681_vm1, %v7987_v6  ;;  %9137 = vst [vmem:[#allocation23_spill] sm:$0xff] %v8174_v17 }
 0x418   : > { %v3179_v57 = vpop.f32.mrf.mxu2 }
 0x419   : > { %v3180_v14 = vadd.f32 %v3179_v57, %v3039_v12  ;;  %v3369_v15 = vpop.f32.mrf.mxu3  ;;  %v3556_v52 = vpop.f32.mrf.mxu0 }
 0x41a   : > { %v3042_v54 = vpop.f32.mrf.mxu1  ;;  %v8170_v33 = vadd.f32 %v3556_v52, %v7983_v27 }
 0x41b   : > { %v8167_v31 = vadd.f32 %v3369_v15, %v3180_v14 }
 0x41c   : > { %9136 = vst [vmem:[#allocation6_spill] sm:$0xff] %v8170_v33  ;;  %6509 = vmatmul.msk.bf16.gmra.mxu1 %vm681_vm1, %v8172_v47 }
 0x41d   : > { %6526 = vmatmul.msk.bf16.gmra.mxu2 %vm681_vm1, %v8174_v17 }
 0x41e   : > { %6543 = vmatmul.msk.bf16.gmra.mxu3 %vm681_vm1, %v7778_v39 }
 0x420   : > { %v3182_v12 = vpop.f32.mrf.mxu2 }
 0x421   : > { %v3183_v21 = vadd.f32 %v3182_v12, %v3042_v54  ;;  %v3372_v15 = vpop.f32.mrf.mxu3  ;;  %v3559_v57 = vpop.f32.mrf.mxu0  ;;  %v3659_v54 = vld [vmem:[#allocation2 + $0xa8] sm:$0xff] }
 0x422   : > { %v3044_v14 = vpop.f32.mrf.mxu1  ;;  %v8185_v52 = vadd.f32 %v3559_v57, %v8005_v28  ;;  %v8196_v28 = vpack.c.bf16 %v3882_v63, %v3881_v3  ;;  %v3662_v3 = vld [vmem:[#allocation2 + $0xd0] sm:$0xff] }
 0x423   : > { %v8182_v27 = vadd.f32 %v3372_v15, %v3183_v21  ;;  %v8194_v15 = vpack.c.bf16 %v3660_v60, %v3659_v54 }
 0x424   : > { %9138 = vst [vmem:[#allocation24_spill] sm:$0xff] %v8185_v52  ;;  %6501 = vmatmul.msk.bf16.gmra.mxu0 %vm681_vm1, %v8018_v22 }
 0x425   : > { %9140 = vst [vmem:[#allocation25_spill] sm:$0xff] %v8196_v28 }
 0x428   : > { %v3184_v9 = vpop.f32.mrf.mxu2 }
 0x429   : > { %v3185_v17 = vadd.f32 %v3184_v9, %v3044_v14  ;;  %v3374_v11 = vpop.f32.mrf.mxu3  ;;  %v3561_v33 = vpop.f32.mrf.mxu0 }
 0x42a   : > { %v3047_v39 = vpop.f32.mrf.mxu1  ;;  %v8192_v21 = vadd.f32 %v3561_v33, %v8014_v44 }
 0x42b   : > { %v8189_v12 = vadd.f32 %v3374_v11, %v3185_v17 }
 0x42c   : > { %9139 = vst [vmem:[#allocation8_spill] sm:$0xff] %v8192_v21  ;;  %6510 = vmatmul.msk.bf16.gmra.mxu1 %vm681_vm1, %v8194_v15 }
 0x42d   : > { %6527 = vmatmul.msk.bf16.gmra.mxu2 %vm681_vm1, %v8196_v28 }
 0x42e   : > { %6544 = vmatmul.msk.bf16.gmra.mxu3 %vm681_vm1, %v7809_v20  ;;  %v3661_v20 = vld [vmem:[#allocation2 + $0xc8] sm:$0xff] }
 0x430   : > { %v3187_v14 = vpop.f32.mrf.mxu2 }
 0x431   : > { %v3188_v57 = vadd.f32 %v3187_v14, %v3047_v39  ;;  %v3377_v11 = vpop.f32.mrf.mxu3  ;;  %v3564_v9 = vpop.f32.mrf.mxu0  ;;  %v8216_v14 = vpack.c.bf16 %v3662_v3, %v3661_v20 }
 0x432   : > { %v3049_v17 = vpop.f32.mrf.mxu1  ;;  %v8207_v33 = vadd.f32 %v3564_v9, %v8036_v36 }
 0x433   : > { %v8204_v44 = vadd.f32 %v3377_v11, %v3188_v57 }
 0x434   : > { %6502 = vmatmul.msk.bf16.gmra.mxu0 %vm681_vm1, %v8049_v23 }
 0x438   : > { %v3189_v60 = vpop.f32.mrf.mxu2 }
 0x439   : > { %v3190_v63 = vadd.f32 %v3189_v60, %v3049_v17  ;;  %v3379_v54 = vpop.f32.mrf.mxu3  ;;  %v3566_v21 = vpop.f32.mrf.mxu0 }
 0x43a   : > { %v3052_v28 = vpop.f32.mrf.mxu1  ;;  %v8214_v39 = vadd.f32 %v3566_v21, %v8045_v10  ;;  %v6556_v21 = vld [vmem:[%s9054_s2 + $0x40] sm:$0xf] }
 0x43b   : > { %v8211_v52 = vadd.f32 %v3379_v54, %v3190_v63  ;;  %v4416_v3 = vsel %vm903_vm0, %v6556_v21, 0  ;;  %v3886_v63 = vld [vmem:[#allocation2 + $0xf1] sm:$0xff] }
 0x43c   : > { %9141 = vst [vmem:[#allocation10_spill] sm:$0xff] %v8214_v39  ;;  %6511 = vmatmul.msk.bf16.gmra.mxu1 %vm681_vm1, %v8216_v14  ;;  %4425 = vmatpush.bf16.msra.mxu0 %v4416_v3  ;;  %v3460_v3 = vld [vmem:[#allocation2 + $0x20f] sm:$0xff] }
 0x43d   : > { %6528 = vmatmul.msk.bf16.gmra.mxu2 %vm681_vm1, %v7811_v2 }
 0x43e   : > { %6545 = vmatmul.msk.bf16.gmra.mxu3 %vm681_vm1, %v7834_v62  ;;  %v3664_v62 = vld [vmem:[#allocation2 + $0xf0] sm:$0xff] }
 0x440   : > { %v3192_v36 = vpop.f32.mrf.mxu2 }
 0x441   : > { %v3193_v57 = vadd.f32 %v3192_v36, %v3052_v28  ;;  %v3382_v11 = vpop.f32.mrf.mxu3  ;;  %v3569_v9 = vpop.f32.mrf.mxu0  ;;  %v3885_v28 = vld [vmem:[#allocation2 + $0xe9] sm:$0xff] }
 0x442   : > { %v3054_v17 = vpop.f32.mrf.mxu1  ;;  %v8227_v10 = vadd.f32 %v3569_v9, %v8079_v38  ;;  %v3663_v38 = vld [vmem:[#allocation2 + $0xe8] sm:$0xff]  ;;  %v8242_v21 = vpack.c.bf16 %v3886_v63, %v3885_v28 }
 0x443   : > { %v8224_v60 = vadd.f32 %v3382_v11, %v3193_v57 }
 0x444   : > { %9142 = vst [vmem:[#allocation9_spill] sm:$0xff] %v8227_v10  ;;  %6503 = vmatmul.msk.bf16.gmra.mxu0 %vm681_vm1, %v8090_v16  ;;  %v8240_v10 = vpack.c.bf16 %v3664_v62, %v3663_v38 }
 0x445   : > { %9144 = vst [vmem:[#allocation27_spill] sm:$0xff] %v8242_v21 }
 0x448   : > { %v3194_v2 = vpop.f32.mrf.mxu2 }
 0x449   : > { %v3195_v54 = vadd.f32 %v3194_v2, %v3054_v17  ;;  %v3384_v20 = vpop.f32.mrf.mxu3  ;;  %v3571_v57 = vpop.f32.mrf.mxu0 }
 0x44a   : > { %v3057_v36 = vpop.f32.mrf.mxu1  ;;  %v8238_v9 = vadd.f32 %v3571_v57, %v8086_v49  ;;  %v3459_v57 = vld [vmem:[#allocation2 + $0x207] sm:$0xff] }
 0x44b   : > { %v8235_v11 = vadd.f32 %v3384_v20, %v3195_v54  ;;  %v8255_v63 = vpack.c.bf16 %v3460_v3, %v3459_v57 }
 0x44c   : > { %9143 = vst [vmem:[#allocation26_spill] sm:$0xff] %v8238_v9  ;;  %6512 = vmatmul.msk.bf16.gmra.mxu1 %vm681_vm1, %v8240_v10 }
 0x44d   : > { %6529 = vmatmul.msk.bf16.gmra.mxu2 %vm681_vm1, %v8242_v21 }
 0x44e   : > { %6546 = vmatmul.msk.bf16.gmra.mxu3 %vm681_vm1, %v7857_v1 }
 0x450   : > { %v3197_v17 = vpop.f32.mrf.mxu2 }
 0x451   : > { %v3198_v2 = vadd.f32 %v3197_v17, %v3057_v36  ;;  %v3387_v54 = vpop.f32.mrf.mxu3  ;;  %v3574_v49 = vpop.f32.mrf.mxu0 }
 0x452   : > { %v3059_v20 = vpop.f32.mrf.mxu1  ;;  %v8253_v28 = vadd.f32 %v3574_v49, %v8101_v24 }
 0x453   : > { %v8250_v62 = vadd.f32 %v3387_v54, %v3198_v2 }
 0x454   : > { %6504 = vmatmul.msk.bf16.gmra.mxu0 %vm681_vm1, %v8255_v63 }
 0x458   : > { %v3199_v38 = vpop.f32.mrf.mxu2 }
 0x459   : > { %v3200_v21 = vadd.f32 %v3199_v38, %v3059_v20  ;;  %v3389_v1 = vpop.f32.mrf.mxu3  ;;  %v3576_v39 = vpop.f32.mrf.mxu0 }
 0x45a   : > { %v3062_v9 = vpop.f32.mrf.mxu1  ;;  %v8262_v17 = vadd.f32 %v3576_v39, %v8110_v53 }
 0x45b   : > { %v8259_v36 = vadd.f32 %v3389_v1, %v3200_v21 }
 0x45c   : > { %6513 = vmatmul.msk.bf16.gmra.mxu1 %vm681_vm1, %v7855_v7 }
 0x45d   : > { %6530 = vmatmul.msk.bf16.gmra.mxu2 %vm681_vm1, %v7859_v59 }
 0x45e   : > { %6547 = vmatmul.msk.bf16.gmra.mxu3 %vm681_vm1, %v7890_v8  ;;  %v3130_v8 = vadd.f32 %v7882_v25, %v7872_v29 }
 0x460   : > { %v3202_v24 = vpop.f32.mrf.mxu2 }
 0x461   : > { %v3203_v3 = vadd.f32 %v3202_v24, %v3062_v9  ;;  %v3392_v2 = vpop.f32.mrf.mxu3  ;;  %v3579_v20 = vpop.f32.mrf.mxu0 }
 0x462   : > { %v3064_v54 = vpop.f32.mrf.mxu1  ;;  %v8273_v21 = vadd.f32 %v3579_v20, %v8116_v46  ;;  %v3398_v46 = vadd.f32 %v7885_v4, %v3130_v8 }
 0x463   : > { %v8270_v49 = vadd.f32 %v3392_v2, %v3203_v3 }
 0x464   : > { %6557 = vmatmul.msk.bf16.vlgmr.msra.gmra.mxu0 %vm681_vm1, %v8128_v45  ;;  %v3620_v29 = vadd.f32 %v8108_v26, %v3398_v46 }
 0x468   : > { %v3204_v7 = vpop.f32.mrf.mxu2 }
 0x469   : > { %v3205_v53 = vadd.f32 %v3204_v7, %v3064_v54  ;;  %v3394_v39 = vpop.f32.mrf.mxu3  ;;  %v3581_v59 = vpop.f32.mrf.mxu0 }
 0x46a   : > { %v3761_v57 = vpop.f32.mrf.mxu1  ;;  %v8282_v38 = vadd.f32 %v3581_v59, %v8123_v51 }
 0x46b   : > { %v8279_v9 = vadd.f32 %v3394_v39, %v3205_v53  ;;  %v3841_v1 = vadd.f32 %v3761_v57, %v8104_v43 }
 0x46c   : > { %6514 = vmatmul.msk.bf16.gmra.mxu1 %vm681_vm1, %v7888_v48 }
 0x46d   : > { %6531 = vmatmul.msk.bf16.gmra.mxu2 %vm681_vm1, %v7892_v13 }
 0x46e   : > { %6548 = vmatmul.msk.bf16.gmra.mxu3 %vm681_vm1, %v7921_v18 }
 0x470   : > { %v3983_v45 = vpop.f32.mrf.mxu2 }
 0x471   : > { %v4063_v25 = vadd.f32 %v3983_v45, %v3841_v1  ;;  %v4205_v24 = vpop.f32.mrf.mxu3  ;;  %v3584_v51 = vpop.f32.mrf.mxu0 }
 0x472   : > { %v3763_v3 = vpop.f32.mrf.mxu1  ;;  %v8296_v43 = vadd.f32 %v3584_v51, %v8138_v5 }
 0x473   : > { %v8293_v2 = vadd.f32 %v4205_v24, %v4063_v25  ;;  %v3842_v48 = vadd.f32 %v3763_v3, %v3620_v29 }
 0x474   : > { %6558 = vmatmul.msk.bf16.gmra.mxu0 %vm681_vm1, %v8150_v30 }
 0x478   : > { %v3985_v13 = vpop.f32.mrf.mxu2 }
 0x479   : > { %v4064_v18 = vadd.f32 %v3985_v13, %v3842_v48  ;;  %v4207_v54 = vpop.f32.mrf.mxu3  ;;  %v3586_v4 = vpop.f32.mrf.mxu0 }
 0x47a   : > { %v3766_v20 = vpop.f32.mrf.mxu1  ;;  %v8303_v26 = vadd.f32 %v3586_v4, %v8145_v34 }
 0x47b   : > { %v8300_v7 = vadd.f32 %v4207_v54, %v4064_v18  ;;  %v3843_v53 = vadd.f32 %v3766_v20, %v8119_v61 }
 0x47c   : > { %6515 = vmatmul.msk.bf16.gmra.mxu1 %vm681_vm1, %v7919_v56 }
 0x47d   : > { %6532 = vmatmul.msk.bf16.gmra.mxu2 %vm681_vm1, %v7923_v40 }
 0x47e   : > { %6549 = vmatmul.msk.bf16.gmra.mxu3 %vm681_vm1, %v7956_v0 }
 0x480   : > { %v3988_v5 = vpop.f32.mrf.mxu2 }
 0x481   : > { %v4065_v30 = vadd.f32 %v3988_v5, %v3843_v53  ;;  %v4210_v39 = vpop.f32.mrf.mxu3  ;;  %v3589_v59 = vpop.f32.mrf.mxu0 }
 0x482   : > { %v3768_v57 = vpop.f32.mrf.mxu1  ;;  %v8315_v34 = vadd.f32 %v3589_v59, %v8160_v32 }
 0x483   : > { %v8312_v8 = vadd.f32 %v4210_v39, %v4065_v30  ;;  %v3844_v61 = vadd.f32 %v3768_v57, %v8126_v37  ;;  %v6573_v37 = vld [vmem:[%s9054_s2 + $0x44] sm:$0xf] }
 0x484   : > { %6559 = vmatmul.msk.bf16.gmra.mxu0 %vm681_vm1, %v8172_v47  ;;  %v4638_v32 = vsel %vm903_vm0, %v6573_v37, 0 }
 0x485   : > { %4647 = vmatpush.bf16.msra.mxu1 %v4638_v32  ;;  %v9149_v32 = vld [vmem:[#allocation8_spill] sm:$0xff] }
 0x488   : > { %v3990_v56 = vpop.f32.mrf.mxu2 }
 0x489   : > { %v4066_v40 = vadd.f32 %v3990_v56, %v3844_v61  ;;  %v4212_v1 = vpop.f32.mrf.mxu3  ;;  %v3591_v46 = vpop.f32.mrf.mxu0 }
 0x48a   : > { %v3771_v0 = vpop.f32.mrf.mxu1  ;;  %v8323_v29 = vadd.f32 %v3591_v46, %v8167_v31 }
 0x48b   : > { %v8320_v45 = vadd.f32 %v4212_v1, %v4066_v40  ;;  %v3845_v25 = vadd.f32 %v3771_v0, %v8141_v50  ;;  %v9146_v1 = vld [vmem:[#allocation24_spill] sm:$0xff] }
 0x48c   : > { %6516 = vmatmul.msk.bf16.gmra.mxu1 %vm681_vm1, %v7954_v55  ;;  %v9148_v0 = vld [vmem:[#allocation4_spill] sm:$0xff] }
 0x48d   : > { %6533 = vmatmul.msk.bf16.gmra.mxu2 %vm681_vm1, %v7958_v42 }
 0x48e   : > { %6550 = vmatmul.msk.bf16.gmra.mxu3 %vm681_vm1, %v7987_v6 }
 0x490   : > { %v3993_v47 = vpop.f32.mrf.mxu2 }
 0x491   : > { %v4067_v31 = vadd.f32 %v3993_v47, %v3845_v25  ;;  %v4215_v24 = vpop.f32.mrf.mxu3  ;;  %v3594_v50 = vpop.f32.mrf.mxu0 }
 0x492   : > { %v3773_v51 = vpop.f32.mrf.mxu1  ;;  %v8339_v55 = vadd.f32 %v3594_v50, %v8182_v27 }
 0x493   : > { %v8336_v3 = vadd.f32 %v4215_v24, %v4067_v31  ;;  %v3846_v42 = vadd.f32 %v3773_v51, %v8148_v19  ;;  %v9151_v51 = vld [vmem:[#allocation20_spill] sm:$0xff] }
 0x494   : > { %6560 = vmatmul.msk.bf16.gmra.mxu0 %vm681_vm1, %v8194_v15 }
 0x498   : > { %v3995_v6 = vpop.f32.mrf.mxu2 }
 0x499   : > { %v4068_v48 = vadd.f32 %v3995_v6, %v3846_v42  ;;  %v4217_v13 = vpop.f32.mrf.mxu3  ;;  %v3596_v18 = vpop.f32.mrf.mxu0  ;;  %v4329_v6 = vld [vmem:[#allocation2 + $0x108] sm:$0xff] }
 0x49a   : > { %v3776_v54 = vpop.f32.mrf.mxu1  ;;  %v8347_v20 = vadd.f32 %v3596_v18, %v8189_v12 }
 0x49b   : > { %v8344_v4 = vadd.f32 %v4217_v13, %v4068_v48  ;;  %v3847_v53 = vadd.f32 %v3776_v54, %v8163_v58  ;;  %v9145_v58 = vld [vmem:[#allocation6_spill] sm:$0xff] }
 0x49c   : > { %6517 = vmatmul.msk.bf16.gmra.mxu1 %vm681_vm1, %v7985_v41 }
 0x49d   : > { %6534 = vmatmul.msk.bf16.gmra.mxu2 %vm681_vm1, %v7989_v35 }
 0x49e   : > { %6551 = vmatmul.msk.bf16.gmra.mxu3 %vm681_vm1, %v8018_v22 }
 0x4a0   : > { %v3998_v19 = vpop.f32.mrf.mxu2 }
 0x4a1   : > { %v4069_v27 = vadd.f32 %v3998_v19, %v3847_v53  ;;  %v4220_v15 = vpop.f32.mrf.mxu3  ;;  %v3599_v5 = vpop.f32.mrf.mxu0  ;;  %v9153_v19 = vld [vmem:[#allocation9_spill] sm:$0xff] }
 0x4a2   : > { %v3778_v30 = vpop.f32.mrf.mxu1  ;;  %v8359_v12 = vadd.f32 %v3599_v5, %v8204_v44  ;;  %v9147_v44 = vld [vmem:[#allocation19_spill] sm:$0xff] }
 0x4a3   : > { %v8356_v39 = vadd.f32 %v4220_v15, %v4069_v27  ;;  %v3848_v59 = vadd.f32 %v3778_v30, %v9145_v58  ;;  %v9154_v27 = vld [vmem:[#allocation21_spill] sm:$0xff]  ;;  %v4331_v58 = vld [vmem:[#allocation2 + $0x128] sm:$0xff] }
 0x4a4   : > { %6561 = vmatmul.msk.bf16.gmra.mxu0 %vm681_vm1, %v8216_v14  ;;  %v9155_v15 = vld [vmem:[#allocation5_spill] sm:$0xff] }
 0x4a8   : > { %v4000_v41 = vpop.f32.mrf.mxu2 }
 0x4a9   : > { %v4070_v35 = vadd.f32 %v4000_v41, %v3848_v59  ;;  %v4222_v57 = vpop.f32.mrf.mxu3  ;;  %v3601_v61 = vpop.f32.mrf.mxu0 }
 0x4aa   : > { %v3781_v22 = vpop.f32.mrf.mxu1  ;;  %v8367_v40 = vadd.f32 %v3601_v61, %v8211_v52  ;;  %v4126_v61 = vld [vmem:[#allocation2 + $0x22f] sm:$0xff] }
 0x4ab   : > { %v8364_v56 = vadd.f32 %v4222_v57, %v4070_v35  ;;  %v8370_v46 = vadd.f32 %v3781_v22, %v9146_v1  ;;  %v4125_v57 = vld [vmem:[#allocation2 + $0x227] sm:$0xff]  ;;  %v3682_v22 = vld [vmem:[#allocation2 + $0x210] sm:$0xff] }
 0x4ac   : > { %6518 = vmatmul.msk.bf16.gmra.mxu1 %vm681_vm1, %v9147_v44  ;;  %v3903_v1 = vld [vmem:[#allocation2 + $0x209] sm:$0xff]  ;;  %v3904_v44 = vld [vmem:[#allocation2 + $0x211] sm:$0xff] }
 0x4ad   : > { %6535 = vmatmul.msk.bf16.gmra.mxu2 %vm681_vm1, %v9148_v0 }
 0x4ae   : > { %6552 = vmatmul.msk.bf16.gmra.mxu3 %vm681_vm1, %v8049_v23  ;;  %v9150_v23 = vld [vmem:[#allocation3_spill] sm:$0xff] }
 0x4b1   : > { %v3604_v14 = vpop.f32.mrf.mxu0 }
 0x4b2   : > { %v3783_v25 = vpop.f32.mrf.mxu1  ;;  %v8379_v37 = vadd.f32 %v3604_v14, %v8224_v60  ;;  %v4330_v60 = vld [vmem:[#allocation2 + $0x110] sm:$0xff]  ;;  %v3681_v14 = vld [vmem:[#allocation2 + $0x208] sm:$0xff] }
 0x4b3   : > { %v8382_v52 = vadd.f32 %v3783_v25, %v9149_v32  ;;  %v4142_v25 = vpack.c.bf16 %v4126_v61, %v4125_v57  ;;  %v4337_v61 = vld [vmem:[#allocation2 + $0x188] sm:$0xff] }
 0x4b4   : > { %6562 = vmatmul.msk.bf16.gmra.mxu0 %vm681_vm1, %v8240_v10 }
 0x4b9   : > { %v3606_v47 = vpop.f32.mrf.mxu0 }
 0x4ba   : > { %v3786_v31 = vpop.f32.mrf.mxu1  ;;  %v8387_v24 = vadd.f32 %v3606_v47, %v8235_v11  ;;  %v9152_v11 = vld [vmem:[#allocation10_spill] sm:$0xff]  ;;  %v8430_v47 = vpack.c.bf16 %v3682_v22, %v3681_v14  ;;  %v4340_v14 = vld [vmem:[#allocation2 + $0x1b0] sm:$0xff] }
 0x4bb   : > { %v8390_v50 = vadd.f32 %v3786_v31, %v8207_v33  ;;  %v4355_v33 = vpack.c.bf16 %v4330_v60, %v4329_v6  ;;  %v8432_v31 = vpack.c.bf16 %v3904_v44, %v3903_v1 }
 0x4bc   : > { %6519 = vmatmul.msk.bf16.gmra.mxu1 %vm681_vm1, %v9150_v23  ;;  %v4334_v23 = vld [vmem:[#allocation2 + $0x150] sm:$0xff] }
 0x4bd   : > { %6536 = vmatmul.msk.bf16.gmra.mxu2 %vm681_vm1, %v9151_v51 }
 0x4be   : > { %6553 = vmatmul.msk.bf16.gmra.mxu3 %vm681_vm1, %v8090_v16 }
 0x4c1   : > { %v3609_v42 = vpop.f32.mrf.mxu0 }
 0x4c2   : > { %v3788_v10 = vpop.f32.mrf.mxu1  ;;  %v8399_v48 = vadd.f32 %v3609_v42, %v8250_v62  ;;  %v4332_v62 = vld [vmem:[#allocation2 + $0x130] sm:$0xff] }
 0x4c3   : > { %v8402_v13 = vadd.f32 %v3788_v10, %v9152_v11  ;;  %v4356_v35 = vpack.c.bf16 %v4332_v62, %v4331_v58 }
 0x4c4   : > { %6563 = vmatmul.msk.bf16.gmra.mxu0 %vm681_vm1, %v4355_v33 }
 0x4c9   : > { %v3611_v18 = vpop.f32.mrf.mxu0 }
 0x4ca   : > { %v3791_v54 = vpop.f32.mrf.mxu1  ;;  %v8406_v53 = vadd.f32 %v3611_v18, %v8259_v36  ;;  %v9156_v36 = vld [vmem:[#allocation26_spill] sm:$0xff] }
 0x4cb   : > { %v8409_v16 = vadd.f32 %v3791_v54, %v9153_v19  ;;  %v9157_v54 = vld [vmem:[#allocation22_spill] sm:$0xff]  ;;  %v4336_v19 = vld [vmem:[#allocation2 + $0x170] sm:$0xff] }
 0x4cc   : > { %6520 = vmatmul.msk.bf16.gmra.mxu1 %vm681_vm1, %v9154_v27 }
 0x4cd   : > { %6537 = vmatmul.msk.bf16.gmra.mxu2 %vm681_vm1, %v9155_v15  ;;  %v4335_v15 = vld [vmem:[#allocation2 + $0x168] sm:$0xff] }
 0x4ce   : > { %6554 = vmatmul.msk.bf16.gmra.mxu3 %vm681_vm1, %v8255_v63 }
 0x4d1   : > { %v3614_v5 = vpop.f32.mrf.mxu0 }
 0x4d2   : > { %v3793_v30 = vpop.f32.mrf.mxu1  ;;  %v8418_v59 = vadd.f32 %v3614_v5, %v8270_v49  ;;  %v4358_v5 = vpack.c.bf16 %v4336_v19, %v4335_v15 }
 0x4d3   : > { %v8421_v41 = vadd.f32 %v3793_v30, %v9156_v36  ;;  %v9158_v36 = vld [vmem:[#allocation7_spill] sm:$0xff] }
 0x4d4   : > { %6564 = vmatmul.msk.bf16.gmra.mxu0 %vm681_vm1, %v4356_v35  ;;  %v4338_v35 = vld [vmem:[#allocation2 + $0x190] sm:$0xff] }
 0x4d5   : > { %v4359_v1 = vpack.c.bf16 %v4338_v35, %v4337_v61 }
 0x4d9   : > { %v3616_v0 = vpop.f32.mrf.mxu0 }
 0x4da   : > { %v3796_v63 = vpop.f32.mrf.mxu1  ;;  %v8425_v32 = vadd.f32 %v3616_v0, %v8279_v9  ;;  %v4333_v9 = vld [vmem:[#allocation2 + $0x148] sm:$0xff] }
 0x4db   : > { %v8428_v49 = vadd.f32 %v3796_v63, %v8253_v28  ;;  %v4357_v10 = vpack.c.bf16 %v4334_v23, %v4333_v9  ;;  %v9159_v63 = vld [vmem:[#allocation23_spill] sm:$0xff]  ;;  %v4339_v23 = vld [vmem:[#allocation2 + $0x1a8] sm:$0xff] }
 0x4dc   : > { %6521 = vmatmul.msk.bf16.gmra.mxu1 %vm681_vm1, %v8430_v47 }
 0x4dd   : > { %6538 = vmatmul.msk.bf16.gmra.mxu2 %vm681_vm1, %v8432_v31 }
 0x4de   : > { %6555 = vmatmul.msk.bf16.gmra.mxu3 %vm681_vm1, %v4142_v25 }
 0x4e1   : > { %v4427_v60 = vpop.f32.mrf.mxu0 }
 0x4e2   : > { %v3798_v51 = vpop.f32.mrf.mxu1  ;;  %v8443_v28 = vadd.f32 %v4427_v60, %v8293_v2  ;;  %v4360_v60 = vpack.c.bf16 %v4340_v14, %v4339_v23  ;;  %v4348_v14 = vld [vmem:[#allocation2 + $0x230] sm:$0xff] }
 0x4e3   : > { %v8440_v42 = vadd.f32 %v3798_v51, %v8262_v17 }
 0x4e4   : > { %6565 = vmatmul.msk.bf16.gmra.mxu0 %vm681_vm1, %v4357_v10 }
 0x4e9   : > { %v4429_v11 = vpop.f32.mrf.mxu0 }
 0x4ea   : > { %v3801_v6 = vpop.f32.mrf.mxu1  ;;  %v8450_v18 = vadd.f32 %v4429_v11, %v8300_v7  ;;  %v4342_v11 = vld [vmem:[#allocation2 + $0x1d0] sm:$0xff] }
 0x4eb   : > { %v8447_v33 = vadd.f32 %v3801_v6, %v8273_v21  ;;  %v9160_v6 = vld [vmem:[#allocation25_spill] sm:$0xff] }
 0x4ec   : > { %6574 = vmatmul.msk.bf16.vlgmr.msra.gmra.mxu1 %vm681_vm1, %v9157_v54  ;;  %v4341_v54 = vld [vmem:[#allocation2 + $0x1c8] sm:$0xff] }
 0x4ed   : > { %v4361_v19 = vpack.c.bf16 %v4342_v11, %v4341_v54  ;;  %v4555_v11 = vld [vmem:[#allocation2 + $0x149] sm:$0xff] }
 0x4f1   : > { %v4432_v27 = vpop.f32.mrf.mxu0 }
 0x4f2   : > { %v3803_v17 = vpop.f32.mrf.mxu1  ;;  %v8458_v62 = vadd.f32 %v4432_v27, %v8312_v8  ;;  %v4548_v27 = vld [vmem:[#allocation2 + $0xd1] sm:$0xff] }
 0x4f3   : > { %v8455_v2 = vadd.f32 %v3803_v17, %v8282_v38  ;;  %v4547_v17 = vld [vmem:[#allocation2 + $0xc9] sm:$0xff] }
 0x4f4   : > { %6566 = vmatmul.msk.bf16.gmra.mxu0 %vm681_vm1, %v4358_v5  ;;  %v4344_v5 = vld [vmem:[#allocation2 + $0x1f0] sm:$0xff] }
 0x4f9   : > { %v4434_v30 = vpop.f32.mrf.mxu0 }
 0x4fa   : > { %v3806_v21 = vpop.f32.mrf.mxu1  ;;  %v8465_v58 = vadd.f32 %v4434_v30, %v8320_v45  ;;  %v4343_v30 = vld [vmem:[#allocation2 + $0x1e8] sm:$0xff] }
 0x4fb   : > { %v8462_v7 = vadd.f32 %v3806_v21, %v8296_v43 }
 0x4fc   : > { %6575 = vmatmul.msk.bf16.gmra.mxu1 %vm681_vm1, %v9158_v36 }
 0x501   : > { %v4437_v57 = vpop.f32.mrf.mxu0 }
 0x502   : > { %v3808_v38 = vpop.f32.mrf.mxu1  ;;  %v8473_v22 = vadd.f32 %v4437_v57, %v8336_v3  ;;  %v9161_v57 = vld [vmem:[#allocation27_spill] sm:$0xff] }
 0x503   : > { %v8470_v8 = vadd.f32 %v3808_v38, %v8303_v26 }
 0x504   : > { %6567 = vmatmul.msk.bf16.gmra.mxu0 %vm681_vm1, %v4359_v1  ;;  %v4551_v1 = vld [vmem:[#allocation2 + $0x109] sm:$0xff] }
 0x509   : > { %v4439_v44 = vpop.f32.mrf.mxu0 }
 0x50a   : > { %v3811_v43 = vpop.f32.mrf.mxu1  ;;  %v8480_v0 = vadd.f32 %v4439_v44, %v8344_v4 }
 0x50b   : > { %v8477_v45 = vadd.f32 %v3811_v43, %v8315_v34 }
 0x50c   : > { %6576 = vmatmul.msk.bf16.gmra.mxu1 %vm681_vm1, %v9159_v63 }
 0x511   : > { %v4442_v25 = vpop.f32.mrf.mxu0 }
 0x512   : > { %v3813_v26 = vpop.f32.mrf.mxu1  ;;  %v8488_v51 = vadd.f32 %v4442_v25, %v8356_v39 }
 0x513   : > { %v8485_v3 = vadd.f32 %v3813_v26, %v8323_v29 }
 0x514   : > { %6568 = vmatmul.msk.bf16.gmra.mxu0 %vm681_vm1, %v4360_v60 }
 0x519   : > { %v4444_v9 = vpop.f32.mrf.mxu0 }
 0x51a   : > { %v3816_v34 = vpop.f32.mrf.mxu1  ;;  %v8495_v10 = vadd.f32 %v4444_v9, %v8364_v56  ;;  %v4575_v56 = vpack.c.bf16 %v4548_v27, %v4547_v17 }
 0x51b   : > { %v8492_v4 = vadd.f32 %v3816_v34, %v8339_v55 }
 0x51c   : > { %6577 = vmatmul.msk.bf16.gmra.mxu1 %vm681_vm1, %v9160_v6 }
 0x522   : > { %v3818_v29 = vpop.f32.mrf.mxu1 }
 0x523   : > { %v8500_v39 = vadd.f32 %v3818_v29, %v8347_v20  ;;  %v4362_v20 = vpack.c.bf16 %v4344_v5, %v4343_v30  ;;  %v4556_v29 = vld [vmem:[#allocation2 + $0x151] sm:$0xff]  ;;  %v8555_v30 = vpop.f32.mrf.mxu3 }
 0x524   : > { %6569 = vmatmul.msk.bf16.gmra.mxu0 %vm681_vm1, %v4361_v19  ;;  %v4579_v17 = vpack.c.bf16 %v4556_v29, %v4555_v11  ;;  %v4559_v11 = vld [vmem:[#allocation2 + $0x189] sm:$0xff]  ;;  %v4560_v29 = vld [vmem:[#allocation2 + $0x191] sm:$0xff] }
 0x52a   : > { %v3821_v15 = vpop.f32.mrf.mxu1 }
 0x52b   : > { %v8504_v55 = vadd.f32 %v3821_v15, %v8359_v12 }
 0x52c   : > { %6578 = vmatmul.msk.bf16.gmra.mxu1 %vm681_vm1, %v4575_v56  ;;  %v8550_v56 = vpop.f32.mrf.mxu2 }
 0x532   : > { %v3823_v21 = vpop.f32.mrf.mxu1 }
 0x533   : > { %v8508_v36 = vadd.f32 %v3823_v21, %v8367_v40  ;;  %v4552_v40 = vld [vmem:[#allocation2 + $0x111] sm:$0xff] }
 0x534   : > { %6570 = vmatmul.msk.bf16.gmra.mxu0 %vm681_vm1, %v4362_v20  ;;  %v4577_v63 = vpack.c.bf16 %v4552_v40, %v4551_v1 }
 0x53a   : > { %v3826_v35 = vpop.f32.mrf.mxu1 }
 0x53b   : > { %v8512_v38 = vadd.f32 %v3826_v35, %v8379_v37  ;;  %v4347_v37 = vld [vmem:[#allocation2 + $0x228] sm:$0xff]  ;;  %v8558_v35 = vpop.f32.mrf.mxu0 }
 0x53c   : > { %6579 = vmatmul.msk.bf16.gmra.mxu1 %vm681_vm1, %v9161_v57  ;;  %v4364_v26 = vpack.c.bf16 %v4348_v14, %v4347_v37  ;;  %v4557_v57 = vld [vmem:[#allocation2 + $0x169] sm:$0xff]  ;;  %v8562_v37 = vpop.f32.mrf.mxu2 }
 0x542   : > { %v3828_v12 = vpop.f32.mrf.mxu1 }
 0x543   : > { %v8517_v61 = vadd.f32 %v3828_v12, %v8387_v24  ;;  %v4553_v24 = vld [vmem:[#allocation2 + $0x129] sm:$0xff]  ;;  %v4558_v12 = vld [vmem:[#allocation2 + $0x171] sm:$0xff] }
 0x544   : > { %6571 = vmatmul.msk.bf16.gmra.mxu0 %vm681_vm1, %v8430_v47  ;;  %v4554_v47 = vld [vmem:[#allocation2 + $0x131] sm:$0xff] }
 0x54a   : > { %v3831_v43 = vpop.f32.mrf.mxu1 }
 0x54b   : > { %v8522_v44 = vadd.f32 %v3831_v43, %v8399_v48  ;;  %v4578_v48 = vpack.c.bf16 %v4554_v47, %v4553_v24  ;;  %v8569_v24 = vpop.f32.mrf.mxu0 }
 0x54c   : > { %6580 = vmatmul.msk.bf16.gmra.mxu1 %vm681_vm1, %v4577_v63  ;;  %v4580_v63 = vpack.c.bf16 %v4558_v12, %v4557_v57 }
 0x552   : > { %v3833_v25 = vpop.f32.mrf.mxu1 }
 0x553   : > { %v8526_v23 = vadd.f32 %v3833_v25, %v8406_v53  ;;  %v8539_v53 = vld [vmem:[%s9055_s3 + $0x1] ss:$0 sm:$0xff] }
 0x554   : > { %6572 = vmatmul.msk.bf16.gmra.mxu0 %vm681_vm1, %v4364_v26  ;;  %v8567_v26 = vpop.f32.mrf.mxu3 }
 0x55a   : > { %v3836_v60 = vpop.f32.mrf.mxu1 }
 0x55b   : > { %v8530_v34 = vadd.f32 %v3836_v60, %v8418_v59  ;;  %v8545_v59 = vld [vmem:[%s9056_s4 + $0x1] ss:$0 sm:$0xff] }
 0x55c   : > { %6581 = vmatmul.msk.bf16.gmra.mxu1 %vm681_vm1, %v4578_v48  ;;  %v8574_v48 = vpop.f32.mrf.mxu2 }
 0x562   : > { %v3838_v9 = vpop.f32.mrf.mxu1 }
 0x563   : > { %v8534_v6 = vadd.f32 %v3838_v9, %v8425_v32 }
 0x56a   : > { %v4649_v54 = vpop.f32.mrf.mxu1 }
 0x56b   : > { %v4729_v19 = vadd.f32 %v4649_v54, %v8443_v28 }
 0x56c   : > { %6582 = vmatmul.msk.bf16.gmra.mxu1 %vm681_vm1, %v4579_v17  ;;  %v8577_v17 = vpop.f32.mrf.mxu3 }
 0x56d   : > { %v4766_v27 = vmul.f32 %v8539_v53, %v4729_v19 }
 0x56f   : > { %v4803_v32 = vadd.f32 %v8545_v59, %v4766_v27 }
 0x571   : > { %v4835_v15 = vmax.f32 %v4803_v32, 0.0  ;;  %v4581_v32 = vpack.c.bf16 %v4560_v29, %v4559_v11 }
 0x572   : > { %v4651_v5 = vpop.f32.mrf.mxu1 }
 0x573   : > { %4867 = vst.msk [vmem:[#allocation2 + $0x28] sm:$0xff] %vm681_vm1, %v4835_v15  ;;  %v4730_v28 = vadd.f32 %v4651_v5, %v8450_v18  ;;  %v8581_v15 = vpop.f32.mrf.mxu0 }
 0x574   : > { %v8590_v12 = vpop.f32.mrf.mxu3 }
 0x575   : > { %v4767_v21 = vmul.f32 %v8539_v53, %v4730_v28  ;;  %v8586_v28 = vpop.f32.mrf.mxu2 }
 0x577   : > { %v4804_v20 = vadd.f32 %v8545_v59, %v4767_v21 }
 0x579   : > { %v4836_v1 = vmax.f32 %v4804_v20, 0.0 }
 0x57a   : > { %v4654_v40 = vpop.f32.mrf.mxu1 }
 0x57b   : > { %4868 = vst.msk [vmem:[#allocation2 + $0x30] sm:$0xff] %vm681_vm1, %v4836_v1  ;;  %v4731_v43 = vadd.f32 %v4654_v40, %v8458_v62  ;;  %v8593_v1 = vpop.f32.mrf.mxu0 }
 0x57c   : > { %6583 = vmatmul.msk.bf16.gmra.mxu1 %vm681_vm1, %v4580_v63  ;;  %v4562_v63 = vld [vmem:[#allocation2 + $0x1b1] sm:$0xff] }
 0x57d   : > { %v4768_v18 = vmul.f32 %v8539_v53, %v4731_v43  ;;  %v4561_v43 = vld [vmem:[#allocation2 + $0x1a9] sm:$0xff] }
 0x57f   : > { %v4805_v14 = vadd.f32 %v8545_v59, %v4768_v18 }
 0x581   : > { %v4837_v25 = vmax.f32 %v4805_v14, 0.0  ;;  %v8596_v14 = vpop.f32.mrf.mxu2 }
 0x582   : > { %v4656_v47 = vpop.f32.mrf.mxu1 }
 0x583   : > { %4869 = vst.msk [vmem:[#allocation2 + $0x48] sm:$0xff] %vm681_vm1, %v4837_v25  ;;  %v4732_v60 = vadd.f32 %v4656_v47, %v8465_v58  ;;  %v8605_v11 = vpop.f32.mrf.mxu0 }
 0x585   : > { %v4769_v62 = vmul.f32 %v8539_v53, %v4732_v60  ;;  %v4582_v60 = vpack.c.bf16 %v4562_v63, %v4561_v43 }
 0x587   : > { %v4806_v9 = vadd.f32 %v8545_v59, %v4769_v62  ;;  %v8602_v62 = vpop.f32.mrf.mxu3 }
 0x589   : > { %v4838_v54 = vmax.f32 %v4806_v9, 0.0 }
 0x58a   : > { %v4659_v19 = vpop.f32.mrf.mxu1 }
 0x58b   : > { %4870 = vst.msk [vmem:[#allocation2 + $0x50] sm:$0xff] %vm681_vm1, %v4838_v54  ;;  %v4733_v27 = vadd.f32 %v4659_v19, %v8473_v22  ;;  %v4071_v19 = vadd.f32 %v8550_v56, %v8370_v46  ;;  %v4459_v43 = vpop.f32.mrf.mxu0  ;;  %v4072_v46 = vadd.f32 %v8562_v37, %v8382_v52  ;;  %v4073_v52 = vadd.f32 %v8574_v48, %v8390_v50 }
 0x58c   : > { %6584 = vmatmul.msk.bf16.gmra.mxu1 %vm681_vm1, %v4581_v32  ;;  %v4074_v50 = vadd.f32 %v8586_v28, %v8402_v13  ;;  %v4075_v13 = vadd.f32 %v8596_v14, %v8409_v16 }
 0x58d   : > { %v4770_v58 = vmul.f32 %v8539_v53, %v4733_v27  ;;  %v4015_v27 = vpop.f32.mrf.mxu2 }
 0x58f   : > { %v4807_v5 = vadd.f32 %v8545_v59, %v4770_v58  ;;  %v4293_v58 = vadd.f32 %v8555_v30, %v4071_v19  ;;  %v4295_v19 = vadd.f32 %v8577_v17, %v4073_v52 }
 0x591   : > { %v4839_v21 = vmax.f32 %v4807_v5, 0.0 }
 0x592   : > { %v4661_v20 = vpop.f32.mrf.mxu1 }
 0x593   : > { %4871 = vst.msk [vmem:[#allocation2 + $0x68] sm:$0xff] %vm681_vm1, %v4839_v21  ;;  %v4734_v57 = vadd.f32 %v4661_v20, %v8480_v0  ;;  %v4563_v21 = vld [vmem:[#allocation2 + $0x1c9] sm:$0xff]  ;;  %v4564_v20 = vld [vmem:[#allocation2 + $0x1d1] sm:$0xff] }
 0x594   : > { %v4583_v56 = vpack.c.bf16 %v4564_v20, %v4563_v21 }
 0x595   : > { %v4771_v22 = vmul.f32 %v8539_v53, %v4734_v57  ;;  %v4237_v57 = vpop.f32.mrf.mxu3  ;;  %v4018_v30 = vpop.f32.mrf.mxu2 }
 0x597   : > { %v4808_v40 = vadd.f32 %v8545_v59, %v4771_v22  ;;  %v4515_v22 = vadd.f32 %v8558_v35, %v4293_v58  ;;  %v4566_v58 = vld [vmem:[#allocation2 + $0x1f1] sm:$0xff] }
 0x599   : > { %v4840_v18 = vmax.f32 %v4808_v40, 0.0 }
 0x59a   : > { %v4664_v25 = vpop.f32.mrf.mxu1 }
 0x59b   : > { %4872 = vst.msk [vmem:[#allocation2 + $0x70] sm:$0xff] %vm681_vm1, %v4840_v18  ;;  %v4735_v47 = vadd.f32 %v4664_v25, %v8488_v51  ;;  %v4294_v25 = vadd.f32 %v8567_v26, %v4072_v46 }
 0x59c   : > { %6585 = vmatmul.msk.bf16.gmra.mxu1 %vm681_vm1, %v4582_v60 }
 0x59d   : > { %v4772_v0 = vmul.f32 %v8539_v53, %v4735_v47  ;;  %v4516_v35 = vadd.f32 %v8569_v24, %v4294_v25  ;;  %v4240_v37 = vpop.f32.mrf.mxu3  ;;  %v4517_v24 = vadd.f32 %v8581_v15, %v4295_v19 }
 0x59f   : > { %v4809_v9 = vadd.f32 %v8545_v59, %v4772_v0 }
 0x5a1   : > { %v4841_v29 = vmax.f32 %v4809_v9, 0.0 }
 0x5a2   : > { %v4666_v54 = vpop.f32.mrf.mxu1 }
 0x5a3   : > { %4873 = vst.msk [vmem:[#allocation2 + $0x88] sm:$0xff] %vm681_vm1, %v4841_v29  ;;  %v4736_v51 = vadd.f32 %v4666_v54, %v8495_v10  ;;  %v4462_v29 = vpop.f32.mrf.mxu0 }
 0x5a5   : > { %v4773_v32 = vmul.f32 %v8539_v53, %v4736_v51  ;;  %v4020_v51 = vpop.f32.mrf.mxu2 }
 0x5a7   : > { %v4810_v5 = vadd.f32 %v8545_v59, %v4773_v32  ;;  %v4565_v32 = vld [vmem:[#allocation2 + $0x1e9] sm:$0xff] }
 0x5a8   : > { %v4584_v20 = vpack.c.bf16 %v4566_v58, %v4565_v32 }
 0x5a9   : > { %v4842_v40 = vmax.f32 %v4810_v5, 0.0 }
 0x5aa   : > { %v4669_v63 = vpop.f32.mrf.mxu1 }
 0x5ab   : > { %4874 = vst.msk [vmem:[#allocation2 + $0x90] sm:$0xff] %vm681_vm1, %v4842_v40  ;;  %v4737_v10 = vadd.f32 %v4669_v63, %v4515_v22  ;;  %v4242_v22 = vpop.f32.mrf.mxu3  ;;  %v4464_v17 = vpop.f32.mrf.mxu0  ;;  %v4296_v63 = vadd.f32 %v8590_v12, %v4074_v50  ;;  %v4569_v50 = vld [vmem:[#allocation2 + $0x229] sm:$0xff] }
 0x5ac   : > { %6586 = vmatmul.msk.bf16.gmra.mxu1 %vm681_vm1, %v4583_v56 }
 0x5ad   : > { %v4774_v18 = vmul.f32 %v8539_v53, %v4737_v10  ;;  %v4518_v15 = vadd.f32 %v8593_v1, %v4296_v63  ;;  %v4023_v56 = vpop.f32.mrf.mxu2 }
 0x5af   : > { %v4811_v47 = vadd.f32 %v8545_v59, %v4774_v18 }
 0x5b1   : > { %v4843_v60 = vmax.f32 %v4811_v47, 0.0  ;;  %v4297_v47 = vadd.f32 %v8602_v62, %v4075_v13 }
 0x5b2   : > { %v4671_v0 = vpop.f32.mrf.mxu1 }
 0x5b3   : > { %4875 = vst.msk [vmem:[#allocation2 + $0xa8] sm:$0xff] %vm681_vm1, %v4843_v60  ;;  %v4738_v9 = vadd.f32 %v4671_v0, %v4516_v35  ;;  %v4245_v35 = vpop.f32.mrf.mxu3  ;;  %v4467_v60 = vpop.f32.mrf.mxu0  ;;  %v4519_v0 = vadd.f32 %v8605_v11, %v4297_v47 }
 0x5b5   : > { %v4775_v54 = vmul.f32 %v8539_v53, %v4738_v9  ;;  %v4076_v9 = vadd.f32 %v4015_v27, %v8421_v41  ;;  %v4025_v14 = vpop.f32.mrf.mxu2 }
 0x5b7   : > { %v4812_v26 = vadd.f32 %v8545_v59, %v4775_v54  ;;  %v4298_v62 = vadd.f32 %v4237_v57, %v4076_v9 }
 0x5b9   : > { %v4844_v5 = vmax.f32 %v4812_v26, 0.0  ;;  %v4520_v32 = vadd.f32 %v4459_v43, %v4298_v62 }
 0x5ba   : > { %v4674_v21 = vpop.f32.mrf.mxu1 }
 0x5bb   : > { %4876 = vst.msk [vmem:[#allocation2 + $0xb0] sm:$0xff] %vm681_vm1, %v4844_v5  ;;  %v4739_v48 = vadd.f32 %v4674_v21, %v4517_v24  ;;  %v4247_v26 = vpop.f32.mrf.mxu3  ;;  %v4469_v11 = vpop.f32.mrf.mxu0  ;;  %v4077_v5 = vadd.f32 %v4018_v30, %v8428_v49 }
 0x5bc   : > { %6587 = vmatmul.msk.bf16.gmra.mxu1 %vm681_vm1, %v4584_v20 }
 0x5bd   : > { %v4776_v40 = vmul.f32 %v8539_v53, %v4739_v48  ;;  %v4028_v21 = vpop.f32.mrf.mxu2  ;;  %v4570_v48 = vld [vmem:[#allocation2 + $0x231] sm:$0xff]  ;;  %v4299_v20 = vadd.f32 %v4240_v37, %v4077_v5 }
 0x5be   : > { %v4586_v63 = vpack.c.bf16 %v4570_v48, %v4569_v50 }
 0x5bf   : > { %v4813_v46 = vadd.f32 %v8545_v59, %v4776_v40  ;;  %v4521_v57 = vadd.f32 %v4462_v29, %v4299_v20 }
 0x5c1   : > { %v4845_v10 = vmax.f32 %v4813_v46, 0.0  ;;  %v4078_v46 = vadd.f32 %v4020_v51, %v8440_v42  ;;  %v4079_v42 = vadd.f32 %v4023_v56, %v8447_v33 }
 0x5c2   : > { %v4676_v18 = vpop.f32.mrf.mxu1  ;;  %v4959_v50 = vld [vmem:[#allocation2 + $0xb0] sm:$0xff] }
 0x5c3   : > { %4877 = vst.msk [vmem:[#allocation2 + $0xc8] sm:$0xff] %vm681_vm1, %v4845_v10  ;;  %v4740_v28 = vadd.f32 %v4676_v18, %v4518_v15  ;;  %v4250_v15 = vpop.f32.mrf.mxu3  ;;  %v4472_v30 = vpop.f32.mrf.mxu0  ;;  %v4300_v18 = vadd.f32 %v4242_v22, %v4078_v46  ;;  %v4081_v46 = vadd.f32 %v4028_v21, %v8462_v7  ;;  %v4956_v7 = vld [vmem:[#allocation2 + $0x88] sm:$0xff] }
 0x5c5   : > { %v4777_v25 = vmul.f32 %v8539_v53, %v4740_v28  ;;  %v4030_v13 = vpop.f32.mrf.mxu2  ;;  %v4522_v28 = vadd.f32 %v4464_v17, %v4300_v18 }
 0x5c7   : > { %v4814_v12 = vadd.f32 %v8545_v59, %v4777_v25 }
 0x5c9   : > { %v4846_v1 = vmax.f32 %v4814_v12, 0.0 }
 0x5ca   : > { %v4679_v52 = vpop.f32.mrf.mxu1  ;;  %v4960_v62 = vld [vmem:[#allocation2 + $0xc8] sm:$0xff] }
 0x5cb   : > { %4878 = vst.msk [vmem:[#allocation2 + $0xd0] sm:$0xff] %vm681_vm1, %v4846_v1  ;;  %v4741_v16 = vadd.f32 %v4679_v52, %v4519_v0  ;;  %v4252_v1 = vpop.f32.mrf.mxu3  ;;  %v4474_v22 = vpop.f32.mrf.mxu0 }
 0x5cc   : > { %6588 = vmatmul.msk.bf16.gmra.mxu1 %vm681_vm1, %v8432_v31 }
 0x5cd   : > { %v4778_v54 = vmul.f32 %v8539_v53, %v4741_v16  ;;  %v4033_v33 = vpop.f32.mrf.mxu2 }
 0x5cf   : > { %v4815_v19 = vadd.f32 %v8545_v59, %v4778_v54  ;;  %v4301_v54 = vadd.f32 %v4245_v35, %v4079_v42 }
 0x5d1   : > { %v4847_v58 = vmax.f32 %v4815_v19, 0.0  ;;  %v4523_v19 = vadd.f32 %v4467_v60, %v4301_v54 }
 0x5d2   : > { %v4681_v24 = vpop.f32.mrf.mxu1  ;;  %v4961_v16 = vld [vmem:[#allocation2 + $0xd0] sm:$0xff] }
 0x5d3   : > { %4879 = vst.msk [vmem:[#allocation2 + $0xe8] sm:$0xff] %vm681_vm1, %v4847_v58  ;;  %v4742_v41 = vadd.f32 %v4681_v24, %v4520_v32  ;;  %v4986_v58 = vpack.c.bf16 %v4961_v16, %v4960_v62  ;;  %v4080_v24 = vadd.f32 %v4025_v14, %v8455_v2  ;;  %v4255_v48 = vpop.f32.mrf.mxu3  ;;  %v4477_v60 = vpop.f32.mrf.mxu0 }
 0x5d5   : > { %v4779_v27 = vmul.f32 %v8539_v53, %v4742_v41  ;;  %v4302_v35 = vadd.f32 %v4247_v26, %v4080_v24  ;;  %v4035_v18 = vpop.f32.mrf.mxu2 }
 0x5d7   : > { %v4816_v31 = vadd.f32 %v8545_v59, %v4779_v27  ;;  %v5020_v27 = vsel %vm681_vm1, %v4986_v58, 0 }
 0x5d9   : > { %v4848_v40 = vmax.f32 %v4816_v31, 0.0  ;;  %v4958_v31 = vld [vmem:[#allocation2 + $0xa8] sm:$0xff] }
 0x5da   : > { %v4684_v43 = vpop.f32.mrf.mxu1  ;;  %v4962_v47 = vld [vmem:[#allocation2 + $0xe8] sm:$0xff] }
 0x5db   : > { %4880 = vst.msk [vmem:[#allocation2 + $0xf0] sm:$0xff] %vm681_vm1, %v4848_v40  ;;  %v4743_v49 = vadd.f32 %v4684_v43, %v4521_v57  ;;  %v4524_v57 = vadd.f32 %v4469_v11, %v4302_v35  ;;  %v4957_v11 = vld [vmem:[#allocation2 + $0x90] sm:$0xff]  ;;  %v4257_v21 = vpop.f32.mrf.mxu3 }
 0x5dc   : > { %6589 = vmatmul.msk.bf16.gmra.mxu1 %vm681_vm1, %v4586_v63  ;;  %v4985_v63 = vpack.c.bf16 %v4959_v50, %v4958_v31  ;;  %v4984_v42 = vpack.c.bf16 %v4957_v11, %v4956_v7 }
 0x5dd   : > { %v4780_v10 = vmul.f32 %v8539_v53, %v4743_v49  ;;  %v4038_v62 = vpop.f32.mrf.mxu2 }
 0x5de   : > { %v4085_v7 = vadd.f32 %v4038_v62, %v8492_v4  ;;  %v4913_v62 = vld [vmem:[#allocation2 + $0xe7] sm:$0xff] }
 0x5df   : > { %v4817_v37 = vadd.f32 %v8545_v59, %v4780_v10 }
 0x5e1   : > { %v4849_v29 = vmax.f32 %v4817_v37, 0.0  ;;  %v5017_v37 = vsel %vm681_vm1, %v4985_v63, 0 }
 0x5e2   : > { %v4686_v25 = vpop.f32.mrf.mxu1  ;;  %v4963_v12 = vld [vmem:[#allocation2 + $0xf0] sm:$0xff] }
 0x5e3   : > { %4881 = vst.msk [vmem:[#allocation2 + $0x108] sm:$0xff] %vm681_vm1, %v4849_v29  ;;  %v4744_v51 = vadd.f32 %v4686_v25, %v4522_v28  ;;  %v4987_v0 = vpack.c.bf16 %v4963_v12, %v4962_v47  ;;  %v4303_v29 = vadd.f32 %v4250_v15, %v4081_v46  ;;  %v4955_v15 = vld [vmem:[#allocation2 + $0x70] sm:$0xff] }
 0x5e5   : > { %v4781_v52 = vmul.f32 %v8539_v53, %v4744_v51  ;;  %v5023_v9 = vsel %vm681_vm1, %v4987_v0, 0  ;;  %v4525_v47 = vadd.f32 %v4472_v30, %v4303_v29  ;;  %v4479_v51 = vpop.f32.mrf.mxu0  ;;  %v4040_v31 = vpop.f32.mrf.mxu2 }
 0x5e6   : > { %5049 = vmatpush.bf16.xpose.msrb.mxu2 %v5023_v9 }
 0x5e7   : > { %v4818_v17 = vadd.f32 %v8545_v59, %v4781_v52  ;;  %v4082_v52 = vadd.f32 %v4030_v13, %v8470_v8  ;;  %v4083_v8 = vadd.f32 %v4033_v33, %v8477_v45  ;;  %v4260_v13 = vpop.f32.mrf.mxu3 }
 0x5e9   : > { %v4850_v32 = vmax.f32 %v4818_v17, 0.0  ;;  %v5014_v17 = vsel %vm681_vm1, %v4984_v42, 0  ;;  %v4949_v42 = vld [vmem:[#allocation2 + $0x10] sm:$0xff] }
 0x5ea   : > { %v4689_v56 = vpop.f32.mrf.mxu1  ;;  %v5424_v2 = vld [vmem:[#allocation2 + $0x108] sm:$0xff] }
 0x5eb   : > { %4882 = vst.msk [vmem:[#allocation2 + $0x110] sm:$0xff] %vm681_vm1, %v4850_v32  ;;  %v4745_v5 = vadd.f32 %v4689_v56, %v4523_v19  ;;  %v4304_v19 = vadd.f32 %v4252_v1, %v4082_v52  ;;  %v4954_v32 = vld [vmem:[#allocation2 + $0x68] sm:$0xff]  ;;  %v4953_v1 = vld [vmem:[#allocation2 + $0x50] sm:$0xff] }
 0x5ec   : > { %v4983_v24 = vpack.c.bf16 %v4955_v15, %v4954_v32 }
 0x5ed   : > { %v4782_v41 = vmul.f32 %v8539_v53, %v4745_v5  ;;  %v4526_v58 = vadd.f32 %v4474_v22, %v4304_v19  ;;  %v4482_v50 = vpop.f32.mrf.mxu0 }
 0x5ee   : > { %5050 = vmatpush.bf16.xpose.msrb.mxu2 %v5020_v27 }
 0x5ef   : > { %v4819_v20 = vadd.f32 %v8545_v59, %v4782_v41 }
 0x5f1   : > { %v4851_v40 = vmax.f32 %v4819_v20, 0.0  ;;  %v4305_v20 = vadd.f32 %v4255_v48, %v4083_v8  ;;  %v4951_v48 = vld [vmem:[#allocation2 + $0x30] sm:$0xff] }
 0x5f2   : > { %v4691_v43 = vpop.f32.mrf.mxu1  ;;  %v5425_v14 = vld [vmem:[#allocation2 + $0x110] sm:$0xff] }
 0x5f3   : > { %4883 = vst.msk [vmem:[#allocation2 + $0x128] sm:$0xff] %vm681_vm1, %v4851_v40  ;;  %v4746_v49 = vadd.f32 %v4691_v43, %v4524_v57  ;;  %v5449_v10 = vpack.c.bf16 %v5425_v14, %v5424_v2  ;;  %v4952_v57 = vld [vmem:[#allocation2 + $0x48] sm:$0xff]  ;;  %v4527_v40 = vadd.f32 %v4477_v60, %v4305_v20  ;;  %v4084_v43 = vadd.f32 %v4035_v18, %v8485_v3  ;;  %v4262_v14 = vpop.f32.mrf.mxu3  ;;  %v4043_v3 = vpop.f32.mrf.mxu2 }
 0x5f4   : > { %v4982_v45 = vpack.c.bf16 %v4953_v1, %v4952_v57  ;;  %v4911_v20 = vld [vmem:[#allocation2 + $0xc7] sm:$0xff] }
 0x5f5   : > { %v4783_v26 = vmul.f32 %v8539_v53, %v4746_v49  ;;  %v8675_v28 = vsel %vm681_vm1, %v5449_v10, 0  ;;  %v4484_v49 = vpop.f32.mrf.mxu0  ;;  %v4306_v10 = vadd.f32 %v4257_v21, %v4084_v43  ;;  %v4307_v21 = vadd.f32 %v4260_v13, %v4085_v7 }
 0x5f6   : > { %5051 = vmatpush.bf16.xpose.msrb.mxu2 %v5017_v37  ;;  %5511 = vmatpush.bf16.xpose.msrb.mxu0 %v8675_v28 }
 0x5f7   : > { %v4820_v25 = vadd.f32 %v8545_v59, %v4783_v26  ;;  %v4950_v26 = vld [vmem:[#allocation2 + $0x28] sm:$0xff]  ;;  %v4528_v11 = vadd.f32 %v4479_v51, %v4306_v10  ;;  %v4529_v19 = vadd.f32 %v4482_v50, %v4307_v21 }
 0x5f8   : > { %v4912_v50 = vld [vmem:[#allocation2 + $0xcf] sm:$0xff] }
 0x5f9   : > { %v4852_v12 = vmax.f32 %v4820_v25, 0.0  ;;  %v4981_v25 = vpack.c.bf16 %v4951_v48, %v4950_v26  ;;  %v4937_v57 = vpack.c.bf16 %v4912_v50, %v4911_v20  ;;  %v4905_v50 = vld [vmem:[#allocation2 + $0x67] sm:$0xff] }
 0x5fa   : > { %v4694_v0 = vpop.f32.mrf.mxu1  ;;  %v5682_v10 = vld [vmem:[#allocation2 + $0x127] sm:$0xff] }
 0x5fb   : > { %4884 = vst.msk [vmem:[#allocation2 + $0x130] sm:$0xff] %vm681_vm1, %v4852_v12  ;;  %v4747_v16 = vadd.f32 %v4694_v0, %v4525_v47  ;;  %v4948_v12 = vld [vmem:[#allocation2 + $0x8] sm:$0xff]  ;;  %v4265_v52 = vpop.f32.mrf.mxu3 }
 0x5fd   : > { %v4784_v54 = vmul.f32 %v8539_v53, %v4747_v16  ;;  %v4980_v16 = vpack.c.bf16 %v4949_v42, %v4948_v12  ;;  %v4487_v15 = vpop.f32.mrf.mxu0 }
 0x5fe   : > { %5052 = vmatpush.bf16.xpose.msrb.mxu2 %v5014_v17  ;;  %5512 = vmatpush.bf16.xpose.msrb.mxu0 %v5023_v9  ;;  %v5011_v9 = vsel %vm681_vm1, %v4983_v24, 0 }
 0x5ff   : > { %v4821_v30 = vadd.f32 %v8545_v59, %v4784_v54  ;;  %v4914_v54 = vld [vmem:[#allocation2 + $0xef] sm:$0xff]  ;;  %v5002_v24 = vsel %vm681_vm1, %v4980_v16, 0  ;;  %v4907_v16 = vld [vmem:[#allocation2 + $0x87] sm:$0xff] }
 0x600   : > { %v4938_v32 = vpack.c.bf16 %v4914_v54, %v4913_v62 }
 0x601   : > { %v4853_v56 = vmax.f32 %v4821_v30, 0.0 }
 0x602   : > { %v4696_v5 = vpop.f32.mrf.mxu1  ;;  %v8704_v8 = vsel %vm681_vm1, %v4938_v32, 0 }
 0x603   : > { %4885 = vst.msk [vmem:[#allocation2 + $0x148] sm:$0xff] %vm681_vm1, %v4853_v56  ;;  %v4748_v41 = vadd.f32 %v4696_v5, %v4526_v58  ;;  %v4086_v58 = vadd.f32 %v4040_v31, %v8500_v39  ;;  %v4267_v39 = vpop.f32.mrf.mxu3 }
 0x605   : > { %v4785_v35 = vmul.f32 %v8539_v53, %v4748_v41  ;;  %v4308_v13 = vadd.f32 %v4262_v14, %v4086_v58  ;;  %v4910_v14 = vld [vmem:[#allocation2 + $0xaf] sm:$0xff] }
 0x606   : > { %5053 = vmatpush.bf16.xpose.msrb.mxu2 %v5011_v9  ;;  %5513 = vmatpush.bf16.xpose.msrb.mxu0 %v5020_v27  ;;  %v5008_v27 = vsel %vm681_vm1, %v4982_v45, 0 }
 0x607   : > { %v4822_v22 = vadd.f32 %v8545_v59, %v4785_v35  ;;  %v4530_v35 = vadd.f32 %v4484_v49, %v4308_v13 }
 0x609   : > { %v4854_v63 = vmax.f32 %v4822_v22, 0.0  ;;  %v4489_v22 = vpop.f32.mrf.mxu0 }
 0x60a   : > { %v4699_v33 = vpop.f32.mrf.mxu1 }
 0x60b   : > { %4886 = vst.msk [vmem:[#allocation2 + $0x150] sm:$0xff] %vm681_vm1, %v4854_v63  ;;  %v4749_v2 = vadd.f32 %v4699_v33, %v4527_v40  ;;  %v4087_v40 = vadd.f32 %v4043_v3, %v8504_v55  ;;  %v8712_v33 = vsel %vm681_vm1, %v4937_v57, 0  ;;  %v4909_v55 = vld [vmem:[#allocation2 + $0xa7] sm:$0xff] }
 0x60c   : > { %v4936_v26 = vpack.c.bf16 %v4910_v14, %v4909_v55 }
 0x60d   : > { %v4786_v46 = vmul.f32 %v8539_v53, %v4749_v2  ;;  %v4309_v43 = vadd.f32 %v4265_v52, %v4087_v40 }
 0x60e   : > { %5054 = vmatpush.bf16.xpose.msrb.mxu2 %v5008_v27  ;;  %5514 = vmatpush.bf16.xpose.msrb.mxu0 %v5017_v37  ;;  %v5005_v37 = vsel %vm681_vm1, %v4981_v25, 0  ;;  %v8720_v7 = vsel %vm681_vm1, %v4936_v26, 0 }
 0x60f   : > { %v4823_v60 = vadd.f32 %v8545_v59, %v4786_v46  ;;  %v5683_v46 = vld [vmem:[#allocation2 + $0x12f] sm:$0xff]  ;;  %v4531_v49 = vadd.f32 %v4487_v15, %v4309_v43 }
 0x611   : > { %v4855_v29 = vmax.f32 %v4823_v60, 0.0  ;;  %v4492_v3 = vpop.f32.mrf.mxu0 }
 0x612   : > { %v4701_v18 = vpop.f32.mrf.mxu1 }
 0x613   : > { %4887 = vst.msk [vmem:[#allocation2 + $0x168] sm:$0xff] %vm681_vm1, %v4855_v29  ;;  %v4750_v47 = vadd.f32 %v4701_v18, %v4528_v11  ;;  %v5707_v11 = vpack.c.bf16 %v5683_v46, %v5682_v10  ;;  %v4903_v46 = vld [vmem:[#allocation2 + $0x47] sm:$0xff] }
 0x615   : > { %v4787_v0 = vmul.f32 %v8539_v53, %v4750_v47  ;;  %v8723_v47 = vsel %vm681_vm1, %v5707_v11, 0 }
 0x616   : > { %5055 = vmatpush.bf16.xpose.msrb.mxu2 %v5005_v37  ;;  %5515 = vmatpush.bf16.xpose.msrb.mxu0 %v5014_v17  ;;  %v4045_v17 = vpop.f32.mrf.mxu2 }
 0x617   : > { %v4824_v51 = vadd.f32 %v8545_v59, %v4787_v0  ;;  %v4088_v29 = vadd.f32 %v4045_v17, %v8508_v36  ;;  %v4908_v36 = vld [vmem:[#allocation2 + $0x8f] sm:$0xff] }
 0x618   : > { %v5681_v0 = vld [vmem:[#allocation2 + $0x10f] sm:$0xff]  ;;  %v4935_v15 = vpack.c.bf16 %v4908_v36, %v4907_v16 }
 0x619   : > { %v4856_v4 = vmax.f32 %v4824_v51, 0.0  ;;  %v4310_v12 = vadd.f32 %v4267_v39, %v4088_v29  ;;  %v4494_v58 = vpop.f32.mrf.mxu0 }
 0x61a   : > { %v4704_v30 = vpop.f32.mrf.mxu1 }
 0x61b   : > { %4888 = vst.msk [vmem:[#allocation2 + $0x170] sm:$0xff] %vm681_vm1, %v4856_v4  ;;  %v4751_v56 = vadd.f32 %v4704_v30, %v4529_v19  ;;  %v4532_v52 = vadd.f32 %v4489_v22, %v4310_v12  ;;  %v4901_v12 = vld [vmem:[#allocation2 + $0x27] sm:$0xff] }
 0x61d   : > { %v4788_v5 = vmul.f32 %v8539_v53, %v4751_v56  ;;  %v8732_v56 = vsel %vm681_vm1, %v4935_v15, 0 }
 0x61e   : > { %5056 = vmatpush.bf16.xpose.msrb.mxu2 %v5002_v24  ;;  %5516 = vmatpush.bf16.xpose.msrb.mxu0 %v5011_v9  ;;  %v4048_v45 = vpop.f32.mrf.mxu2 }
 0x61f   : > { %v4825_v41 = vadd.f32 %v8545_v59, %v4788_v5  ;;  %v4089_v4 = vadd.f32 %v4048_v45, %v8512_v38  ;;  %v4906_v38 = vld [vmem:[#allocation2 + $0x6f] sm:$0xff] }
 0x620   : > { %v4904_v45 = vld [vmem:[#allocation2 + $0x4f] sm:$0xff] }
 0x621   : > { %v4857_v1 = vmax.f32 %v4825_v41, 0.0  ;;  %v4497_v43 = vpop.f32.mrf.mxu0 }
 0x622   : > { %v4706_v31 = vpop.f32.mrf.mxu1 }
 0x623   : > { %4889 = vst.msk [vmem:[#allocation2 + $0x188] sm:$0xff] %vm681_vm1, %v4857_v1  ;;  %v4752_v9 = vadd.f32 %v4706_v31, %v4530_v35  ;;  %v4934_v1 = vpack.c.bf16 %v4906_v38, %v4905_v50  ;;  %v8745_v31 = vld [vmem:[%s9057_s5 + $0x2] sm:$0x3] }
 0x625   : > { %v4789_v63 = vmul.f32 %v8539_v53, %v4752_v9  ;;  %6593 = vmatmul.msk.bf16.vlgmr.msrb.gmra.mxu2 %vm681_vm1, %v8745_v31  ;;  %v8751_v40 = vsel %vm681_vm1, %v4934_v1, 0 }
 0x626   : > { %5126 = vmatpush.bf16.xpose.msra.mxu2 %v8704_v8  ;;  %5517 = vmatpush.bf16.xpose.msrb.mxu0 %v5008_v27  ;;  %v4270_v27 = vpop.f32.mrf.mxu3  ;;  %v4050_v21 = vpop.f32.mrf.mxu2 }
 0x627   : > { %v4826_v2 = vadd.f32 %v8545_v59, %v4789_v63  ;;  %v4311_v17 = vadd.f32 %v4270_v27, %v4089_v4  ;;  %v4090_v20 = vadd.f32 %v4050_v21, %v8517_v61 }
 0x629   : > { %v4858_v48 = vmax.f32 %v4826_v2, 0.0  ;;  %v4533_v13 = vadd.f32 %v4492_v3, %v4311_v17 }
 0x62a   : > { %v4709_v60 = vpop.f32.mrf.mxu1 }
 0x62b   : > { %4890 = vst.msk [vmem:[#allocation2 + $0x190] sm:$0xff] %vm681_vm1, %v4858_v48  ;;  %v4753_v25 = vadd.f32 %v4709_v60, %v4531_v49  ;;  %v4933_v48 = vpack.c.bf16 %v4904_v45, %v4903_v46 }
 0x62d   : > { %v4790_v18 = vmul.f32 %v8539_v53, %v4753_v25  ;;  %v8760_v11 = vsel %vm681_vm1, %v4933_v48, 0  ;;  %v4902_v25 = vld [vmem:[#allocation2 + $0x2f] sm:$0xff] }
 0x62e   : > { %5127 = vmatpush.bf16.xpose.msra.mxu2 %v8712_v33  ;;  %5518 = vmatpush.bf16.xpose.msrb.mxu0 %v5005_v37  ;;  %v5680_v37 = vld [vmem:[#allocation2 + $0x107] sm:$0xff]  ;;  %v4272_v30 = vpop.f32.mrf.mxu3  ;;  %v4053_v39 = vpop.f32.mrf.mxu2 }
 0x62f   : > { %v4827_v42 = vadd.f32 %v8545_v59, %v4790_v18  ;;  %v5706_v19 = vpack.c.bf16 %v5681_v0, %v5680_v37  ;;  %v4312_v9 = vadd.f32 %v4272_v30, %v4090_v20  ;;  %v4091_v55 = vadd.f32 %v4053_v39, %v8522_v44  ;;  %v4899_v37 = vld [vmem:[#allocation2 + $0x7] sm:$0xff] }
 0x630   : > { %v4932_v0 = vpack.c.bf16 %v4902_v25, %v4901_v12  ;;  %v5166_v30 = vld [vmem:[#allocation2 + $0xe9] sm:$0xff]  ;;  %v5941_v25 = vld [vmem:[#allocation2 + $0x131] sm:$0xff] }
 0x631   : > { %v4859_v51 = vmax.f32 %v4827_v42, 0.0  ;;  %v8735_v24 = vsel %vm681_vm1, %v5706_v19, 0  ;;  %v4534_v2 = vadd.f32 %v4494_v58, %v4312_v9  ;;  %v4499_v42 = vpop.f32.mrf.mxu0 }
 0x632   : > { %v4711_v54 = vpop.f32.mrf.mxu1  ;;  %v8776_v19 = vsel %vm681_vm1, %v4932_v0, 0 }
 0x633   : > { %4891 = vst.msk [vmem:[#allocation2 + $0x1a8] sm:$0xff] %vm681_vm1, %v4859_v51  ;;  %v4754_v62 = vadd.f32 %v4711_v54, %v4532_v52  ;;  %v8770_v51 = vld [vmem:[%s9057_s5 + $0x8] sm:$0x3]  ;;  %v4900_v54 = vld [vmem:[#allocation2 + $0xf] sm:$0xff] }
 0x635   : > { %v4791_v32 = vmul.f32 %v8539_v53, %v4754_v62  ;;  %6604 = vmatmul.msk.bf16.vlgmr.msrb.gmra.mxu0 %vm681_vm1, %v8770_v51  ;;  %v4931_v62 = vpack.c.bf16 %v4900_v54, %v4899_v37 }
 0x636   : > { %5128 = vmatpush.bf16.xpose.msra.mxu2 %v8720_v7  ;;  %5769 = vmatpush.bf16.xpose.msra.mxu0 %v8723_v47  ;;  %v4275_v63 = vpop.f32.mrf.mxu3  ;;  %v4055_v60 = vpop.f32.mrf.mxu2 }
 0x637   : > { %v4828_v5 = vadd.f32 %v8545_v59, %v4791_v32  ;;  %v4313_v29 = vadd.f32 %v4275_v63, %v4091_v55  ;;  %v4092_v21 = vadd.f32 %v4055_v60, %v8526_v23  ;;  %v5167_v32 = vld [vmem:[#allocation2 + $0xf1] sm:$0xff] }
 0x638   : > { %v5191_v50 = vpack.c.bf16 %v5167_v32, %v5166_v30  ;;  %v5165_v63 = vld [vmem:[#allocation2 + $0xd1] sm:$0xff]  ;;  %v5938_v32 = vld [vmem:[#allocation2 + $0x109] sm:$0xff] }
 0x639   : > { %v4860_v41 = vmax.f32 %v4828_v5, 0.0  ;;  %v4535_v18 = vadd.f32 %v4497_v43, %v4313_v29  ;;  %v4502_v39 = vpop.f32.mrf.mxu0  ;;  %v5162_v29 = vld [vmem:[#allocation2 + $0xa9] sm:$0xff]  ;;  %v5161_v30 = vld [vmem:[#allocation2 + $0x91] sm:$0xff] }
 0x63a   : > { %v4714_v35 = vpop.f32.mrf.mxu1 }
 0x63b   : > { %4892 = vst.msk [vmem:[#allocation2 + $0x1b0] sm:$0xff] %vm681_vm1, %v4860_v41  ;;  %v4755_v22 = vadd.f32 %v4714_v35, %v4533_v13  ;;  %v5079_v35 = vsel %vm681_vm1, %v4931_v62, 0  ;;  %v5160_v62 = vld [vmem:[#allocation2 + $0x89] sm:$0xff] }
 0x63d   : > { %v4792_v57 = vmul.f32 %v8539_v53, %v4755_v22 }
 0x63e   : > { %5129 = vmatpush.bf16.xpose.msra.mxu2 %v8732_v56  ;;  %5770 = vmatpush.bf16.xpose.msra.mxu0 %v8735_v24  ;;  %v4277_v3 = vpop.f32.mrf.mxu3  ;;  %v4058_v15 = vpop.f32.mrf.mxu2 }
 0x63f   : > { %v4829_v61 = vadd.f32 %v8545_v59, %v4792_v57  ;;  %v4314_v23 = vadd.f32 %v4277_v3, %v4092_v21  ;;  %v4093_v13 = vadd.f32 %v4058_v15, %v8530_v34  ;;  %v8788_v57 = vsel %vm681_vm1, %v5191_v50, 0  ;;  %v5164_v34 = vld [vmem:[#allocation2 + $0xc9] sm:$0xff] }
 0x640   : > { %v5190_v46 = vpack.c.bf16 %v5165_v63, %v5164_v34 }
 0x641   : > { %v4861_v14 = vmax.f32 %v4829_v61, 0.0  ;;  %v4536_v58 = vadd.f32 %v4499_v42, %v4314_v23  ;;  %v4504_v55 = vpop.f32.mrf.mxu0 }
 0x642   : > { %v4716_v49 = vpop.f32.mrf.mxu1 }
 0x643   : > { %4893 = vst.msk [vmem:[#allocation2 + $0x1c8] sm:$0xff] %vm681_vm1, %v4861_v14  ;;  %v4756_v10 = vadd.f32 %v4716_v49, %v4534_v2 }
 0x645   : > { %v4793_v26 = vmul.f32 %v8539_v53, %v4756_v10 }
 0x646   : > { %5130 = vmatpush.bf16.xpose.msra.mxu2 %v8751_v40  ;;  %5771 = vmatpush.bf16.xpose.msra.mxu0 %v8704_v8  ;;  %v4280_v5 = vpop.f32.mrf.mxu3  ;;  %v4060_v9 = vpop.f32.mrf.mxu2 }
 0x647   : > { %v4830_v27 = vadd.f32 %v8545_v59, %v4793_v26  ;;  %v4315_v20 = vadd.f32 %v4280_v5, %v4093_v13  ;;  %v4094_v2 = vadd.f32 %v4060_v9, %v8534_v6  ;;  %v8797_v26 = vsel %vm681_vm1, %v5190_v46, 0  ;;  %v5163_v6 = vld [vmem:[#allocation2 + $0xb1] sm:$0xff] }
 0x648   : > { %v5189_v21 = vpack.c.bf16 %v5163_v6, %v5162_v29  ;;  %v4971_v6 = vld [vmem:[#allocation2 + $0x170] sm:$0xff] }
 0x649   : > { %v4862_v44 = vmax.f32 %v4830_v27, 0.0  ;;  %v4537_v61 = vadd.f32 %v4502_v39, %v4315_v20  ;;  %v5940_v27 = vld [vmem:[#allocation2 + $0x129] sm:$0xff]  ;;  %v5159_v20 = vld [vmem:[#allocation2 + $0x71] sm:$0xff] }
 0x64a   : > { %v4719_v36 = vpop.f32.mrf.mxu1  ;;  %v8806_v23 = vsel %vm681_vm1, %v5189_v21, 0  ;;  %v5153_v21 = vld [vmem:[#allocation2 + $0x11] sm:$0xff] }
 0x64b   : > { %4894 = vst.msk [vmem:[#allocation2 + $0x1d0] sm:$0xff] %vm681_vm1, %v4862_v44  ;;  %v4757_v52 = vadd.f32 %v4719_v36, %v4535_v18 }
 0x64d   : > { %v4794_v16 = vmul.f32 %v8539_v53, %v4757_v52  ;;  %v5965_v52 = vpack.c.bf16 %v5941_v25, %v5940_v27  ;;  %v4970_v25 = vld [vmem:[#allocation2 + $0x168] sm:$0xff] }
 0x64e   : > { %5131 = vmatpush.bf16.xpose.msra.mxu2 %v8760_v11  ;;  %5772 = vmatpush.bf16.xpose.msra.mxu0 %v8712_v33  ;;  %v4282_v49 = vpop.f32.mrf.mxu3 }
 0x64f   : > { %v4831_v4 = vadd.f32 %v8545_v59, %v4794_v16  ;;  %v4316_v10 = vadd.f32 %v4282_v49, %v4094_v2  ;;  %v4972_v49 = vld [vmem:[#allocation2 + $0x188] sm:$0xff] }
 0x651   : > { %v4863_v17 = vmax.f32 %v4831_v4, 0.0  ;;  %v4538_v3 = vadd.f32 %v4504_v55, %v4316_v10  ;;  %v8809_v4 = vsel %vm681_vm1, %v5965_v52, 0  ;;  %v5157_v55 = vld [vmem:[#allocation2 + $0x51] sm:$0xff] }
 0x652   : > { %v4721_v38 = vpop.f32.mrf.mxu1  ;;  %v4977_v54 = vld [vmem:[#allocation2 + $0x1d0] sm:$0xff] }
 0x653   : > { %4895 = vst.msk [vmem:[#allocation2 + $0x1e8] sm:$0xff] %vm681_vm1, %v4863_v17  ;;  %v4758_v41 = vadd.f32 %v4721_v38, %v4536_v58  ;;  %v5939_v58 = vld [vmem:[#allocation2 + $0x111] sm:$0xff] }
 0x654   : > { %v5964_v38 = vpack.c.bf16 %v5939_v58, %v5938_v32 }
 0x655   : > { %v4795_v1 = vmul.f32 %v8539_v53, %v4758_v41  ;;  %v4975_v41 = vld [vmem:[#allocation2 + $0x1b0] sm:$0xff] }
 0x656   : > { %5132 = vmatpush.bf16.xpose.msra.mxu2 %v8776_v19  ;;  %5773 = vmatpush.bf16.xpose.msra.mxu0 %v8720_v7  ;;  %v8819_v39 = vsel %vm681_vm1, %v5964_v38, 0 }
 0x657   : > { %v4832_v22 = vadd.f32 %v8545_v59, %v4795_v1  ;;  %v4974_v1 = vld [vmem:[#allocation2 + $0x1a8] sm:$0xff] }
 0x658   : > { %v4993_v9 = vpack.c.bf16 %v4975_v41, %v4974_v1  ;;  %v4927_v41 = vld [vmem:[#allocation2 + $0x1c7] sm:$0xff] }
 0x659   : > { %v4864_v45 = vmax.f32 %v4832_v22, 0.0  ;;  %v8826_v22 = vld [vmem:[%s9057_s5] sm:$0x3]  ;;  %v5698_v1 = vld [vmem:[#allocation2 + $0x227] sm:$0xff] }
 0x65a   : > { %v4724_v43 = vpop.f32.mrf.mxu1  ;;  %v4978_v12 = vld [vmem:[#allocation2 + $0x1e8] sm:$0xff] }
 0x65b   : > { %4896 = vst.msk [vmem:[#allocation2 + $0x1f0] sm:$0xff] %vm681_vm1, %v4864_v45  ;;  %v4759_v14 = vadd.f32 %v4724_v43, %v4537_v61  ;;  %v5041_v43 = vsel %vm681_vm1, %v4993_v9, 0 }
 0x65d   : > { %v4796_v48 = vmul.f32 %v8539_v53, %v4759_v14  ;;  %v4973_v14 = vld [vmem:[#allocation2 + $0x190] sm:$0xff] }
 0x65e   : > { %5133 = vmatpush.bf16.xpose.msra.mxu2 %v5079_v35  ;;  %5774 = vmatpush.bf16.xpose.msra.mxu0 %v8732_v56  ;;  %v5158_v35 = vld [vmem:[#allocation2 + $0x69] sm:$0xff]  ;;  %v4992_v10 = vpack.c.bf16 %v4973_v14, %v4972_v49 }
 0x65f   : > { %v4833_v60 = vadd.f32 %v8545_v59, %v4796_v48  ;;  %v5187_v45 = vpack.c.bf16 %v5159_v20, %v5158_v35  ;;  %v5156_v48 = vld [vmem:[#allocation2 + $0x49] sm:$0xff] }
 0x660   : > { %v5038_v29 = vsel %vm681_vm1, %v4992_v10, 0  ;;  %v5699_v20 = vld [vmem:[#allocation2 + $0x22f] sm:$0xff] }
 0x661   : > { %v4865_v18 = vmax.f32 %v4833_v60, 0.0  ;;  %v8833_v46 = vsel %vm681_vm1, %v5187_v45, 0  ;;  %v5186_v60 = vpack.c.bf16 %v5157_v55, %v5156_v48  ;;  %v5715_v9 = vpack.c.bf16 %v5699_v20, %v5698_v1  ;;  %v4922_v10 = vld [vmem:[#allocation2 + $0x16f] sm:$0xff] }
 0x662   : > { %v4726_v44 = vpop.f32.mrf.mxu1  ;;  %v4979_v42 = vld [vmem:[#allocation2 + $0x1f0] sm:$0xff] }
 0x663   : > { %4897 = vst.msk [vmem:[#allocation2 + $0x208] sm:$0xff] %vm681_vm1, %v4865_v18  ;;  %v4760_v36 = vadd.f32 %v4726_v44, %v4538_v3  ;;  %v4995_v0 = vpack.c.bf16 %v4979_v42, %v4978_v12  ;;  %v8839_v27 = vsel %vm681_vm1, %v5186_v60, 0  ;;  %v5154_v3 = vld [vmem:[#allocation2 + $0x29] sm:$0xff]  ;;  %v5155_v18 = vld [vmem:[#allocation2 + $0x31] sm:$0xff]  ;;  %v4991_v44 = vpack.c.bf16 %v4971_v6, %v4970_v25 }
 0x664   : > { %v5185_v12 = vpack.c.bf16 %v5155_v18, %v5154_v3  ;;  %v4919_v6 = vld [vmem:[#allocation2 + $0x147] sm:$0xff]  ;;  %v5183_v18 = vld [vmem:[#allocation2 + $0x1f1] sm:$0xff] }
 0x665   : > { %v4797_v16 = vmul.f32 %v8539_v53, %v4760_v36  ;;  %v5047_v37 = vsel %vm681_vm1, %v4995_v0, 0  ;;  %v4976_v53 = vld [vmem:[#allocation2 + $0x1c8] sm:$0xff]  ;;  %6595 = vmatmul.msk.bf16.vlgmr.msra.gmra.mxu2 %vm681_vm1, %v8826_v22  ;;  %v5035_v42 = vsel %vm681_vm1, %v4991_v44, 0  ;;  %v4969_v36 = vld [vmem:[#allocation2 + $0x150] sm:$0xff] }
 0x666   : > { %5253 = vmatpush.bf16.xpose.msrb.mxu2 %v8788_v57  ;;  %5775 = vmatpush.bf16.xpose.msra.mxu0 %v8751_v40  ;;  %v4994_v5 = vpack.c.bf16 %v4977_v54, %v4976_v53  ;;  %v5152_v0 = vld [vmem:[#allocation2 + $0x9] sm:$0xff]  ;;  %v8845_v52 = vsel %vm681_vm1, %v5185_v12, 0  ;;  %v5181_v12 = vld [vmem:[#allocation2 + $0x1d1] sm:$0xff] }
 0x667   : > { %5062 = vmatpush.bf16.xpose.msrb.mxu3 %v5047_v37  ;;  %v4834_v15 = vadd.f32 %v8545_v59, %v4797_v16  ;;  %v5188_v59 = vpack.c.bf16 %v5161_v30, %v5160_v62  ;;  %v4968_v16 = vld [vmem:[#allocation2 + $0x148] sm:$0xff]  ;;  %v5184_v54 = vpack.c.bf16 %v5153_v21, %v5152_v0  ;;  %v4967_v30 = vld [vmem:[#allocation2 + $0x130] sm:$0xff] }
 0x668   : > { %v5044_v13 = vsel %vm681_vm1, %v4994_v5, 0  ;;  %v4966_v53 = vld [vmem:[#allocation2 + $0x128] sm:$0xff]  ;;  %v5957_v0 = vld [vmem:[#allocation2 + $0x231] sm:$0xff] }
 0x669   : > { %v4866_v17 = vmax.f32 %v4834_v15, 0.0  ;;  %v8816_v50 = vsel %vm681_vm1, %v5188_v59, 0  ;;  %v5206_v62 = vsel %vm681_vm1, %v5184_v54, 0  ;;  %v4989_v32 = vpack.c.bf16 %v4967_v30, %v4966_v53  ;;  %v4929_v5 = vld [vmem:[#allocation2 + $0x1e7] sm:$0xff]  ;;  %v5179_v21 = vld [vmem:[#allocation2 + $0x1b1] sm:$0xff] }
 0x66a   : > { %v5440_v34 = vld [vmem:[#allocation2 + $0x208] sm:$0xff]  ;;  %v5173_v20 = vld [vmem:[#allocation2 + $0x151] sm:$0xff] }
 0x66b   : > { %4898 = vst.msk [vmem:[#allocation2 + $0x210] sm:$0xff] %vm681_vm1, %v4866_v17  ;;  %v8857_v58 = vsel %vm681_vm1, %v4989_v32, 0  ;;  %v4930_v17 = vld [vmem:[#allocation2 + $0x1ef] sm:$0xff] }
 0x66c   : > { %v4946_v59 = vpack.c.bf16 %v4930_v17, %v4929_v5  ;;  %v5172_v1 = vld [vmem:[#allocation2 + $0x149] sm:$0xff] }
 0x66e   : > { %5254 = vmatpush.bf16.xpose.msrb.mxu2 %v8797_v26  ;;  %5776 = vmatpush.bf16.xpose.msra.mxu0 %v8760_v11  ;;  %v8864_v38 = vsel %vm681_vm1, %v4946_v59, 0  ;;  %v5174_v59 = vld [vmem:[#allocation2 + $0x169] sm:$0xff] }
 0x66f   : > { %5063 = vmatpush.bf16.xpose.msrb.mxu3 %v5044_v13 }
 0x672   : > { %v5441_v63 = vld [vmem:[#allocation2 + $0x210] sm:$0xff] }
 0x673   : > { %v5457_v61 = vpack.c.bf16 %v5441_v63, %v5440_v34  ;;  %v4925_v34 = vld [vmem:[#allocation2 + $0x1a7] sm:$0xff]  ;;  %v5697_v45 = vld [vmem:[#allocation2 + $0x20f] sm:$0xff] }
 0x674   : > { %v5954_v30 = vld [vmem:[#allocation2 + $0x209] sm:$0xff]  ;;  %v5955_v53 = vld [vmem:[#allocation2 + $0x211] sm:$0xff] }
 0x675   : > { %v5509_v2 = vsel %vm681_vm1, %v5457_v61, 0  ;;  %v5972_v17 = vpack.c.bf16 %v5955_v53, %v5954_v30  ;;  %v5297_v53 = vld [vmem:[#allocation2 + $0x127] sm:$0xff] }
 0x676   : > { %5255 = vmatpush.bf16.xpose.msrb.mxu2 %v8806_v23  ;;  %6027 = vmatpush.bf16.xpose.msrb.mxu0 %v8809_v4 }
 0x677   : > { %5064 = vmatpush.bf16.xpose.msrb.mxu3 %v5041_v43  ;;  %5524 = vmatpush.bf16.xpose.msrb.mxu1 %v5509_v2  ;;  %v5696_v2 = vld [vmem:[#allocation2 + $0x207] sm:$0xff]  ;;  %v8951_v5 = vsel %vm681_vm1, %v5972_v17, 0 }
 0x678   : > { %v5714_v49 = vpack.c.bf16 %v5697_v45, %v5696_v2 }
 0x67a   : > { %v8897_v55 = vsel %vm681_vm1, %v5714_v49, 0  ;;  %v5804_v49 = vld [vmem:[#allocation2 + $0xb0] sm:$0xff] }
 0x67e   : > { %5256 = vmatpush.bf16.xpose.msrb.mxu2 %v8816_v50  ;;  %6028 = vmatpush.bf16.xpose.msrb.mxu0 %v8819_v39 }
 0x67f   : > { %5065 = vmatpush.bf16.xpose.msrb.mxu3 %v5038_v29  ;;  %5525 = vmatpush.bf16.xpose.msrb.mxu1 %v5047_v37  ;;  %v4990_v37 = vpack.c.bf16 %v4969_v36, %v4968_v16  ;;  %v5956_v36 = vld [vmem:[#allocation2 + $0x229] sm:$0xff] }
 0x680   : > { %v5973_v16 = vpack.c.bf16 %v5957_v0, %v5956_v36  ;;  %v6687_v36 = vmov 0   ;;  %v5797_v0 = vld [vmem:[#allocation2 + $0x48] sm:$0xff] }
 0x681   : > { %v8850_v15 = vsel %vm681_vm1, %v4990_v37, 0  ;;  %6668 = vset.pattern.permute.xlu1 %v6687_v36  ;;  %6669 = vset.pattern.permute.xlu2 %v6687_v36 }
 0x682   : > { %6670 = vset.pattern.permute.xlu0 %v6687_v36  ;;  %v5816_v36 = vld [vmem:[#allocation2 + $0x170] sm:$0xff] }
 0x686   : > { %5257 = vmatpush.bf16.xpose.msrb.mxu2 %v8833_v46  ;;  %6029 = vmatpush.bf16.xpose.msrb.mxu0 %v8788_v57 }
 0x687   : > { %5066 = vmatpush.bf16.xpose.msrb.mxu3 %v5035_v42  ;;  %5526 = vmatpush.bf16.xpose.msrb.mxu1 %v5044_v13  ;;  %v4928_v13 = vld [vmem:[#allocation2 + $0x1cf] sm:$0xff] }
 0x688   : > { %v4945_v35 = vpack.c.bf16 %v4928_v13, %v4927_v41  ;;  %v5175_v13 = vld [vmem:[#allocation2 + $0x171] sm:$0xff] }
 0x689   : > { %v5195_v41 = vpack.c.bf16 %v5175_v13, %v5174_v59  ;;  %v6063_v13 = vld [vmem:[%s9059_s7] sm:$0xf] }
 0x68a   : > { %6066 = vperm.xlu2 %6669, %v6063_v13  }
 0x68e   : > { %5258 = vmatpush.bf16.xpose.msrb.mxu2 %v8839_v27  ;;  %6030 = vmatpush.bf16.xpose.msrb.mxu0 %v8797_v26 }
 0x68f   : > { %5067 = vmatpush.bf16.xpose.msrb.mxu3 %v8850_v15  ;;  %5527 = vmatpush.bf16.xpose.msrb.mxu1 %v5041_v43  ;;  %v4923_v43 = vld [vmem:[#allocation2 + $0x187] sm:$0xff] }
 0x696   : > { %5259 = vmatpush.bf16.xpose.msrb.mxu2 %v8845_v52  ;;  %6031 = vmatpush.bf16.xpose.msrb.mxu0 %v8806_v23 }
 0x697   : > { %5068 = vmatpush.bf16.xpose.msrb.mxu3 %v8857_v58  ;;  %5528 = vmatpush.bf16.xpose.msrb.mxu1 %v5038_v29 }
 0x69e   : > { %5260 = vmatpush.bf16.xpose.msrb.mxu2 %v5206_v62  ;;  %6032 = vmatpush.bf16.xpose.msrb.mxu0 %v8816_v50  ;;  %v5177_v62 = vld [vmem:[#allocation2 + $0x191] sm:$0xff] }
 0x69f   : > { %5069 = vmatpush.bf16.xpose.msrb.mxu3 %v8675_v28  ;;  %5529 = vmatpush.bf16.xpose.msrb.mxu1 %v5035_v42  ;;  %v8873_v28 = vsel %vm681_vm1, %v4945_v35, 0  ;;  %v8960_v35 = vsel %vm681_vm1, %v5195_v41, 0 }
 0x6a6   : > { %5382 = vmatpush.bf16.xpose.msra.mxu2 %v8735_v24  ;;  %6033 = vmatpush.bf16.xpose.msrb.mxu0 %v8833_v46 }
 0x6a7   : > { %5139 = vmatpush.bf16.xpose.msra.mxu3 %v8864_v38  ;;  %5530 = vmatpush.bf16.xpose.msrb.mxu1 %v8850_v15 }
 0x6a8   : > { %6594 = vmatmul.msk.bf16.vlgmr.msrb.gmra.mxu3 %vm681_vm1, %v8745_v31  ;;  %v5767_v31 = vsel %vm681_vm1, %v5715_v9, 0  ;;  %v5810_v9 = vld [vmem:[#allocation2 + $0x110] sm:$0xff] }
 0x6ae   : > { %5383 = vmatpush.bf16.xpose.msra.mxu2 %v8704_v8  ;;  %6034 = vmatpush.bf16.xpose.msrb.mxu0 %v8839_v27  ;;  %v4926_v8 = vld [vmem:[#allocation2 + $0x1af] sm:$0xff] }
 0x6af   : > { %5140 = vmatpush.bf16.xpose.msra.mxu3 %v8873_v28  ;;  %v4944_v63 = vpack.c.bf16 %v4926_v8, %v4925_v34  ;;  %5531 = vmatpush.bf16.xpose.msrb.mxu1 %v8857_v58  ;;  %v5809_v34 = vld [vmem:[#allocation2 + $0x108] sm:$0xff] }
 0x6b1   : > { %v8887_v61 = vsel %vm681_vm1, %v4944_v63, 0  ;;  %v5835_v63 = vpack.c.bf16 %v5810_v9, %v5809_v34 }
 0x6b2   : > { %v5520_v59 = vpop.f32.mrf.mxu0 }
 0x6b6   : > { %5384 = vmatpush.bf16.xpose.msra.mxu2 %v8712_v33  ;;  %v8880_v33 = vld [vmem:[%s9057_s5 + $0x4] sm:$0x3]  ;;  %6605 = vmatmul.msk.bf16.vlgmr.msrb.gmra.mxu1 %vm681_vm1, %v8770_v51  ;;  %v4920_v51 = vld [vmem:[#allocation2 + $0x14f] sm:$0xff] }
 0x6b7   : > { %6598 = vmatmul.msk.bf16.vlgmr.msrb.gmra.mxu2 %vm681_vm1, %v8880_v33  ;;  %5141 = vmatpush.bf16.xpose.msra.mxu3 %v8887_v61  ;;  %v4941_v25 = vpack.c.bf16 %v4920_v51, %v4919_v6  ;;  %v5801_v51 = vld [vmem:[#allocation2 + $0x88] sm:$0xff] }
 0x6b8   : > { %5782 = vmatpush.bf16.xpose.msra.mxu1 %v5767_v31  ;;  %v8977_v31 = vld [vmem:[%s9057_s5 + $0xa] sm:$0x3] }
 0x6b9   : > { %v8909_v3 = vsel %vm681_vm1, %v4941_v25, 0 }
 0x6be   : > { %5385 = vmatpush.bf16.xpose.msra.mxu2 %v8720_v7  ;;  %v4924_v7 = vld [vmem:[#allocation2 + $0x18f] sm:$0xff] }
 0x6bf   : > { %v4943_v14 = vpack.c.bf16 %v4924_v7, %v4923_v43  ;;  %v5805_v43 = vld [vmem:[#allocation2 + $0xc8] sm:$0xff] }
 0x6c0   : > { %5783 = vmatpush.bf16.xpose.msra.mxu1 %v8897_v55 }
 0x6c1   : > { %v8894_v48 = vsel %vm681_vm1, %v4943_v14, 0  ;;  %v5058_v14 = vpop.f32.mrf.mxu2 }
 0x6c2   : > { %5142 = vmatpush.bf16.xpose.msra.mxu3 %v8894_v48 }
 0x6c6   : > { %5386 = vmatpush.bf16.xpose.msra.mxu2 %v8732_v56  ;;  %v4921_v56 = vld [vmem:[#allocation2 + $0x167] sm:$0xff] }
 0x6c7   : > { %v4942_v60 = vpack.c.bf16 %v4922_v10, %v4921_v56  ;;  %v5803_v10 = vld [vmem:[#allocation2 + $0xa8] sm:$0xff] }
 0x6c8   : > { %5784 = vmatpush.bf16.xpose.msra.mxu1 %v8864_v38 }
 0x6c9   : > { %v8903_v29 = vsel %vm681_vm1, %v4942_v60, 0  ;;  %v5060_v56 = vpop.f32.mrf.mxu2 }
 0x6ca   : > { %5143 = vmatpush.bf16.xpose.msra.mxu3 %v8903_v29 }
 0x6ce   : > { %5387 = vmatpush.bf16.xpose.msra.mxu2 %v8751_v40  ;;  %v8918_v40 = vld [vmem:[%s9057_s5 + $0x6] sm:$0x3] }
 0x6d0   : > { %5785 = vmatpush.bf16.xpose.msra.mxu1 %v8873_v28 }
 0x6d2   : > { %5144 = vmatpush.bf16.xpose.msra.mxu3 %v8909_v3 }
 0x6d6   : > { %5388 = vmatpush.bf16.xpose.msra.mxu2 %v8760_v11  ;;  %v5182_v11 = vld [vmem:[#allocation2 + $0x1e9] sm:$0xff] }
 0x6d7   : > { %v5199_v44 = vpack.c.bf16 %v5183_v18, %v5182_v11  ;;  %v6615_v11 = vld [vmem:[%s9057_s5 + $0x10] sm:$0x3] }
 0x6d8   : > { %5786 = vmatpush.bf16.xpose.msra.mxu1 %v8887_v61  ;;  %v5800_v18 = vld [vmem:[#allocation2 + $0x70] sm:$0xff] }
 0x6da   : > { %5145 = vmatpush.bf16.xpose.msra.mxu3 %v8723_v47  ;;  %v5180_v47 = vld [vmem:[#allocation2 + $0x1c9] sm:$0xff] }
 0x6db   : > { %v5198_v42 = vpack.c.bf16 %v5181_v12, %v5180_v47 }
 0x6de   : > { %5389 = vmatpush.bf16.xpose.msra.mxu2 %v8776_v19  ;;  %v8928_v19 = vsel %vm681_vm1, %v5199_v44, 0 }
 0x6e0   : > { %5787 = vmatpush.bf16.xpose.msra.mxu1 %v8894_v48 }
 0x6e2   : > { %5146 = vmatpush.bf16.xpose.msra.mxu3 %v8735_v24  ;;  %v8936_v24 = vsel %vm681_vm1, %v5198_v42, 0  ;;  %v5798_v42 = vld [vmem:[#allocation2 + $0x50] sm:$0xff] }
 0x6e5   : > { %6601 = vmatmul.msk.bf16.vlgmr.msra.gmra.mxu2 %vm681_vm1, %v8918_v40 }
 0x6e6   : > { %5640 = vmatpush.bf16.xpose.msrb.mxu2 %v8819_v39 }
 0x6e8   : > { %5788 = vmatpush.bf16.xpose.msra.mxu1 %v8903_v29  ;;  %v5135_v25 = vpop.f32.mrf.mxu2 }
 0x6e9   : > { %6596 = vmatmul.msk.bf16.vlgmr.msra.gmra.mxu3 %vm681_vm1, %v8826_v22  ;;  %v5176_v22 = vld [vmem:[#allocation2 + $0x189] sm:$0xff]  ;;  %v5136_v30 = vadd.f32 %v5135_v25, %v5058_v14 }
 0x6ea   : > { %5266 = vmatpush.bf16.xpose.msrb.mxu3 %v8928_v19  ;;  %v5196_v32 = vpack.c.bf16 %v5177_v62, %v5176_v22  ;;  %v5298_v62 = vld [vmem:[#allocation2 + $0x12f] sm:$0xff] }
 0x6eb   : > { %v5820_v25 = vld [vmem:[#allocation2 + $0x1b0] sm:$0xff] }
 0x6ee   : > { %5641 = vmatpush.bf16.xpose.msrb.mxu2 %v8788_v57  ;;  %v5178_v57 = vld [vmem:[#allocation2 + $0x1a9] sm:$0xff] }
 0x6ef   : > { %v5197_v37 = vpack.c.bf16 %v5179_v21, %v5178_v57  ;;  %v5829_v57 = vpack.c.bf16 %v5798_v42, %v5797_v0  ;;  %v5815_v0 = vld [vmem:[#allocation2 + $0x168] sm:$0xff] }
 0x6f0   : > { %5789 = vmatpush.bf16.xpose.msra.mxu1 %v8909_v3  ;;  %v5137_v47 = vpop.f32.mrf.mxu2 }
 0x6f1   : > { %v8943_v54 = vsel %vm681_vm1, %v5197_v37, 0  ;;  %v9013_v37 = vld [vmem:[%s9057_s5 + $0xe] sm:$0x3] }
 0x6f2   : > { %5267 = vmatpush.bf16.xpose.msrb.mxu3 %v8936_v24  ;;  %v5817_v47 = vld [vmem:[#allocation2 + $0x188] sm:$0xff] }
 0x6f6   : > { %5642 = vmatpush.bf16.xpose.msrb.mxu2 %v8797_v26  ;;  %v6025_v26 = vsel %vm681_vm1, %v5973_v16, 0 }
 0x6f8   : > { %6040 = vmatpush.bf16.xpose.msrb.mxu1 %v6025_v26 }
 0x6fa   : > { %5268 = vmatpush.bf16.xpose.msrb.mxu3 %v8943_v54 }
 0x6fe   : > { %5643 = vmatpush.bf16.xpose.msrb.mxu2 %v8806_v23  ;;  %v8948_v23 = vsel %vm681_vm1, %v5196_v32, 0  ;;  %v5321_v32 = vpack.c.bf16 %v5298_v62, %v5297_v53 }
 0x700   : > { %6041 = vmatpush.bf16.xpose.msrb.mxu1 %v8951_v5  ;;  %v5359_v17 = vsel %vm681_vm1, %v5321_v32, 0 }
 0x702   : > { %5269 = vmatpush.bf16.xpose.msrb.mxu3 %v8948_v23 }
 0x706   : > { %5644 = vmatpush.bf16.xpose.msrb.mxu2 %v8816_v50  ;;  %v6609_v50 = vld [vmem:[%s9057_s5 + $0xc] sm:$0x3] }
 0x707   : > { %6610 = vmatmul.msk.bf16.vlgmr.msra.gmra.mxu0 %vm681_vm1, %v6609_v50  ;;  %6611 = vmatmul.msk.bf16.vlgmr.msra.gmra.mxu1 %vm681_vm1, %v6609_v50 }
 0x708   : > { %6042 = vmatpush.bf16.xpose.msrb.mxu1 %v8928_v19 }
 0x70a   : > { %5270 = vmatpush.bf16.xpose.msrb.mxu3 %v8960_v35 }
 0x70e   : > { %5645 = vmatpush.bf16.xpose.msrb.mxu2 %v8833_v46  ;;  %v5194_v46 = vpack.c.bf16 %v5173_v20, %v5172_v1 }
 0x710   : > { %v8968_v8 = vsel %vm681_vm1, %v5194_v46, 0  ;;  %6043 = vmatpush.bf16.xpose.msrb.mxu1 %v8936_v24 }
 0x712   : > { %5271 = vmatpush.bf16.xpose.msrb.mxu3 %v8968_v8 }
 0x716   : > { %5646 = vmatpush.bf16.xpose.msrb.mxu2 %v8839_v27  ;;  %v5869_v27 = vsel %vm681_vm1, %v5835_v63, 0  ;;  %v5828_v63 = vld [vmem:[#allocation2 + $0x230] sm:$0xff] }
 0x717   : > { %6616 = vmatmul.msk.bf16.vlgmr.msrb.gmra.mxu0 %vm681_vm1, %v6615_v11 }
 0x718   : > { %6044 = vmatpush.bf16.xpose.msrb.mxu1 %v8943_v54 }
 0x71a   : > { %5272 = vmatpush.bf16.xpose.msrb.mxu3 %v8809_v4  ;;  %v5806_v4 = vld [vmem:[#allocation2 + $0xd0] sm:$0xff] }
 0x71b   : > { %v5833_v2 = vpack.c.bf16 %v5806_v4, %v5805_v43 }
 0x71e   : > { %5647 = vmatpush.bf16.xpose.msrb.mxu2 %v8845_v52  ;;  %v5808_v52 = vld [vmem:[#allocation2 + $0xf0] sm:$0xff] }
 0x720   : > { %6045 = vmatpush.bf16.xpose.msrb.mxu1 %v8948_v23 }
 0x722   : > { %5273 = vmatpush.bf16.xpose.msrb.mxu3 %v8819_v39  ;;  %v5863_v39 = vsel %vm681_vm1, %v5833_v2, 0  ;;  %v5823_v2 = vld [vmem:[#allocation2 + $0x1e8] sm:$0xff] }
 0x725   : > { %6607 = vmatmul.msk.bf16.vlgmr.msrb.gmra.mxu2 %vm681_vm1, %v8977_v31 }
 0x726   : > { %5898 = vmatpush.bf16.xpose.msra.mxu2 %v8857_v58  ;;  %v5807_v58 = vld [vmem:[#allocation2 + $0xe8] sm:$0xff] }
 0x727   : > { %v5834_v7 = vpack.c.bf16 %v5808_v52, %v5807_v58 }
 0x728   : > { %6046 = vmatpush.bf16.xpose.msrb.mxu1 %v8960_v35 }
 0x729   : > { %v5866_v45 = vsel %vm681_vm1, %v5834_v7, 0  ;;  %6599 = vmatmul.msk.bf16.vlgmr.msrb.gmra.mxu3 %vm681_vm1, %v8880_v33  ;;  %v5802_v33 = vld [vmem:[#allocation2 + $0x90] sm:$0xff] }
 0x72a   : > { %5395 = vmatpush.bf16.xpose.msra.mxu3 %v8897_v55  ;;  %v5832_v55 = vpack.c.bf16 %v5804_v49, %v5803_v10  ;;  %v5831_v6 = vpack.c.bf16 %v5802_v33, %v5801_v51 }
 0x72b   : > { %v5071_v16 = vpop.f32.mrf.mxu3 }
 0x72c   : > { %v5860_v60 = vsel %vm681_vm1, %v5832_v55, 0  ;;  %v5822_v55 = vld [vmem:[#allocation2 + $0x1d0] sm:$0xff] }
 0x72e   : > { %5899 = vmatpush.bf16.xpose.msra.mxu2 %v5869_v27  ;;  %v5556_v27 = vld [vmem:[#allocation2 + $0x131] sm:$0xff] }
 0x730   : > { %6047 = vmatpush.bf16.xpose.msrb.mxu1 %v8968_v8 }
 0x732   : > { %5396 = vmatpush.bf16.xpose.msra.mxu3 %v8864_v38  ;;  %v5857_v38 = vsel %vm681_vm1, %v5831_v6, 0 }
 0x733   : > { %v5073_v22 = vpop.f32.mrf.mxu3 }
 0x736   : > { %5900 = vmatpush.bf16.xpose.msra.mxu2 %v5866_v45  ;;  %v5826_v45 = vld [vmem:[#allocation2 + $0x210] sm:$0xff] }
 0x737   : > { %6617 = vmatmul.msk.bf16.vlgmr.msrb.gmra.mxu1 %vm681_vm1, %v6615_v11 }
 0x73a   : > { %5397 = vmatpush.bf16.xpose.msra.mxu3 %v8873_v28  ;;  %v5799_v28 = vld [vmem:[#allocation2 + $0x68] sm:$0xff]  ;;  %v5262_v21 = vpop.f32.mrf.mxu2 }
 0x73b   : > { %v5830_v44 = vpack.c.bf16 %v5800_v18, %v5799_v28 }
 0x73d   : > { %v5854_v12 = vsel %vm681_vm1, %v5830_v44, 0  ;;  %v5818_v44 = vld [vmem:[#allocation2 + $0x190] sm:$0xff] }
 0x73e   : > { %5901 = vmatpush.bf16.xpose.msra.mxu2 %v5863_v39 }
 0x742   : > { %5398 = vmatpush.bf16.xpose.msra.mxu3 %v8887_v61  ;;  %v6055_v61 = vld [vmem:[%s9058_s6] sm:$0xf]  ;;  %v5264_v26 = vpop.f32.mrf.mxu2 }
 0x743   : > { %6058 = vperm.xlu1 %6668, %v6055_v61  }
 0x746   : > { %5902 = vmatpush.bf16.xpose.msra.mxu2 %v5860_v60  ;;  %v5821_v60 = vld [vmem:[#allocation2 + $0x1c8] sm:$0xff] }
 0x747   : > { %v5841_v33 = vpack.c.bf16 %v5822_v55, %v5821_v60 }
 0x749   : > { %v5887_v6 = vsel %vm681_vm1, %v5841_v33, 0 }
 0x74a   : > { %5399 = vmatpush.bf16.xpose.msra.mxu3 %v8894_v48  ;;  %v5851_v48 = vsel %vm681_vm1, %v5829_v57, 0  ;;  %v5838_v57 = vpack.c.bf16 %v5816_v36, %v5815_v0 }
 0x74e   : > { %5903 = vmatpush.bf16.xpose.msra.mxu2 %v5857_v38  ;;  %v5819_v38 = vld [vmem:[#allocation2 + $0x1a8] sm:$0xff] }
 0x74f   : > { %v5840_v11 = vpack.c.bf16 %v5820_v25, %v5819_v38 }
 0x751   : > { %v5884_v18 = vsel %vm681_vm1, %v5840_v11, 0 }
 0x752   : > { %5400 = vmatpush.bf16.xpose.msra.mxu3 %v8903_v29  ;;  %v5279_v29 = vadd.f32 %v5262_v21, %v5136_v30 }
 0x756   : > { %5904 = vmatpush.bf16.xpose.msra.mxu2 %v5854_v12  ;;  %v5839_v12 = vpack.c.bf16 %v5818_v44, %v5817_v47 }
 0x758   : > { %v5881_v42 = vsel %vm681_vm1, %v5839_v12, 0 }
 0x75a   : > { %5401 = vmatpush.bf16.xpose.msra.mxu3 %v8909_v3  ;;  %v5522_v3 = vpop.f32.mrf.mxu0 }
 0x75e   : > { %5905 = vmatpush.bf16.xpose.msra.mxu2 %v5851_v48  ;;  %v5533_v48 = vpop.f32.mrf.mxu1 }
 0x762   : > { %5402 = vmatpush.bf16.xpose.msra.mxu3 %v5359_v17 }
 0x765   : > { %6613 = vmatmul.msk.bf16.vlgmr.msra.gmra.mxu2 %vm681_vm1, %v9013_v37 }
 0x766   : > { %v5535_v26 = vpop.f32.mrf.mxu1 }
 0x768   : > { %v5391_v41 = vpop.f32.mrf.mxu2 }
 0x769   : > { %6602 = vmatmul.msk.bf16.vlgmr.msra.gmra.mxu3 %vm681_vm1, %v8918_v40  ;;  %v5408_v50 = vadd.f32 %v5391_v41, %v5279_v29  ;;  %v5827_v40 = vld [vmem:[#allocation2 + $0x228] sm:$0xff] }
 0x76a   : > { %5653 = vmatpush.bf16.xpose.msrb.mxu3 %v8951_v5  ;;  %v5844_v52 = vpack.c.bf16 %v5828_v63, %v5827_v40  ;;  %v6067_v63 = vpop.permute.xlu2 %6066 }
 0x76b   : > { %v5537_v1 = vadd.f32 %v5520_v59, %v5408_v50 }
 0x76c   : > { %v5148_v46 = vpop.f32.mrf.mxu3  ;;  %v5896_v7 = vsel %vm681_vm1, %v5844_v52, 0 }
 0x76d   : > { %v5149_v5 = vadd.f32 %v5148_v46, %v5071_v16  ;;  %v5878_v16 = vsel %vm681_vm1, %v5838_v57, 0 }
 0x770   : > { %v5393_v20 = vpop.f32.mrf.mxu2 }
 0x772   : > { %5654 = vmatpush.bf16.xpose.msrb.mxu3 %v8928_v19  ;;  %v5555_v19 = vld [vmem:[#allocation2 + $0x129] sm:$0xff] }
 0x774   : > { %v5150_v9 = vpop.f32.mrf.mxu3 }
 0x77a   : > { %5655 = vmatpush.bf16.xpose.msrb.mxu3 %v8936_v24  ;;  %v5579_v24 = vpack.c.bf16 %v5556_v27, %v5555_v19 }
 0x782   : > { %5656 = vmatpush.bf16.xpose.msrb.mxu3 %v8943_v54  ;;  %v5617_v54 = vsel %vm681_vm1, %v5579_v24, 0 }
 0x784   : > { %v5778_v34 = vpop.f32.mrf.mxu0  ;;  %v5791_v13 = vpop.f32.mrf.mxu1 }
 0x78a   : > { %5657 = vmatpush.bf16.xpose.msrb.mxu3 %v8948_v23  ;;  %v5825_v23 = vld [vmem:[#allocation2 + $0x208] sm:$0xff] }
 0x78b   : > { %v5843_v4 = vpack.c.bf16 %v5826_v45, %v5825_v23 }
 0x78c   : > { %v5780_v58 = vpop.f32.mrf.mxu0  ;;  %v5793_v3 = vpop.f32.mrf.mxu1 }
 0x792   : > { %5658 = vmatpush.bf16.xpose.msrb.mxu3 %v8960_v35  ;;  %v5893_v35 = vsel %vm681_vm1, %v5843_v4, 0 }
 0x794   : > { %v6036_v61 = vpop.f32.mrf.mxu0 }
 0x79a   : > { %5659 = vmatpush.bf16.xpose.msrb.mxu3 %v8968_v8  ;;  %v5824_v8 = vld [vmem:[#allocation2 + $0x1f0] sm:$0xff] }
 0x79b   : > { %v5842_v39 = vpack.c.bf16 %v5824_v8, %v5823_v2 }
 0x79c   : > { %v6038_v21 = vpop.f32.mrf.mxu0 }
 0x79d   : > { %v5890_v10 = vsel %vm681_vm1, %v5842_v39, 0 }
 0x7a2   : > { %5660 = vmatpush.bf16.xpose.msrb.mxu3 %v5617_v54 }
 0x7a8   : > { %v5649_v43 = vpop.f32.mrf.mxu2 }
 0x7a9   : > { %6608 = vmatmul.msk.bf16.vlgmr.msrb.gmra.mxu3 %vm681_vm1, %v8977_v31  ;;  %v5666_v14 = vadd.f32 %v5649_v43, %v5537_v1 }
 0x7aa   : > { %5911 = vmatpush.bf16.xpose.msra.mxu3 %v5896_v7 }
 0x7ab   : > { %v5795_v49 = vadd.f32 %v5778_v34, %v5666_v14 }
 0x7ac   : > { %v5275_v51 = vpop.f32.mrf.mxu3 }
 0x7ad   : > { %v5280_v31 = vadd.f32 %v5275_v51, %v5149_v5 }
 0x7b0   : > { %v5651_v56 = vpop.f32.mrf.mxu2 }
 0x7b2   : > { %5912 = vmatpush.bf16.xpose.msra.mxu3 %v5893_v35 }
 0x7b4   : > { %v5277_v28 = vpop.f32.mrf.mxu3 }
 0x7b5   : > { %v6059_v5 = vpop.permute.xlu1 %6058 }
 0x7ba   : > { %5913 = vmatpush.bf16.xpose.msra.mxu3 %v5890_v10 }
 0x7c2   : > { %5914 = vmatpush.bf16.xpose.msra.mxu3 %v5887_v6 }
 0x7ca   : > { %5915 = vmatpush.bf16.xpose.msra.mxu3 %v5884_v18 }
 0x7d2   : > { %5916 = vmatpush.bf16.xpose.msra.mxu3 %v5881_v42 }
 0x7da   : > { %5917 = vmatpush.bf16.xpose.msra.mxu3 %v5878_v16 }
 0x7e2   : > { %5918 = vmatpush.bf16.xpose.msra.mxu3 %v8850_v15  ;;  %v6049_v15 = vpop.f32.mrf.mxu1 }
 0x7e8   : > { %v5907_v22 = vpop.f32.mrf.mxu2 }
 0x7e9   : > { %6614 = vmatmul.msk.bf16.vlgmr.msra.gmra.mxu3 %vm681_vm1, %v9013_v37  ;;  %v5924_v62 = vadd.f32 %v5907_v22, %v5795_v49 }
 0x7ea   : > { %v6051_v46 = vpop.f32.mrf.mxu1 }
 0x7eb   : > { %v6053_v30 = vadd.f32 %v6036_v61, %v5924_v62 }
 0x7ec   : > { %v5404_v32 = vpop.f32.mrf.mxu3 }
 0x7ed   : > { %v5409_v29 = vadd.f32 %v5404_v32, %v5280_v31  ;;  %v6061_v34 = vmul.f32 %v6059_v5, %v6053_v30 }
 0x7ef   : > { %v5538_v17 = vadd.f32 %v5533_v48, %v5409_v29  ;;  %v6069_v27 = vadd.f32 %v6067_v63, %v6061_v34 }
 0x7f0   : > { %v5909_v53 = vpop.f32.mrf.mxu2 }
 0x7f1   : > { %v6071_v7 = vmax.f32 %v6069_v27, 0.0 }
 0x7f4   : > { %v5406_v59 = vpop.f32.mrf.mxu3 }
 0x82c   : > { %v5662_v41 = vpop.f32.mrf.mxu3 }
 0x82d   : > { %v5667_v50 = vadd.f32 %v5662_v41, %v5538_v17 }
 0x82f   : > { %v5796_v1 = vadd.f32 %v5791_v13, %v5667_v50 }
 0x834   : > { %v5664_v20 = vpop.f32.mrf.mxu3 }
 0x86c   : > { %v5920_v9 = vpop.f32.mrf.mxu3 }
 0x86d   : > { %v5925_v37 = vadd.f32 %v5920_v9, %v5796_v1 }
 0x86f   : > { %v6054_v40 = vadd.f32 %v6049_v15, %v5925_v37 }
 0x871   : > { %v6062_v19 = vmul.f32 %v6059_v5, %v6054_v40 }
 0x873   : > { %v6070_v52 = vadd.f32 %v6067_v63, %v6062_v19 }
 0x874   : > { %v5922_v58 = vpop.f32.mrf.mxu3 }
 0x875   : > { %v6072_v24 = vmax.f32 %v6070_v52, 0.0 }
 0x877   : > { %v6075_v54 = vrot.slane %v6072_v24, 4 }
 0x879   : > { %v6076_v45 = vsel %vm903_vm0, %v6071_v7, %v6075_v54 }
 0x87a   : > { %6078 = vst [vmem:[%s325_s30] sm:$0xff] %v6076_v45 }
 0x87b PF: > { %s18_s27 = sadd.s32 1, %s6683_s27  }
 0x87c   : > { %p15_p4 = scmp.ge.s32.totalorder %s18_s27, 4  }
 0x87e   :  { %17 = sbr.rel (!%p15_p4) target bundleno = 1 (0x1), region = 115 }

</bundles_post_ra>
